<compile_context>
chip_gen: v7x
topology: tpu7x:2x2x1
jax: 0.10.0
libtpu: 0.0.40
codegen_flags: <defaults>
</compile_context>

<pallas_src>
import functools

import jax
import jax.numpy as jnp
import numpy as np
from jax.experimental import pallas as pl
from jax.experimental.pallas import tpu as pltpu

K = 3  # Conv3d kernel size (both convs)


def _actor_kernel(x_ref, w1t_ref, t1_ref, w2t_ref, t2_ref, mask_ref, o_ref,
                  p1_ref, p2_ref, *, D, H, W, max_action):
    L = D * H * W
    HW = H * W
    C1 = w1t_ref.shape[0]                     # 16
    A = w2t_ref.shape[0]                      # action_dim
    My = p1_ref.shape[1]                      # Bt*L + pad (conv1 full-grid domain)
    Mz = p2_ref.shape[1]                      # Bt*L       (conv2 full-grid domain)
    Bt = Mz // L
    offs = [kd * HW + kh * W + kw
            for kd in range(K) for kh in range(K) for kw in range(K)]

    x = x_ref[0]                              # (1, Mx) f32, flat (b,d,h,w)-major

    # ---- conv1 im2col: row o = x shifted by offs[o], stored straight to scratch ----
    for o, f in enumerate(offs):
        p1_ref[pl.ds(o, 1), :] = x[:, f:f + My]
    y = jnp.dot(w1t_ref[...], p1_ref[...], preferred_element_type=jnp.float32)
    y = jnp.maximum(y + t1_ref[...], 0.0)                       # (C1, My) f32

    # ---- conv2 im2col: rows [o*C1, (o+1)*C1) = shifted y block (cast to bf16) ----
    for o, f in enumerate(offs):
        p2_ref[pl.ds(o * C1, C1), :] = y[:, f:f + Mz].astype(p2_ref.dtype)
    z = jnp.dot(w2t_ref[...], p2_ref[...], preferred_element_type=jnp.float32)
    z = jnp.maximum(z + t2_ref[...], 0.0)                       # (A, Mz) f32

    # Full-grid positions within 2 voxels of a border (and padding) hold garbage.
    # relu >= 0 and every sample has >= 1 valid position, so a 0.0 fill cannot
    # change the per-sample max.
    z = jnp.where(mask_ref[...] > 0.5, z, 0.0)

    # AdaptiveMaxPool3d(1): per-sample max over that sample's L lanes (XLU reduce).
    cols = [jnp.max(z[:, b * L:(b + 1) * L], axis=1, keepdims=True)
            for b in range(Bt)]
    pooled = jnp.concatenate(cols, axis=1)                      # (A, Bt)
    o_ref[...] = (max_action * jnp.tanh(pooled))[None].astype(o_ref.dtype)


def _pick_grid(N, per_sample_bytes):
    """Choose (batch_tile, num_tiles) from a per-generation VMEM budget."""
    try:
        kind = jax.devices()[0].device_kind.lower()
    except Exception:
        kind = ""
    # Scoped-VMEM defaults: ~16 MiB on v5e, ~32 MiB on v6e/v7x; leave headroom.
    budget = (12 << 20) if "v5" in kind else (24 << 20)
    cap = max(1, int(budget // max(1, per_sample_bytes)))
    is_v7 = ("v7" in kind) or ("7x" in kind)
    # v7x: shard the batch across its 2 TensorCores only when each half is big
    # enough to amortize the ~0.35us per-grid-step overhead.
    if is_v7 and N >= 32:
        bt = -(-N // 2)
        if bt <= cap:
            return bt, 2
    if N <= cap:
        return N, 1            # single grid step: no per-step overhead on 1-TC chips
    num_tiles = -(-N // cap)
    bt = -(-N // num_tiles)
    return bt, num_tiles


def actor_forward_pallas(x_ncdhw, params, max_action, eps=1e-5, batch_tile=None):
    """x_ncdhw: (N, 1, D, H, W) float32 (PyTorch NCDHW). Returns (N, action_dim)."""
    N, Cin, D, H, W = x_ncdhw.shape
    assert Cin == 1
    assert min(D, H, W) >= 2 * (K - 1) + 1, "need D,H,W >= 5 for two VALID k=3 convs"
    C1 = params['w1'].shape[0]
    A = params['w2'].shape[0]
    L, HW = D * H * W, H * W
    D2, H2, W2 = D - 2 * (K - 1), H - 2 * (K - 1), W - 2 * (K - 1)
    max_off = (K - 1) * (HW + W + 1)
    pad = -(-max_off // 128) * 128            # shift headroom, lane-tile rounded

    per_sample = L * 1300                     # rough VMEM bytes/sample (scratch + temps)
    if batch_tile is None:
        Bt, num_tiles = _pick_grid(N, per_sample)
    else:
        Bt = int(batch_tile)
        num_tiles = -(-N // Bt)
    Np = Bt * num_tiles                       # batch padded to a whole number of tiles

    Mz = Bt * L                               # conv2 (full-grid) domain per tile
    My = Mz + pad                             # conv1 domain per tile
    Mx = My + pad                             # padded flat input row per tile

    # flat, lane-dense input rows: (num_tiles, 1, Mx)
    x = x_ncdhw[:, 0].astype(jnp.float32).reshape(N, L)
    if Np > N:
        x = jnp.concatenate([x, jnp.zeros((Np - N, L), jnp.float32)], axis=0)
    x = x.reshape(num_tiles, 1, Mz)
    x = jnp.pad(x, ((0, 0), (0, 0), (0, Mx - Mz)))

    # fold conv bias + BatchNorm (inference mode):
    #   BN(conv(x,w)+b) = conv(x, s*w) + (s*(b-m)+beta)
    s1 = params['g1'] / jnp.sqrt(params['v1'] + eps)
    t1 = (s1 * (params['b1'] - params['m1']) + params['beta1']).reshape(C1, 1)
    s2 = params['g2'] / jnp.sqrt(params['v2'] + eps)
    t2 = (s2 * (params['b2'] - params['m2']) + params['beta2']).reshape(A, 1)

    # transposed im2col weights (output-channel rows; offset-major/channel-minor cols)
    w1t = (params['w1'][:, 0].reshape(C1, K ** 3) * s1[:, None]).astype(jnp.float32)
    w2t = (jnp.transpose(params['w2'], (0, 2, 3, 4, 1)).reshape(A, K ** 3 * C1)
           * s2[:, None]).astype(jnp.bfloat16)
    t1 = t1.astype(jnp.float32)
    t2 = t2.astype(jnp.float32)

    # static full-grid validity mask: conv2 output exists only where d<D2,h<H2,w<W2
    li = np.arange(L)
    valid = ((li // HW < D2) & ((li // W) % H < H2) & (li % W < W2))
    mask = jnp.asarray(np.tile(valid.astype(np.float32), Bt).reshape(1, Mz))

    kernel = functools.partial(_actor_kernel, D=D, H=H, W=W,
                               max_action=float(max_action))

    out = pl.pallas_call(
        kernel,
        out_shape=jax.ShapeDtypeStruct((num_tiles, A, Bt), jnp.float32),
        grid=(num_tiles,),
        in_specs=[
            pl.BlockSpec((1, 1, Mx), lambda i: (i, 0, 0)),
            # grid-invariant operands; with the default single grid step there is
            # nothing to double-buffer (pipeline_mode tuning only matters if >1 step).
            pl.BlockSpec((C1, K ** 3), lambda i: (0, 0)),
            pl.BlockSpec((C1, 1), lambda i: (0, 0)),
            pl.BlockSpec((A, K ** 3 * C1), lambda i: (0, 0)),
            pl.BlockSpec((A, 1), lambda i: (0, 0)),
            pl.BlockSpec((1, Mz), lambda i: (0, 0)),
        ],
        out_specs=pl.BlockSpec((1, A, Bt), lambda i: (i, 0, 0)),
        scratch_shapes=[
            pltpu.VMEM((K ** 3, My), jnp.float32),         # conv1 im2col (f32)
            pltpu.VMEM((K ** 3 * C1, Mz), jnp.bfloat16),   # conv2 im2col (bf16)
        ],
        compiler_params=pltpu.CompilerParams(
            dimension_semantics=("parallel",)),
    )(x, w1t, t1, w2t, t2, mask)

    res = jnp.transpose(out, (0, 2, 1)).reshape(Np, A)[:N]
    return res                                 # torch.squeeze -> (N, action_dim)


def reference_forward(x, p, max_action, eps=1e-5):
    """Pure-JAX/XLA reference of the PyTorch forward (eval-mode BN)."""
    def conv3d(h, w, b):
        out = jax.lax.conv_general_dilated(
            h, w, window_strides=(1, 1, 1), padding='VALID',
            dimension_numbers=('NCDHW', 'OIDHW', 'NCDHW'))
        return out + b[None, :, None, None, None]

    def bn(h, g, be, m, v):
        g, be, m, v = (a[None, :, None, None, None] for a in (g, be, m, v))
        return (h - m) / jnp.sqrt(v + eps) * g + be

    h = jax.nn.relu(bn(conv3d(x, p['w1'], p['b1']),
                       p['g1'], p['beta1'], p['m1'], p['v1']))
    h = jax.nn.relu(bn(conv3d(h, p['w2'], p['b2']),
                       p['g2'], p['beta2'], p['m2'], p['v2']))
    pooled = jnp.max(h, axis=(2, 3, 4))                                  # (N, A)
    return max_action * jnp.tanh(pooled)


if __name__ == "__main__":
    N, D, H, W = 4, 8, 8, 8        # D/H/W >= 5 for two VALID k=3 convs
    action_dim = 4
    max_action = 2.0
    C1 = 16

    keys = jax.random.split(jax.random.PRNGKey(0), 13)
    params = {
        'w1':    0.1 * jax.random.normal(keys[0], (C1, 1, 3, 3, 3), jnp.float32),
        'b1':    0.1 * jax.random.normal(keys[1], (C1,), jnp.float32),
        'g1':    1.0 + 0.1 * jax.random.normal(keys[2], (C1,), jnp.float32),
        'beta1': 0.1 * jax.random.normal(keys[3], (C1,), jnp.float32),
        'm1':    0.05 * jax.random.normal(keys[4], (C1,), jnp.float32),
        'v1':    1.0 + 0.1 * jax.random.uniform(keys[5], (C1,), jnp.float32),
        'w2':    0.1 * jax.random.normal(keys[6], (action_dim, C1, 3, 3, 3), jnp.float32),
        'b2':    0.1 * jax.random.normal(keys[7], (action_dim,), jnp.float32),
        'g2':    1.0 + 0.1 * jax.random.normal(keys[8], (action_dim,), jnp.float32),
        'beta2': 0.1 * jax.random.normal(keys[9], (action_dim,), jnp.float32),
        'm2':    0.05 * jax.random.normal(keys[10], (action_dim,), jnp.float32),
        'v2':    1.0 + 0.1 * jax.random.uniform(keys[11], (action_dim,), jnp.float32),
    }
    x = jax.random.normal(keys[12], (N, 1, D, H, W), jnp.float32)

    out = jax.block_until_ready(actor_forward_pallas(x, params, max_action))
    ref = jax.block_until_ready(reference_forward(x, params, max_action))
    # conv2 operands are bf16 (f32 accumulation) -> loosened tolerance.
    np.testing.assert_allclose(np.asarray(out), np.asarray(ref), rtol=2e-2, atol=2e-2)
    print("KERNEL_OK")
</pallas_src>

<mosaic_0001>
module attributes {stable_mosaic.version = 11 : i64} {
  func.func @_actor_kernel(%arg0: i32, %arg1: memref<1x1x2560xf32, #tpu.memory_space<vmem>>, %arg2: memref<16x27xf32, #tpu.memory_space<vmem>>, %arg3: memref<16x1xf32, #tpu.memory_space<vmem>>, %arg4: memref<4x432xbf16, #tpu.memory_space<vmem>>, %arg5: memref<4x1xf32, #tpu.memory_space<vmem>>, %arg6: memref<1x2048xf32, #tpu.memory_space<vmem>>, %arg7: memref<1x4x4xf32, #tpu.memory_space<vmem>>, %arg8: memref<27x2304xf32, #tpu.memory_space<vmem>>, %arg9: memref<432x2048xbf16, #tpu.memory_space<vmem>>) attributes {dimension_semantics = [#tpu.dimension_semantics<parallel>], iteration_bounds = array<i64: 1>, scalar_prefetch = 0 : i64, scratch_operands = 2 : i64, tpu.core_type = #tpu.core_type<tc>, window_params = [{transform_indices = @transform_0, window_bounds = array<i64: 1, 1, 2560>}, {pipeline_mode = #tpu.pipeline_mode<synchronous>, transform_indices = @transform_1, window_bounds = array<i64: 16, 27>}, {pipeline_mode = #tpu.pipeline_mode<synchronous>, transform_indices = @transform_2, window_bounds = array<i64: 16, 1>}, {pipeline_mode = #tpu.pipeline_mode<synchronous>, transform_indices = @transform_3, window_bounds = array<i64: 4, 432>}, {pipeline_mode = #tpu.pipeline_mode<synchronous>, transform_indices = @transform_4, window_bounds = array<i64: 4, 1>}, {pipeline_mode = #tpu.pipeline_mode<synchronous>, transform_indices = @transform_5, window_bounds = array<i64: 1, 2048>}, {transform_indices = @transform_6, window_bounds = array<i64: 1, 4, 4>}]} {
    %c0 = arith.constant 0 : index
    %c0_0 = arith.constant 0 : index
    %c0_1 = arith.constant 0 : index
    %0 = vector.load %arg1[%c0, %c0_0, %c0_1] : memref<1x1x2560xf32, #tpu.memory_space<vmem>>, vector<1x1x2560xf32>
    %1 = vector.shape_cast %0 : vector<1x1x2560xf32> to vector<1x2560xf32>
    %2 = vector.extract_strided_slice %1 {offsets = [0, 0], sizes = [1, 2304], strides = [1, 1]} : vector<1x2560xf32> to vector<1x2304xf32>
    %c0_2 = arith.constant 0 : index
    %c0_3 = arith.constant 0 : index
    %3 = vector.load %arg8[%c0_2, %c0_3] : memref<27x2304xf32, #tpu.memory_space<vmem>>, vector<1x2304xf32>
    tpu.vector_store %arg8[%c0_2, %c0_3], %2 {strides = array<i32>} : memref<27x2304xf32, #tpu.memory_space<vmem>>, vector<1x2304xf32>,
    %4 = vector.extract_strided_slice %1 {offsets = [0, 1], sizes = [1, 2304], strides = [1, 1]} : vector<1x2560xf32> to vector<1x2304xf32>
    %c1 = arith.constant 1 : index
    %c0_4 = arith.constant 0 : index
    %5 = vector.load %arg8[%c1, %c0_4] : memref<27x2304xf32, #tpu.memory_space<vmem>>, vector<1x2304xf32>
    tpu.vector_store %arg8[%c1, %c0_4], %4 {strides = array<i32>} : memref<27x2304xf32, #tpu.memory_space<vmem>>, vector<1x2304xf32>,
    %6 = vector.extract_strided_slice %1 {offsets = [0, 2], sizes = [1, 2304], strides = [1, 1]} : vector<1x2560xf32> to vector<1x2304xf32>
    %c2 = arith.constant 2 : index
    %c0_5 = arith.constant 0 : index
    %7 = vector.load %arg8[%c2, %c0_5] : memref<27x2304xf32, #tpu.memory_space<vmem>>, vector<1x2304xf32>
    tpu.vector_store %arg8[%c2, %c0_5], %6 {strides = array<i32>} : memref<27x2304xf32, #tpu.memory_space<vmem>>, vector<1x2304xf32>,
    %8 = vector.extract_strided_slice %1 {offsets = [0, 8], sizes = [1, 2304], strides = [1, 1]} : vector<1x2560xf32> to vector<1x2304xf32>
    %c3 = arith.constant 3 : index
    %c0_6 = arith.constant 0 : index
    %9 = vector.load %arg8[%c3, %c0_6] : memref<27x2304xf32, #tpu.memory_space<vmem>>, vector<1x2304xf32>
    tpu.vector_store %arg8[%c3, %c0_6], %8 {strides = array<i32>} : memref<27x2304xf32, #tpu.memory_space<vmem>>, vector<1x2304xf32>,
    %10 = vector.extract_strided_slice %1 {offsets = [0, 9], sizes = [1, 2304], strides = [1, 1]} : vector<1x2560xf32> to vector<1x2304xf32>
    %c4 = arith.constant 4 : index
    %c0_7 = arith.constant 0 : index
    %11 = vector.load %arg8[%c4, %c0_7] : memref<27x2304xf32, #tpu.memory_space<vmem>>, vector<1x2304xf32>
    tpu.vector_store %arg8[%c4, %c0_7], %10 {strides = array<i32>} : memref<27x2304xf32, #tpu.memory_space<vmem>>, vector<1x2304xf32>,
    %12 = vector.extract_strided_slice %1 {offsets = [0, 10], sizes = [1, 2304], strides = [1, 1]} : vector<1x2560xf32> to vector<1x2304xf32>
    %c5 = arith.constant 5 : index
    %c0_8 = arith.constant 0 : index
    %13 = vector.load %arg8[%c5, %c0_8] : memref<27x2304xf32, #tpu.memory_space<vmem>>, vector<1x2304xf32>
    tpu.vector_store %arg8[%c5, %c0_8], %12 {strides = array<i32>} : memref<27x2304xf32, #tpu.memory_space<vmem>>, vector<1x2304xf32>,
    %14 = vector.extract_strided_slice %1 {offsets = [0, 16], sizes = [1, 2304], strides = [1, 1]} : vector<1x2560xf32> to vector<1x2304xf32>
    %c6 = arith.constant 6 : index
    %c0_9 = arith.constant 0 : index
    %15 = vector.load %arg8[%c6, %c0_9] : memref<27x2304xf32, #tpu.memory_space<vmem>>, vector<1x2304xf32>
    tpu.vector_store %arg8[%c6, %c0_9], %14 {strides = array<i32>} : memref<27x2304xf32, #tpu.memory_space<vmem>>, vector<1x2304xf32>,
    %16 = vector.extract_strided_slice %1 {offsets = [0, 17], sizes = [1, 2304], strides = [1, 1]} : vector<1x2560xf32> to vector<1x2304xf32>
    %c7 = arith.constant 7 : index
    %c0_10 = arith.constant 0 : index
    %17 = vector.load %arg8[%c7, %c0_10] : memref<27x2304xf32, #tpu.memory_space<vmem>>, vector<1x2304xf32>
    tpu.vector_store %arg8[%c7, %c0_10], %16 {strides = array<i32>} : memref<27x2304xf32, #tpu.memory_space<vmem>>, vector<1x2304xf32>,
    %18 = vector.extract_strided_slice %1 {offsets = [0, 18], sizes = [1, 2304], strides = [1, 1]} : vector<1x2560xf32> to vector<1x2304xf32>
    %c8 = arith.constant 8 : index
    %c0_11 = arith.constant 0 : index
    %19 = vector.load %arg8[%c8, %c0_11] : memref<27x2304xf32, #tpu.memory_space<vmem>>, vector<1x2304xf32>
    tpu.vector_store %arg8[%c8, %c0_11], %18 {strides = array<i32>} : memref<27x2304xf32, #tpu.memory_space<vmem>>, vector<1x2304xf32>,
    %20 = vector.extract_strided_slice %1 {offsets = [0, 64], sizes = [1, 2304], strides = [1, 1]} : vector<1x2560xf32> to vector<1x2304xf32>
    %c9 = arith.constant 9 : index
    %c0_12 = arith.constant 0 : index
    %21 = vector.load %arg8[%c9, %c0_12] : memref<27x2304xf32, #tpu.memory_space<vmem>>, vector<1x2304xf32>
    tpu.vector_store %arg8[%c9, %c0_12], %20 {strides = array<i32>} : memref<27x2304xf32, #tpu.memory_space<vmem>>, vector<1x2304xf32>,
    %22 = vector.extract_strided_slice %1 {offsets = [0, 65], sizes = [1, 2304], strides = [1, 1]} : vector<1x2560xf32> to vector<1x2304xf32>
    %c10 = arith.constant 10 : index
    %c0_13 = arith.constant 0 : index
    %23 = vector.load %arg8[%c10, %c0_13] : memref<27x2304xf32, #tpu.memory_space<vmem>>, vector<1x2304xf32>
    tpu.vector_store %arg8[%c10, %c0_13], %22 {strides = array<i32>} : memref<27x2304xf32, #tpu.memory_space<vmem>>, vector<1x2304xf32>,
    %24 = vector.extract_strided_slice %1 {offsets = [0, 66], sizes = [1, 2304], strides = [1, 1]} : vector<1x2560xf32> to vector<1x2304xf32>
    %c11 = arith.constant 11 : index
    %c0_14 = arith.constant 0 : index
    %25 = vector.load %arg8[%c11, %c0_14] : memref<27x2304xf32, #tpu.memory_space<vmem>>, vector<1x2304xf32>
    tpu.vector_store %arg8[%c11, %c0_14], %24 {strides = array<i32>} : memref<27x2304xf32, #tpu.memory_space<vmem>>, vector<1x2304xf32>,
    %26 = vector.extract_strided_slice %1 {offsets = [0, 72], sizes = [1, 2304], strides = [1, 1]} : vector<1x2560xf32> to vector<1x2304xf32>
    %c12 = arith.constant 12 : index
    %c0_15 = arith.constant 0 : index
    %27 = vector.load %arg8[%c12, %c0_15] : memref<27x2304xf32, #tpu.memory_space<vmem>>, vector<1x2304xf32>
    tpu.vector_store %arg8[%c12, %c0_15], %26 {strides = array<i32>} : memref<27x2304xf32, #tpu.memory_space<vmem>>, vector<1x2304xf32>,
    %28 = vector.extract_strided_slice %1 {offsets = [0, 73], sizes = [1, 2304], strides = [1, 1]} : vector<1x2560xf32> to vector<1x2304xf32>
    %c13 = arith.constant 13 : index
    %c0_16 = arith.constant 0 : index
    %29 = vector.load %arg8[%c13, %c0_16] : memref<27x2304xf32, #tpu.memory_space<vmem>>, vector<1x2304xf32>
    tpu.vector_store %arg8[%c13, %c0_16], %28 {strides = array<i32>} : memref<27x2304xf32, #tpu.memory_space<vmem>>, vector<1x2304xf32>,
    %30 = vector.extract_strided_slice %1 {offsets = [0, 74], sizes = [1, 2304], strides = [1, 1]} : vector<1x2560xf32> to vector<1x2304xf32>
    %c14 = arith.constant 14 : index
    %c0_17 = arith.constant 0 : index
    %31 = vector.load %arg8[%c14, %c0_17] : memref<27x2304xf32, #tpu.memory_space<vmem>>, vector<1x2304xf32>
    tpu.vector_store %arg8[%c14, %c0_17], %30 {strides = array<i32>} : memref<27x2304xf32, #tpu.memory_space<vmem>>, vector<1x2304xf32>,
    %32 = vector.extract_strided_slice %1 {offsets = [0, 80], sizes = [1, 2304], strides = [1, 1]} : vector<1x2560xf32> to vector<1x2304xf32>
    %c15 = arith.constant 15 : index
    %c0_18 = arith.constant 0 : index
    %33 = vector.load %arg8[%c15, %c0_18] : memref<27x2304xf32, #tpu.memory_space<vmem>>, vector<1x2304xf32>
    tpu.vector_store %arg8[%c15, %c0_18], %32 {strides = array<i32>} : memref<27x2304xf32, #tpu.memory_space<vmem>>, vector<1x2304xf32>,
    %34 = vector.extract_strided_slice %1 {offsets = [0, 81], sizes = [1, 2304], strides = [1, 1]} : vector<1x2560xf32> to vector<1x2304xf32>
    %c16 = arith.constant 16 : index
    %c0_19 = arith.constant 0 : index
    %35 = vector.load %arg8[%c16, %c0_19] : memref<27x2304xf32, #tpu.memory_space<vmem>>, vector<1x2304xf32>
    tpu.vector_store %arg8[%c16, %c0_19], %34 {strides = array<i32>} : memref<27x2304xf32, #tpu.memory_space<vmem>>, vector<1x2304xf32>,
    %36 = vector.extract_strided_slice %1 {offsets = [0, 82], sizes = [1, 2304], strides = [1, 1]} : vector<1x2560xf32> to vector<1x2304xf32>
    %c17 = arith.constant 17 : index
    %c0_20 = arith.constant 0 : index
    %37 = vector.load %arg8[%c17, %c0_20] : memref<27x2304xf32, #tpu.memory_space<vmem>>, vector<1x2304xf32>
    tpu.vector_store %arg8[%c17, %c0_20], %36 {strides = array<i32>} : memref<27x2304xf32, #tpu.memory_space<vmem>>, vector<1x2304xf32>,
    %38 = vector.extract_strided_slice %1 {offsets = [0, 128], sizes = [1, 2304], strides = [1, 1]} : vector<1x2560xf32> to vector<1x2304xf32>
    %c18 = arith.constant 18 : index
    %c0_21 = arith.constant 0 : index
    %39 = vector.load %arg8[%c18, %c0_21] : memref<27x2304xf32, #tpu.memory_space<vmem>>, vector<1x2304xf32>
    tpu.vector_store %arg8[%c18, %c0_21], %38 {strides = array<i32>} : memref<27x2304xf32, #tpu.memory_space<vmem>>, vector<1x2304xf32>,
    %40 = vector.extract_strided_slice %1 {offsets = [0, 129], sizes = [1, 2304], strides = [1, 1]} : vector<1x2560xf32> to vector<1x2304xf32>
    %c19 = arith.constant 19 : index
    %c0_22 = arith.constant 0 : index
    %41 = vector.load %arg8[%c19, %c0_22] : memref<27x2304xf32, #tpu.memory_space<vmem>>, vector<1x2304xf32>
    tpu.vector_store %arg8[%c19, %c0_22], %40 {strides = array<i32>} : memref<27x2304xf32, #tpu.memory_space<vmem>>, vector<1x2304xf32>,
    %42 = vector.extract_strided_slice %1 {offsets = [0, 130], sizes = [1, 2304], strides = [1, 1]} : vector<1x2560xf32> to vector<1x2304xf32>
    %c20 = arith.constant 20 : index
    %c0_23 = arith.constant 0 : index
    %43 = vector.load %arg8[%c20, %c0_23] : memref<27x2304xf32, #tpu.memory_space<vmem>>, vector<1x2304xf32>
    tpu.vector_store %arg8[%c20, %c0_23], %42 {strides = array<i32>} : memref<27x2304xf32, #tpu.memory_space<vmem>>, vector<1x2304xf32>,
    %44 = vector.extract_strided_slice %1 {offsets = [0, 136], sizes = [1, 2304], strides = [1, 1]} : vector<1x2560xf32> to vector<1x2304xf32>
    %c21 = arith.constant 21 : index
    %c0_24 = arith.constant 0 : index
    %45 = vector.load %arg8[%c21, %c0_24] : memref<27x2304xf32, #tpu.memory_space<vmem>>, vector<1x2304xf32>
    tpu.vector_store %arg8[%c21, %c0_24], %44 {strides = array<i32>} : memref<27x2304xf32, #tpu.memory_space<vmem>>, vector<1x2304xf32>,
    %46 = vector.extract_strided_slice %1 {offsets = [0, 137], sizes = [1, 2304], strides = [1, 1]} : vector<1x2560xf32> to vector<1x2304xf32>
    %c22 = arith.constant 22 : index
    %c0_25 = arith.constant 0 : index
    %47 = vector.load %arg8[%c22, %c0_25] : memref<27x2304xf32, #tpu.memory_space<vmem>>, vector<1x2304xf32>
    tpu.vector_store %arg8[%c22, %c0_25], %46 {strides = array<i32>} : memref<27x2304xf32, #tpu.memory_space<vmem>>, vector<1x2304xf32>,
    %48 = vector.extract_strided_slice %1 {offsets = [0, 138], sizes = [1, 2304], strides = [1, 1]} : vector<1x2560xf32> to vector<1x2304xf32>
    %c23 = arith.constant 23 : index
    %c0_26 = arith.constant 0 : index
    %49 = vector.load %arg8[%c23, %c0_26] : memref<27x2304xf32, #tpu.memory_space<vmem>>, vector<1x2304xf32>
    tpu.vector_store %arg8[%c23, %c0_26], %48 {strides = array<i32>} : memref<27x2304xf32, #tpu.memory_space<vmem>>, vector<1x2304xf32>,
    %50 = vector.extract_strided_slice %1 {offsets = [0, 144], sizes = [1, 2304], strides = [1, 1]} : vector<1x2560xf32> to vector<1x2304xf32>
    %c24 = arith.constant 24 : index
    %c0_27 = arith.constant 0 : index
    %51 = vector.load %arg8[%c24, %c0_27] : memref<27x2304xf32, #tpu.memory_space<vmem>>, vector<1x2304xf32>
    tpu.vector_store %arg8[%c24, %c0_27], %50 {strides = array<i32>} : memref<27x2304xf32, #tpu.memory_space<vmem>>, vector<1x2304xf32>,
    %52 = vector.extract_strided_slice %1 {offsets = [0, 145], sizes = [1, 2304], strides = [1, 1]} : vector<1x2560xf32> to vector<1x2304xf32>
    %c25 = arith.constant 25 : index
    %c0_28 = arith.constant 0 : index
    %53 = vector.load %arg8[%c25, %c0_28] : memref<27x2304xf32, #tpu.memory_space<vmem>>, vector<1x2304xf32>
    tpu.vector_store %arg8[%c25, %c0_28], %52 {strides = array<i32>} : memref<27x2304xf32, #tpu.memory_space<vmem>>, vector<1x2304xf32>,
    %54 = vector.extract_strided_slice %1 {offsets = [0, 146], sizes = [1, 2304], strides = [1, 1]} : vector<1x2560xf32> to vector<1x2304xf32>
    %c26 = arith.constant 26 : index
    %c0_29 = arith.constant 0 : index
    %55 = vector.load %arg8[%c26, %c0_29] : memref<27x2304xf32, #tpu.memory_space<vmem>>, vector<1x2304xf32>
    tpu.vector_store %arg8[%c26, %c0_29], %54 {strides = array<i32>} : memref<27x2304xf32, #tpu.memory_space<vmem>>, vector<1x2304xf32>,
    %c0_30 = arith.constant 0 : index
    %c0_31 = arith.constant 0 : index
    %56 = vector.load %arg2[%c0_30, %c0_31] : memref<16x27xf32, #tpu.memory_space<vmem>>, vector<16x27xf32>
    %c0_32 = arith.constant 0 : index
    %c0_33 = arith.constant 0 : index
    %57 = vector.load %arg8[%c0_32, %c0_33] : memref<27x2304xf32, #tpu.memory_space<vmem>>, vector<27x2304xf32>
    %cst = arith.constant dense<0.000000e+00> : vector<16x2304xf32>
    %58 = tpu.matmul %56, %57, %cst {dimension_numbers = #tpu.dot_dimension_numbers<[1], [0], [0], [1], [0, 0, 1, 1], [], []>} : vector<16x27xf32>, vector<27x2304xf32>, vector<16x2304xf32> -> vector<16x2304xf32>
    %c0_34 = arith.constant 0 : index
    %c0_35 = arith.constant 0 : index
    %59 = vector.load %arg3[%c0_34, %c0_35] : memref<16x1xf32, #tpu.memory_space<vmem>>, vector<16x1xf32>
    %60 = vector.broadcast %59 : vector<16x1xf32> to vector<16x2304xf32>
    %61 = arith.addf %58, %60 : vector<16x2304xf32>
    %cst_36 = arith.constant 0.000000e+00 : f32
    %62 = vector.broadcast %cst_36 : f32 to vector<16x2304xf32>
    %63 = arith.maximumf %61, %62 : vector<16x2304xf32>
    %64 = vector.extract_strided_slice %63 {offsets = [0, 0], sizes = [16, 2048], strides = [1, 1]} : vector<16x2304xf32> to vector<16x2048xf32>
    %65 = arith.truncf %64 : vector<16x2048xf32> to vector<16x2048xbf16>
    %c0_37 = arith.constant 0 : index
    %c0_38 = arith.constant 0 : index
    %66 = vector.load %arg9[%c0_37, %c0_38] : memref<432x2048xbf16, #tpu.memory_space<vmem>>, vector<16x2048xbf16>
    tpu.vector_store %arg9[%c0_37, %c0_38], %65 {strides = array<i32>} : memref<432x2048xbf16, #tpu.memory_space<vmem>>, vector<16x2048xbf16>,
    %67 = vector.extract_strided_slice %63 {offsets = [0, 1], sizes = [16, 2048], strides = [1, 1]} : vector<16x2304xf32> to vector<16x2048xf32>
    %68 = arith.truncf %67 : vector<16x2048xf32> to vector<16x2048xbf16>
    %c16_39 = arith.constant 16 : index
    %c0_40 = arith.constant 0 : index
    %69 = vector.load %arg9[%c16_39, %c0_40] : memref<432x2048xbf16, #tpu.memory_space<vmem>>, vector<16x2048xbf16>
    tpu.vector_store %arg9[%c16_39, %c0_40], %68 {strides = array<i32>} : memref<432x2048xbf16, #tpu.memory_space<vmem>>, vector<16x2048xbf16>,
    %70 = vector.extract_strided_slice %63 {offsets = [0, 2], sizes = [16, 2048], strides = [1, 1]} : vector<16x2304xf32> to vector<16x2048xf32>
    %71 = arith.truncf %70 : vector<16x2048xf32> to vector<16x2048xbf16>
    %c32 = arith.constant 32 : index
    %c0_41 = arith.constant 0 : index
    %72 = vector.load %arg9[%c32, %c0_41] : memref<432x2048xbf16, #tpu.memory_space<vmem>>, vector<16x2048xbf16>
    tpu.vector_store %arg9[%c32, %c0_41], %71 {strides = array<i32>} : memref<432x2048xbf16, #tpu.memory_space<vmem>>, vector<16x2048xbf16>,
    %73 = vector.extract_strided_slice %63 {offsets = [0, 8], sizes = [16, 2048], strides = [1, 1]} : vector<16x2304xf32> to vector<16x2048xf32>
    %74 = arith.truncf %73 : vector<16x2048xf32> to vector<16x2048xbf16>
    %c48 = arith.constant 48 : index
    %c0_42 = arith.constant 0 : index
    %75 = vector.load %arg9[%c48, %c0_42] : memref<432x2048xbf16, #tpu.memory_space<vmem>>, vector<16x2048xbf16>
    tpu.vector_store %arg9[%c48, %c0_42], %74 {strides = array<i32>} : memref<432x2048xbf16, #tpu.memory_space<vmem>>, vector<16x2048xbf16>,
    %76 = vector.extract_strided_slice %63 {offsets = [0, 9], sizes = [16, 2048], strides = [1, 1]} : vector<16x2304xf32> to vector<16x2048xf32>
    %77 = arith.truncf %76 : vector<16x2048xf32> to vector<16x2048xbf16>
    %c64 = arith.constant 64 : index
    %c0_43 = arith.constant 0 : index
    %78 = vector.load %arg9[%c64, %c0_43] : memref<432x2048xbf16, #tpu.memory_space<vmem>>, vector<16x2048xbf16>
    tpu.vector_store %arg9[%c64, %c0_43], %77 {strides = array<i32>} : memref<432x2048xbf16, #tpu.memory_space<vmem>>, vector<16x2048xbf16>,
    %79 = vector.extract_strided_slice %63 {offsets = [0, 10], sizes = [16, 2048], strides = [1, 1]} : vector<16x2304xf32> to vector<16x2048xf32>
    %80 = arith.truncf %79 : vector<16x2048xf32> to vector<16x2048xbf16>
    %c80 = arith.constant 80 : index
    %c0_44 = arith.constant 0 : index
    %81 = vector.load %arg9[%c80, %c0_44] : memref<432x2048xbf16, #tpu.memory_space<vmem>>, vector<16x2048xbf16>
    tpu.vector_store %arg9[%c80, %c0_44], %80 {strides = array<i32>} : memref<432x2048xbf16, #tpu.memory_space<vmem>>, vector<16x2048xbf16>,
    %82 = vector.extract_strided_slice %63 {offsets = [0, 16], sizes = [16, 2048], strides = [1, 1]} : vector<16x2304xf32> to vector<16x2048xf32>
    %83 = arith.truncf %82 : vector<16x2048xf32> to vector<16x2048xbf16>
    %c96 = arith.constant 96 : index
    %c0_45 = arith.constant 0 : index
    %84 = vector.load %arg9[%c96, %c0_45] : memref<432x2048xbf16, #tpu.memory_space<vmem>>, vector<16x2048xbf16>
    tpu.vector_store %arg9[%c96, %c0_45], %83 {strides = array<i32>} : memref<432x2048xbf16, #tpu.memory_space<vmem>>, vector<16x2048xbf16>,
    %85 = vector.extract_strided_slice %63 {offsets = [0, 17], sizes = [16, 2048], strides = [1, 1]} : vector<16x2304xf32> to vector<16x2048xf32>
    %86 = arith.truncf %85 : vector<16x2048xf32> to vector<16x2048xbf16>
    %c112 = arith.constant 112 : index
    %c0_46 = arith.constant 0 : index
    %87 = vector.load %arg9[%c112, %c0_46] : memref<432x2048xbf16, #tpu.memory_space<vmem>>, vector<16x2048xbf16>
    tpu.vector_store %arg9[%c112, %c0_46], %86 {strides = array<i32>} : memref<432x2048xbf16, #tpu.memory_space<vmem>>, vector<16x2048xbf16>,
    %88 = vector.extract_strided_slice %63 {offsets = [0, 18], sizes = [16, 2048], strides = [1, 1]} : vector<16x2304xf32> to vector<16x2048xf32>
    %89 = arith.truncf %88 : vector<16x2048xf32> to vector<16x2048xbf16>
    %c128 = arith.constant 128 : index
    %c0_47 = arith.constant 0 : index
    %90 = vector.load %arg9[%c128, %c0_47] : memref<432x2048xbf16, #tpu.memory_space<vmem>>, vector<16x2048xbf16>
    tpu.vector_store %arg9[%c128, %c0_47], %89 {strides = array<i32>} : memref<432x2048xbf16, #tpu.memory_space<vmem>>, vector<16x2048xbf16>,
    %91 = vector.extract_strided_slice %63 {offsets = [0, 64], sizes = [16, 2048], strides = [1, 1]} : vector<16x2304xf32> to vector<16x2048xf32>
    %92 = arith.truncf %91 : vector<16x2048xf32> to vector<16x2048xbf16>
    %c144 = arith.constant 144 : index
    %c0_48 = arith.constant 0 : index
    %93 = vector.load %arg9[%c144, %c0_48] : memref<432x2048xbf16, #tpu.memory_space<vmem>>, vector<16x2048xbf16>
    tpu.vector_store %arg9[%c144, %c0_48], %92 {strides = array<i32>} : memref<432x2048xbf16, #tpu.memory_space<vmem>>, vector<16x2048xbf16>,
    %94 = vector.extract_strided_slice %63 {offsets = [0, 65], sizes = [16, 2048], strides = [1, 1]} : vector<16x2304xf32> to vector<16x2048xf32>
    %95 = arith.truncf %94 : vector<16x2048xf32> to vector<16x2048xbf16>
    %c160 = arith.constant 160 : index
    %c0_49 = arith.constant 0 : index
    %96 = vector.load %arg9[%c160, %c0_49] : memref<432x2048xbf16, #tpu.memory_space<vmem>>, vector<16x2048xbf16>
    tpu.vector_store %arg9[%c160, %c0_49], %95 {strides = array<i32>} : memref<432x2048xbf16, #tpu.memory_space<vmem>>, vector<16x2048xbf16>,
    %97 = vector.extract_strided_slice %63 {offsets = [0, 66], sizes = [16, 2048], strides = [1, 1]} : vector<16x2304xf32> to vector<16x2048xf32>
    %98 = arith.truncf %97 : vector<16x2048xf32> to vector<16x2048xbf16>
    %c176 = arith.constant 176 : index
    %c0_50 = arith.constant 0 : index
    %99 = vector.load %arg9[%c176, %c0_50] : memref<432x2048xbf16, #tpu.memory_space<vmem>>, vector<16x2048xbf16>
    tpu.vector_store %arg9[%c176, %c0_50], %98 {strides = array<i32>} : memref<432x2048xbf16, #tpu.memory_space<vmem>>, vector<16x2048xbf16>,
    %100 = vector.extract_strided_slice %63 {offsets = [0, 72], sizes = [16, 2048], strides = [1, 1]} : vector<16x2304xf32> to vector<16x2048xf32>
    %101 = arith.truncf %100 : vector<16x2048xf32> to vector<16x2048xbf16>
    %c192 = arith.constant 192 : index
    %c0_51 = arith.constant 0 : index
    %102 = vector.load %arg9[%c192, %c0_51] : memref<432x2048xbf16, #tpu.memory_space<vmem>>, vector<16x2048xbf16>
    tpu.vector_store %arg9[%c192, %c0_51], %101 {strides = array<i32>} : memref<432x2048xbf16, #tpu.memory_space<vmem>>, vector<16x2048xbf16>,
    %103 = vector.extract_strided_slice %63 {offsets = [0, 73], sizes = [16, 2048], strides = [1, 1]} : vector<16x2304xf32> to vector<16x2048xf32>
    %104 = arith.truncf %103 : vector<16x2048xf32> to vector<16x2048xbf16>
    %c208 = arith.constant 208 : index
    %c0_52 = arith.constant 0 : index
    %105 = vector.load %arg9[%c208, %c0_52] : memref<432x2048xbf16, #tpu.memory_space<vmem>>, vector<16x2048xbf16>
    tpu.vector_store %arg9[%c208, %c0_52], %104 {strides = array<i32>} : memref<432x2048xbf16, #tpu.memory_space<vmem>>, vector<16x2048xbf16>,
    %106 = vector.extract_strided_slice %63 {offsets = [0, 74], sizes = [16, 2048], strides = [1, 1]} : vector<16x2304xf32> to vector<16x2048xf32>
    %107 = arith.truncf %106 : vector<16x2048xf32> to vector<16x2048xbf16>
    %c224 = arith.constant 224 : index
    %c0_53 = arith.constant 0 : index
    %108 = vector.load %arg9[%c224, %c0_53] : memref<432x2048xbf16, #tpu.memory_space<vmem>>, vector<16x2048xbf16>
    tpu.vector_store %arg9[%c224, %c0_53], %107 {strides = array<i32>} : memref<432x2048xbf16, #tpu.memory_space<vmem>>, vector<16x2048xbf16>,
    %109 = vector.extract_strided_slice %63 {offsets = [0, 80], sizes = [16, 2048], strides = [1, 1]} : vector<16x2304xf32> to vector<16x2048xf32>
    %110 = arith.truncf %109 : vector<16x2048xf32> to vector<16x2048xbf16>
    %c240 = arith.constant 240 : index
    %c0_54 = arith.constant 0 : index
    %111 = vector.load %arg9[%c240, %c0_54] : memref<432x2048xbf16, #tpu.memory_space<vmem>>, vector<16x2048xbf16>
    tpu.vector_store %arg9[%c240, %c0_54], %110 {strides = array<i32>} : memref<432x2048xbf16, #tpu.memory_space<vmem>>, vector<16x2048xbf16>,
    %112 = vector.extract_strided_slice %63 {offsets = [0, 81], sizes = [16, 2048], strides = [1, 1]} : vector<16x2304xf32> to vector<16x2048xf32>
    %113 = arith.truncf %112 : vector<16x2048xf32> to vector<16x2048xbf16>
    %c256 = arith.constant 256 : index
    %c0_55 = arith.constant 0 : index
    %114 = vector.load %arg9[%c256, %c0_55] : memref<432x2048xbf16, #tpu.memory_space<vmem>>, vector<16x2048xbf16>
    tpu.vector_store %arg9[%c256, %c0_55], %113 {strides = array<i32>} : memref<432x2048xbf16, #tpu.memory_space<vmem>>, vector<16x2048xbf16>,
    %115 = vector.extract_strided_slice %63 {offsets = [0, 82], sizes = [16, 2048], strides = [1, 1]} : vector<16x2304xf32> to vector<16x2048xf32>
    %116 = arith.truncf %115 : vector<16x2048xf32> to vector<16x2048xbf16>
    %c272 = arith.constant 272 : index
    %c0_56 = arith.constant 0 : index
    %117 = vector.load %arg9[%c272, %c0_56] : memref<432x2048xbf16, #tpu.memory_space<vmem>>, vector<16x2048xbf16>
    tpu.vector_store %arg9[%c272, %c0_56], %116 {strides = array<i32>} : memref<432x2048xbf16, #tpu.memory_space<vmem>>, vector<16x2048xbf16>,
    %118 = vector.extract_strided_slice %63 {offsets = [0, 128], sizes = [16, 2048], strides = [1, 1]} : vector<16x2304xf32> to vector<16x2048xf32>
    %119 = arith.truncf %118 : vector<16x2048xf32> to vector<16x2048xbf16>
    %c288 = arith.constant 288 : index
    %c0_57 = arith.constant 0 : index
    %120 = vector.load %arg9[%c288, %c0_57] : memref<432x2048xbf16, #tpu.memory_space<vmem>>, vector<16x2048xbf16>
    tpu.vector_store %arg9[%c288, %c0_57], %119 {strides = array<i32>} : memref<432x2048xbf16, #tpu.memory_space<vmem>>, vector<16x2048xbf16>,
    %121 = vector.extract_strided_slice %63 {offsets = [0, 129], sizes = [16, 2048], strides = [1, 1]} : vector<16x2304xf32> to vector<16x2048xf32>
    %122 = arith.truncf %121 : vector<16x2048xf32> to vector<16x2048xbf16>
    %c304 = arith.constant 304 : index
    %c0_58 = arith.constant 0 : index
    %123 = vector.load %arg9[%c304, %c0_58] : memref<432x2048xbf16, #tpu.memory_space<vmem>>, vector<16x2048xbf16>
    tpu.vector_store %arg9[%c304, %c0_58], %122 {strides = array<i32>} : memref<432x2048xbf16, #tpu.memory_space<vmem>>, vector<16x2048xbf16>,
    %124 = vector.extract_strided_slice %63 {offsets = [0, 130], sizes = [16, 2048], strides = [1, 1]} : vector<16x2304xf32> to vector<16x2048xf32>
    %125 = arith.truncf %124 : vector<16x2048xf32> to vector<16x2048xbf16>
    %c320 = arith.constant 320 : index
    %c0_59 = arith.constant 0 : index
    %126 = vector.load %arg9[%c320, %c0_59] : memref<432x2048xbf16, #tpu.memory_space<vmem>>, vector<16x2048xbf16>
    tpu.vector_store %arg9[%c320, %c0_59], %125 {strides = array<i32>} : memref<432x2048xbf16, #tpu.memory_space<vmem>>, vector<16x2048xbf16>,
    %127 = vector.extract_strided_slice %63 {offsets = [0, 136], sizes = [16, 2048], strides = [1, 1]} : vector<16x2304xf32> to vector<16x2048xf32>
    %128 = arith.truncf %127 : vector<16x2048xf32> to vector<16x2048xbf16>
    %c336 = arith.constant 336 : index
    %c0_60 = arith.constant 0 : index
    %129 = vector.load %arg9[%c336, %c0_60] : memref<432x2048xbf16, #tpu.memory_space<vmem>>, vector<16x2048xbf16>
    tpu.vector_store %arg9[%c336, %c0_60], %128 {strides = array<i32>} : memref<432x2048xbf16, #tpu.memory_space<vmem>>, vector<16x2048xbf16>,
    %130 = vector.extract_strided_slice %63 {offsets = [0, 137], sizes = [16, 2048], strides = [1, 1]} : vector<16x2304xf32> to vector<16x2048xf32>
    %131 = arith.truncf %130 : vector<16x2048xf32> to vector<16x2048xbf16>
    %c352 = arith.constant 352 : index
    %c0_61 = arith.constant 0 : index
    %132 = vector.load %arg9[%c352, %c0_61] : memref<432x2048xbf16, #tpu.memory_space<vmem>>, vector<16x2048xbf16>
    tpu.vector_store %arg9[%c352, %c0_61], %131 {strides = array<i32>} : memref<432x2048xbf16, #tpu.memory_space<vmem>>, vector<16x2048xbf16>,
    %133 = vector.extract_strided_slice %63 {offsets = [0, 138], sizes = [16, 2048], strides = [1, 1]} : vector<16x2304xf32> to vector<16x2048xf32>
    %134 = arith.truncf %133 : vector<16x2048xf32> to vector<16x2048xbf16>
    %c368 = arith.constant 368 : index
    %c0_62 = arith.constant 0 : index
    %135 = vector.load %arg9[%c368, %c0_62] : memref<432x2048xbf16, #tpu.memory_space<vmem>>, vector<16x2048xbf16>
    tpu.vector_store %arg9[%c368, %c0_62], %134 {strides = array<i32>} : memref<432x2048xbf16, #tpu.memory_space<vmem>>, vector<16x2048xbf16>,
    %136 = vector.extract_strided_slice %63 {offsets = [0, 144], sizes = [16, 2048], strides = [1, 1]} : vector<16x2304xf32> to vector<16x2048xf32>
    %137 = arith.truncf %136 : vector<16x2048xf32> to vector<16x2048xbf16>
    %c384 = arith.constant 384 : index
    %c0_63 = arith.constant 0 : index
    %138 = vector.load %arg9[%c384, %c0_63] : memref<432x2048xbf16, #tpu.memory_space<vmem>>, vector<16x2048xbf16>
    tpu.vector_store %arg9[%c384, %c0_63], %137 {strides = array<i32>} : memref<432x2048xbf16, #tpu.memory_space<vmem>>, vector<16x2048xbf16>,
    %139 = vector.extract_strided_slice %63 {offsets = [0, 145], sizes = [16, 2048], strides = [1, 1]} : vector<16x2304xf32> to vector<16x2048xf32>
    %140 = arith.truncf %139 : vector<16x2048xf32> to vector<16x2048xbf16>
    %c400 = arith.constant 400 : index
    %c0_64 = arith.constant 0 : index
    %141 = vector.load %arg9[%c400, %c0_64] : memref<432x2048xbf16, #tpu.memory_space<vmem>>, vector<16x2048xbf16>
    tpu.vector_store %arg9[%c400, %c0_64], %140 {strides = array<i32>} : memref<432x2048xbf16, #tpu.memory_space<vmem>>, vector<16x2048xbf16>,
    %142 = vector.extract_strided_slice %63 {offsets = [0, 146], sizes = [16, 2048], strides = [1, 1]} : vector<16x2304xf32> to vector<16x2048xf32>
    %143 = arith.truncf %142 : vector<16x2048xf32> to vector<16x2048xbf16>
    %c416 = arith.constant 416 : index
    %c0_65 = arith.constant 0 : index
    %144 = vector.load %arg9[%c416, %c0_65] : memref<432x2048xbf16, #tpu.memory_space<vmem>>, vector<16x2048xbf16>
    tpu.vector_store %arg9[%c416, %c0_65], %143 {strides = array<i32>} : memref<432x2048xbf16, #tpu.memory_space<vmem>>, vector<16x2048xbf16>,
    %c0_66 = arith.constant 0 : index
    %c0_67 = arith.constant 0 : index
    %145 = vector.load %arg4[%c0_66, %c0_67] : memref<4x432xbf16, #tpu.memory_space<vmem>>, vector<4x432xbf16>
    %c0_68 = arith.constant 0 : index
    %c0_69 = arith.constant 0 : index
    %146 = vector.load %arg9[%c0_68, %c0_69] : memref<432x2048xbf16, #tpu.memory_space<vmem>>, vector<432x2048xbf16>
    %cst_70 = arith.constant dense<0.000000e+00> : vector<4x2048xf32>
    %147 = tpu.matmul %145, %146, %cst_70 {dimension_numbers = #tpu.dot_dimension_numbers<[1], [0], [0], [1], [0, 0, 1, 1], [], []>} : vector<4x432xbf16>, vector<432x2048xbf16>, vector<4x2048xf32> -> vector<4x2048xf32>
    %c0_71 = arith.constant 0 : index
    %c0_72 = arith.constant 0 : index
    %148 = vector.load %arg5[%c0_71, %c0_72] : memref<4x1xf32, #tpu.memory_space<vmem>>, vector<4x1xf32>
    %149 = vector.broadcast %148 : vector<4x1xf32> to vector<4x2048xf32>
    %150 = arith.addf %147, %149 : vector<4x2048xf32>
    %cst_73 = arith.constant 0.000000e+00 : f32
    %151 = vector.broadcast %cst_73 : f32 to vector<4x2048xf32>
    %152 = arith.maximumf %150, %151 : vector<4x2048xf32>
    %c0_74 = arith.constant 0 : index
    %c0_75 = arith.constant 0 : index
    %153 = vector.load %arg6[%c0_74, %c0_75] : memref<1x2048xf32, #tpu.memory_space<vmem>>, vector<1x2048xf32>
    %cst_76 = arith.constant 5.000000e-01 : f32
    %154 = vector.broadcast %cst_76 : f32 to vector<1x2048xf32>
    %155 = arith.cmpf ogt, %153, %154 : vector<1x2048xf32>
    %cst_77 = arith.constant 0.000000e+00 : f32
    %156 = vector.shape_cast %155 : vector<1x2048xi1> to vector<1x2048xi1>
    %157 = vector.broadcast %156 : vector<1x2048xi1> to vector<4x2048xi1>
    %158 = vector.broadcast %cst_77 : f32 to vector<4x2048xf32>
    %159 = arith.select %157, %152, %158 : vector<4x2048xi1>, vector<4x2048xf32>
    %160 = vector.extract_strided_slice %159 {offsets = [0, 0], sizes = [4, 512], strides = [1, 1]} : vector<4x2048xf32> to vector<4x512xf32>
    %cst_78 = arith.constant dense<0xFF800000> : vector<4xf32>
    %161 = vector.multi_reduction <maximumf>, %160, %cst_78 [1] : vector<4x512xf32> to vector<4xf32>
    %162 = vector.shape_cast %161 : vector<4xf32> to vector<4x1xf32>
    %163 = vector.extract_strided_slice %159 {offsets = [0, 512], sizes = [4, 512], strides = [1, 1]} : vector<4x2048xf32> to vector<4x512xf32>
    %cst_79 = arith.constant dense<0xFF800000> : vector<4xf32>
    %164 = vector.multi_reduction <maximumf>, %163, %cst_79 [1] : vector<4x512xf32> to vector<4xf32>
    %165 = vector.shape_cast %164 : vector<4xf32> to vector<4x1xf32>
    %166 = vector.extract_strided_slice %159 {offsets = [0, 1024], sizes = [4, 512], strides = [1, 1]} : vector<4x2048xf32> to vector<4x512xf32>
    %cst_80 = arith.constant dense<0xFF800000> : vector<4xf32>
    %167 = vector.multi_reduction <maximumf>, %166, %cst_80 [1] : vector<4x512xf32> to vector<4xf32>
    %168 = vector.shape_cast %167 : vector<4xf32> to vector<4x1xf32>
    %169 = vector.extract_strided_slice %159 {offsets = [0, 1536], sizes = [4, 512], strides = [1, 1]} : vector<4x2048xf32> to vector<4x512xf32>
    %cst_81 = arith.constant dense<0xFF800000> : vector<4xf32>
    %170 = vector.multi_reduction <maximumf>, %169, %cst_81 [1] : vector<4x512xf32> to vector<4xf32>
    %171 = vector.shape_cast %170 : vector<4xf32> to vector<4x1xf32>
    %172 = tpu.concatenate %162, %165, %168, %171 in 1 : vector<4x1xf32>, vector<4x1xf32>, vector<4x1xf32>, vector<4x1xf32> -> vector<4x4xf32>
    %173 = math.tanh %172 : vector<4x4xf32>
    %cst_82 = arith.constant 2.000000e+00 : f32
    %174 = vector.broadcast %cst_82 : f32 to vector<4x4xf32>
    %175 = arith.mulf %174, %173 : vector<4x4xf32>
    %176 = vector.shape_cast %175 : vector<4x4xf32> to vector<1x4x4xf32>
    %c0_83 = arith.constant 0 : index
    %c0_84 = arith.constant 0 : index
    %c0_85 = arith.constant 0 : index
    %177 = vector.load %arg7[%c0_83, %c0_84, %c0_85] : memref<1x4x4xf32, #tpu.memory_space<vmem>>, vector<1x4x4xf32>
    tpu.vector_store %arg7[%c0_83, %c0_84, %c0_85], %176 {strides = array<i32>} : memref<1x4x4xf32, #tpu.memory_space<vmem>>, vector<1x4x4xf32>,
    return
  }
  func.func @transform_0(%arg0: i32) -> (i32, i32, i32) {
    %c0_i32 = arith.constant 0 : i32
    %c0_i32_0 = arith.constant 0 : i32
    %c0_i32_1 = arith.constant 0 : i32
    return %arg0, %c0_i32, %c0_i32_0 : i32, i32, i32
  }
  func.func @transform_1(%arg0: i32) -> (i32, i32) {
    %c0_i32 = arith.constant 0 : i32
    %c0_i32_0 = arith.constant 0 : i32
    %c0_i32_1 = arith.constant 0 : i32
    return %c0_i32, %c0_i32_0 : i32, i32
  }
  func.func @transform_2(%arg0: i32) -> (i32, i32) {
    %c0_i32 = arith.constant 0 : i32
    %c0_i32_0 = arith.constant 0 : i32
    %c0_i32_1 = arith.constant 0 : i32
    return %c0_i32, %c0_i32_0 : i32, i32
  }
  func.func @transform_3(%arg0: i32) -> (i32, i32) {
    %c0_i32 = arith.constant 0 : i32
    %c0_i32_0 = arith.constant 0 : i32
    %c0_i32_1 = arith.constant 0 : i32
    return %c0_i32, %c0_i32_0 : i32, i32
  }
  func.func @transform_4(%arg0: i32) -> (i32, i32) {
    %c0_i32 = arith.constant 0 : i32
    %c0_i32_0 = arith.constant 0 : i32
    %c0_i32_1 = arith.constant 0 : i32
    return %c0_i32, %c0_i32_0 : i32, i32
  }
  func.func @transform_5(%arg0: i32) -> (i32, i32) {
    %c0_i32 = arith.constant 0 : i32
    %c0_i32_0 = arith.constant 0 : i32
    %c0_i32_1 = arith.constant 0 : i32
    return %c0_i32, %c0_i32_0 : i32, i32
  }
  func.func @transform_6(%arg0: i32) -> (i32, i32, i32) {
    %c0_i32 = arith.constant 0 : i32
    %c0_i32_0 = arith.constant 0 : i32
    %c0_i32_1 = arith.constant 0 : i32
    return %arg0, %c0_i32, %c0_i32_0 : i32, i32, i32
  }
}

</mosaic_0001>

<bundles_post_ra>
// kernel: tpu_custom_call.1
= control target key start
LH: loop header
LB: loop body
LE: loop exit
PB: predicated region body
PF: predicated region fallthrough
CT: control target
= control target key end

     0   :  { %11 = vsyncpa [#allocation5], 0  ;;  %s7771_s0 = inlined_call_operand.vmem [shape: f32[1,1,2560], index: 0, kind: input, shape index: {}]   ;;  %s7772_s1 = inlined_call_operand.hbm [shape: f32[16,27], index: 1, kind: input, shape index: {}]   ;;  %s7773_s2 = inlined_call_operand.vmem [shape: f32[16,1], index: 2, kind: input, shape index: {}]   ;;  %s7774_s3 = inlined_call_operand.hbm [shape: bf16[4,432], index: 3, kind: input, shape index: {}]   ;;  %s7775_s4 = inlined_call_operand.vmem [shape: f32[4,1], index: 4, kind: input, shape index: {}]   ;;  %s7776_s5 = inlined_call_operand.vmem [shape: f32[1,2048], index: 5, kind: input, shape index: {}]   ;;  %s7777_s6 = inlined_call_operand.hbm [shape: f32[1,4,4], index: 6, kind: output, shape index: {}]  }
   0x1   :  { %12 = vsyncpa [#allocation8], 0 }
   0x2   :  { %13 = vsyncpa [#allocation6], 0  ;;  %s4808_s21 = smov [#allocation4]   ;;  %s4736_s25 = scalar_lea.hbm %s7772_s1, 256 }
   0x3   :  { %s21_s22 = sshll.u32 %s4808_s21, 4  ;;  %p4737_p0 = scmp.ne.s32.totalorder %s7772_s1, %s4736_s25  ;;  %s22_s22 = int_to_ptr.vmem [resolvable:$true] %s21_s22 }
   0x4   :  { %p4740_p1 = scmp.lt.u32.totalorder %s4736_s25, %s7772_s1 }
   0x6   :  { %p4742_p2 = pnand %p4740_p1, %p4737_p0 }
   0x8   :  { %4745 = shalt.err (!%p4742_p2)
}
   0x9   :  { %s4746_s30 = scalar_lea.vmem %s22_s22, 256  ;;  %p4751_p4 = scmp.lt.s32.totalorder %s22_s22, %s22_s22 }
   0xa   :  { %p4747_p3 = scmp.ne.s32.totalorder %s22_s22, %s4746_s30  ;;  %p4752_p5 = scmp.lt.s32.totalorder %s4746_s30, %s4746_s30 }
   0xc   :  { %p4753_p6 = por %p4752_p5, %p4751_p4 }
   0xe   :  { %p4754_p7 = pnand %p4753_p6, %p4747_p3 }
  0x10   :  { %4757 = shalt.err (!%p4754_p7)
}
  0x11   :  { %s4809_s7 = smov 128   ;;  %s4810_s8 = smov 8  }
  0x12   :  { %27 = dma.hbm_to_vmem [thread:$0]  %s7772_s1, 256, %s22_s22, [#allocation5], %s4809_s7, %s4809_s7, %s4810_s8  }
  0x13   :  { %s4811_s11 = smov [#allocation7]   ;;  %s4758_s15 = scalar_lea.hbm %s7774_s3, 128 }
  0x14   :  { %s36_s12 = sshll.u32 %s4811_s11, 4  ;;  %p4759_p8 = scmp.ne.s32.totalorder %s7774_s3, %s4758_s15  ;;  %s37_s12 = int_to_ptr.vmem [resolvable:$true] %s36_s12 }
  0x15   :  { %p4762_p9 = scmp.lt.u32.totalorder %s4758_s15, %s7774_s3 }
  0x17   :  { %p4764_p10 = pnand %p4762_p9, %p4759_p8 }
  0x19   :  { %4767 = shalt.err (!%p4764_p10)
}
  0x1a   :  { %s4768_s20 = scalar_lea.vmem %s37_s12, 128  ;;  %p4773_p12 = scmp.lt.s32.totalorder %s37_s12, %s37_s12 }
  0x1b   :  { %p4769_p11 = scmp.ne.s32.totalorder %s37_s12, %s4768_s20  ;;  %p4774_p13 = scmp.lt.s32.totalorder %s4768_s20, %s4768_s20 }
  0x1d   :  { %p4775_p0 = por %p4774_p13, %p4773_p12 }
  0x1f   :  { %p4776_p1 = pnand %p4775_p0, %p4769_p11 }
  0x21   :  { %4779 = shalt.err (!%p4776_p1)
}
  0x22   :  { %39 = dma.hbm_to_vmem [thread:$0]  %s7774_s3, 128, %s37_s12, [#allocation8]  }
  0x23   :  { %4802 = dma.done.wait [#allocation5], 256  }
  0x24   :  { %4803 = vsyncadd [#allocation5], 4294967040 }
  0x25   :  { %4804 = dma.done.wait [#allocation8], 128  }
  0x26   :  { %4805 = vsyncadd [#allocation8], 4294967168  ;;  %v4896_v0 = vld [vmem:[%s7771_s0] sm:$0xff]  ;;  %v4901_v1 = vld [vmem:[%s7771_s0 + $0x8] sm:$0xff]  ;;  %s4812_s26 = smov 126   ;;  %s4813_s3 = smov 127   ;;  %v7785_v2 = vlaneseq }
  0x27   :  { %97 = vrot.lane.b32.xlu1 %v4896_v0, %s4812_s26  ;;  %54 = vst [vmem:[#allocation2] ss:$8 sm:$0xf] %v4896_v0  ;;  %55 = vst [vmem:[#allocation2] ss:$8 sm:$0xf0] %v4896_v0  ;;  %69 = vrot.lane.b32.xlu0 %v4896_v0, %s4813_s3 }
  0x28   :  { %57 = vst [vmem:[#allocation2 + $0x40] ss:$8 sm:$0xf] %v4901_v1  ;;  %58 = vst [vmem:[#allocation2 + $0x40] ss:$8 sm:$0xf0] %v4901_v1 }
  0x29   :  { %s4814_s27 = smov 120   ;;  %s4815_s28 = smov 119   ;;  %v529_v3 = vrot.slane %v4896_v0, 1  ;;  %v530_v4 = vrot.slane %v4901_v1, 1  ;;  %vm78_vm0 = vcmask 1046528   ;;  %vm4973_vm1 = vcmp.lt.s32.totalorder %v7785_v2, 256 }
  0x2a   :  { %s4816_s29 = smov 118   ;;  %s4817_s30 = smov 112   ;;  %v53_v5 = vld [vmem:[%s7771_s0 + $0x10] sm:$0xf]  ;;  %v4829_v8 = vmov 0.0   ;;  %vm7790_vm2 = vcmask 1031168  }
  0x2b   :  { %99 = vrot.lane.b32.xlu1 %v4901_v1, %s4812_s26  ;;  %71 = vrot.lane.b32.xlu0 %v4901_v1, %s4813_s3  ;;  %s4818_s7 = smov 111   ;;  %s4819_s8 = smov 110   ;;  %v532_v7 = vsel %vm78_vm0, %v529_v3, %v530_v4  ;;  %64 = vst.msk [vmem:[#allocation2 + $0x80] ss:$8 sm:$0x3] %vm4973_vm1, %v53_v5  ;;  %v531_v9 = vrot.slane %v53_v5, 1 }
  0x2c   :  { %s4820_s9 = smov 64   ;;  %s4821_s10 = smov 63   ;;  %538 = vst [vmem:[#allocation2 + $0x122] ss:$8 sm:$0xf] %v532_v7  ;;  %919 = vmatprep.mubr.f32.mxu0 %v4829_v8  ;;  %996 = vmatprep.mubr.f32.mxu1 %v4829_v8  ;;  %vm549_vm3 = vcmask 1045504  }
  0x2d   :  { %s4822_s11 = smov 62   ;;  %s4823_s12 = smov 56   ;;  %539 = vst [vmem:[#allocation2 + $0x122] ss:$8 sm:$0xf0] %v532_v7  ;;  %v533_v10 = vsel %vm78_vm0, %v530_v4, %v531_v9  ;;  %vm7791_vm4 = vcmask 1039360  }
  0x2e   :  { %s4824_s13 = smov 55   ;;  %s4825_s14 = smov 54   ;;  %544 = vst.msk [vmem:[#allocation2 + $0x1a2] ss:$8 sm:$0x3] %vm4973_vm1, %v531_v9  ;;  %vm134_vm5 = vcmask 982016  }
  0x2f   :  { %126 = vrot.lane.b32.xlu1 %v4901_v1, %s4814_s27  ;;  %124 = vrot.lane.b32.xlu0 %v4896_v0, %s4814_s27  ;;  %s4826_s15 = smov 48   ;;  %s4827_s18 = smov 47   ;;  %541 = vst [vmem:[#allocation2 + $0x162] ss:$8 sm:$0xf] %v533_v10  ;;  %v781_v39 = vld [vmem:[%s7773_s2] sm:$0xff] }
  0x30   :  { %s4828_s0 = smov 46   ;;  %542 = vst [vmem:[#allocation2 + $0x162] ss:$8 sm:$0xf0] %v533_v10  ;;  %vm7789_vm6 = vcmask 973824   ;;  %v7783_v44 = vmov 0  }
  0x31   :  { %4731 = vset.pattern.permute.xlu1 %v7783_v44  ;;  %4732 = vset.pattern.permute.xlu0 %v7783_v44  ;;  %v782_v45 = vld [vmem:[%s7773_s2 + $0x8] sm:$0xff]  ;;  %vm188_vm7 = vcmask 965632   ;;  %vm215_vm8 = vcmask 916480   ;;  %vm242_vm9 = vcmask 908288   ;;  %vm269_vm10 = vcmask 900096  }
  0x32   :  { %vm296_vm11 = vcmask 523264   ;;  %vm323_vm12 = vcmask 515072   ;;  %vm7778_vm13 = vcmask 506880   ;;  %vm7792_vm14 = vcmask 457728  }
  0x33   :  { %153 = vrot.lane.b32.xlu1 %v4901_v1, %s4815_s28  ;;  %151 = vrot.lane.b32.xlu0 %v4896_v0, %s4815_s28  ;;  %vm7779_vm15 = vcmask 449536  }
  0x37   :  { %180 = vrot.lane.b32.xlu1 %v4901_v1, %s4816_s29  ;;  %178 = vrot.lane.b32.xlu0 %v4896_v0, %s4816_s29 }
  0x3b   :  { %207 = vrot.lane.b32.xlu1 %v4901_v1, %s4817_s30  ;;  %205 = vrot.lane.b32.xlu0 %v4896_v0, %s4817_s30 }
  0x3f   :  { %234 = vrot.lane.b32.xlu1 %v4901_v1, %s4818_s7  ;;  %232 = vrot.lane.b32.xlu0 %v4896_v0, %s4818_s7 }
  0x43   :  { %261 = vrot.lane.b32.xlu1 %v4901_v1, %s4819_s8  ;;  %259 = vrot.lane.b32.xlu0 %v4896_v0, %s4819_s8 }
  0x47   :  { %288 = vrot.lane.b32.xlu1 %v4901_v1, %s4820_s9  ;;  %286 = vrot.lane.b32.xlu0 %v4896_v0, %s4820_s9 }
  0x4b   :  { %315 = vrot.lane.b32.xlu1 %v4901_v1, %s4821_s10  ;;  %313 = vrot.lane.b32.xlu0 %v4896_v0, %s4821_s10 }
  0x4f   :  { %342 = vrot.lane.b32.xlu1 %v4901_v1, %s4822_s11  ;;  %340 = vrot.lane.b32.xlu0 %v4896_v0, %s4822_s11 }
  0x53   :  { %369 = vrot.lane.b32.xlu1 %v4901_v1, %s4823_s12  ;;  %367 = vrot.lane.b32.xlu0 %v4896_v0, %s4823_s12 }
  0x57   :  { %396 = vrot.lane.b32.xlu1 %v4901_v1, %s4824_s13  ;;  %394 = vrot.lane.b32.xlu0 %v4896_v0, %s4824_s13 }
  0x5b   :  { %423 = vrot.lane.b32.xlu1 %v4901_v1, %s4825_s14  ;;  %421 = vrot.lane.b32.xlu0 %v4896_v0, %s4825_s14 }
  0x5f   :  { %450 = vrot.lane.b32.xlu1 %v4901_v1, %s4826_s15  ;;  %448 = vrot.lane.b32.xlu0 %v4896_v0, %s4826_s15 }
  0x63   :  { %477 = vrot.lane.b32.xlu1 %v4901_v1, %s4827_s18  ;;  %475 = vrot.lane.b32.xlu0 %v4896_v0, %s4827_s18 }
  0x67   :  { %504 = vrot.lane.b32.xlu1 %v4901_v1, %s4828_s0  ;;  %502 = vrot.lane.b32.xlu0 %v4896_v0, %s4828_s0 }
  0x6b   :  { %101 = vrot.lane.b32.xlu1 %v53_v5, %s4812_s26  ;;  %73 = vrot.lane.b32.xlu0 %v53_v5, %s4813_s3 }
  0x6f   :  { %155 = vrot.lane.b32.xlu1 %v53_v5, %s4815_s28  ;;  %128 = vrot.lane.b32.xlu0 %v53_v5, %s4814_s27 }
  0x73   :  { %209 = vrot.lane.b32.xlu1 %v53_v5, %s4817_s30  ;;  %182 = vrot.lane.b32.xlu0 %v53_v5, %s4816_s29 }
  0x77   :  { %263 = vrot.lane.b32.xlu1 %v53_v5, %s4819_s8  ;;  %236 = vrot.lane.b32.xlu0 %v53_v5, %s4818_s7 }
  0x7b   :  { %317 = vrot.lane.b32.xlu1 %v53_v5, %s4821_s10  ;;  %290 = vrot.lane.b32.xlu0 %v53_v5, %s4820_s9 }
  0x7f   :  { %371 = vrot.lane.b32.xlu1 %v53_v5, %s4823_s12  ;;  %344 = vrot.lane.b32.xlu0 %v53_v5, %s4822_s11 }
  0x83   :  { %425 = vrot.lane.b32.xlu1 %v53_v5, %s4825_s14  ;;  %398 = vrot.lane.b32.xlu0 %v53_v5, %s4824_s13 }
  0x87   :  { %479 = vrot.lane.b32.xlu1 %v53_v5, %s4827_s18  ;;  %452 = vrot.lane.b32.xlu0 %v53_v5, %s4826_s15 }
  0x8b   :  { %506 = vrot.lane.b32.xlu0 %v53_v5, %s4828_s0  ;;  %785 = vperm.xlu1 %4731, %v781_v39  }
  0x8f   :  { %790 = vperm.xlu0 %4732, %v782_v45  }
  0x99   :  { %v98_v11 = vpop.permute.xlu1 %97  ;;  %v70_v12 = vpop.permute.xlu0 %69 }
  0x9a   :  { %v103_v13 = vrot.slane %v98_v11, 1  ;;  %v567_v14 = vrot.slane %v98_v11, 2  ;;  %v75_v15 = vrot.slane %v70_v12, 1  ;;  %v546_v16 = vrot.slane %v70_v12, 2 }
  0x9d   :  { %v5010_v17 = vpop.permute.xlu1 %99  ;;  %v5012_v18 = vpop.permute.xlu0 %71 }
  0x9e   :  { %v104_v19 = vrot.slane %v5010_v17, 1  ;;  %v568_v20 = vrot.slane %v5010_v17, 2  ;;  %v76_v21 = vrot.slane %v5012_v18, 1  ;;  %v547_v22 = vrot.slane %v5012_v18, 2 }
  0xa0   :  { %v106_v23 = vsel %vm78_vm0, %v103_v13, %v104_v19  ;;  %v570_v24 = vsel %vm549_vm3, %v567_v14, %v568_v20  ;;  %v79_v25 = vsel %vm78_vm0, %v75_v15, %v76_v21  ;;  %v550_v26 = vsel %vm549_vm3, %v546_v16, %v547_v22 }
  0xa1   :  { %v108_v27 = vsel %vm7790_vm2, %v98_v11, %v106_v23  ;;  %v571_v28 = vsel %vm7790_vm2, %v106_v23, %v570_v24  ;;  %v81_v29 = vsel %vm7791_vm4, %v70_v12, %v79_v25  ;;  %v551_v30 = vsel %vm7791_vm4, %v79_v25, %v550_v26  ;;  %v5034_v31 = vpop.permute.xlu1 %126  ;;  %v125_v32 = vpop.permute.xlu0 %124 }
  0xa2   :  { %116 = vst [vmem:[#allocation2 + $0x2] ss:$8 sm:$0xf] %v108_v27  ;;  %117 = vst [vmem:[#allocation2 + $0x2] ss:$8 sm:$0xf0] %v108_v27 }
  0xa3   :  { %579 = vst [vmem:[#allocation2 + $0x124] ss:$8 sm:$0xf] %v571_v28  ;;  %580 = vst [vmem:[#allocation2 + $0x124] ss:$8 sm:$0xf0] %v571_v28 }
  0xa4   :  { %89 = vst [vmem:[#allocation2 + $0x1] ss:$8 sm:$0xf] %v81_v29  ;;  %90 = vst [vmem:[#allocation2 + $0x1] ss:$8 sm:$0xf0] %v81_v29 }
  0xa5   :  { %559 = vst [vmem:[#allocation2 + $0x123] ss:$8 sm:$0xf] %v551_v30  ;;  %560 = vst [vmem:[#allocation2 + $0x123] ss:$8 sm:$0xf0] %v551_v30  ;;  %v5049_v42 = vpop.permute.xlu1 %153  ;;  %v152_v43 = vpop.permute.xlu0 %151 }
  0xa6   :  { %v131_v33 = vrot.slane %v5034_v31, 1  ;;  %v588_v34 = vrot.slane %v5034_v31, 2  ;;  %v130_v35 = vrot.slane %v125_v32, 1  ;;  %v587_v36 = vrot.slane %v125_v32, 2 }
  0xa7   :  { %v158_v46 = vrot.slane %v5049_v42, 1  ;;  %v608_v47 = vrot.slane %v5049_v42, 2  ;;  %v157_v48 = vrot.slane %v152_v43, 1  ;;  %v607_v49 = vrot.slane %v152_v43, 2 }
  0xa8   :  { %v133_v37 = vsel %vm78_vm0, %v130_v35, %v131_v33  ;;  %v590_v38 = vsel %vm549_vm3, %v587_v36, %v588_v34 }
  0xa9   :  { %v135_v40 = vsel %vm134_vm5, %v125_v32, %v133_v37  ;;  %v591_v41 = vsel %vm134_vm5, %v133_v37, %v590_v38  ;;  %v160_v50 = vsel %vm78_vm0, %v157_v48, %v158_v46  ;;  %v610_v51 = vsel %vm549_vm3, %v607_v49, %v608_v47  ;;  %v5066_v54 = vpop.permute.xlu1 %180  ;;  %v179_v55 = vpop.permute.xlu0 %178 }
  0xaa   :  { %143 = vst [vmem:[#allocation2 + $0x3] ss:$8 sm:$0xf] %v135_v40  ;;  %144 = vst [vmem:[#allocation2 + $0x3] ss:$8 sm:$0xf0] %v135_v40  ;;  %v162_v52 = vsel %vm7789_vm6, %v152_v43, %v160_v50  ;;  %v611_v53 = vsel %vm7789_vm6, %v160_v50, %v610_v51 }
  0xab   :  { %599 = vst [vmem:[#allocation2 + $0x125] ss:$8 sm:$0xf] %v591_v41  ;;  %600 = vst [vmem:[#allocation2 + $0x125] ss:$8 sm:$0xf0] %v591_v41 }
  0xac   :  { %170 = vst [vmem:[#allocation2 + $0x4] ss:$8 sm:$0xf] %v162_v52  ;;  %171 = vst [vmem:[#allocation2 + $0x4] ss:$8 sm:$0xf0] %v162_v52 }
  0xad   :  { %619 = vst [vmem:[#allocation2 + $0x126] ss:$8 sm:$0xf] %v611_v53  ;;  %620 = vst [vmem:[#allocation2 + $0x126] ss:$8 sm:$0xf0] %v611_v53  ;;  %v5078_v0 = vpop.permute.xlu1 %207  ;;  %v206_v1 = vpop.permute.xlu0 %205 }
  0xae   :  { %v185_v56 = vrot.slane %v5066_v54, 1  ;;  %v628_v57 = vrot.slane %v5066_v54, 2  ;;  %v184_v58 = vrot.slane %v179_v55, 1  ;;  %v627_v59 = vrot.slane %v179_v55, 2 }
  0xaf   :  { %v212_v3 = vrot.slane %v5078_v0, 1  ;;  %v648_v4 = vrot.slane %v5078_v0, 2  ;;  %v211_v5 = vrot.slane %v206_v1, 1  ;;  %v647_v7 = vrot.slane %v206_v1, 2 }
  0xb0   :  { %v187_v60 = vsel %vm78_vm0, %v184_v58, %v185_v56  ;;  %v630_v61 = vsel %vm549_vm3, %v627_v59, %v628_v57 }
  0xb1   :  { %v189_v62 = vsel %vm188_vm7, %v179_v55, %v187_v60  ;;  %v631_v63 = vsel %vm188_vm7, %v187_v60, %v630_v61  ;;  %v214_v9 = vsel %vm78_vm0, %v211_v5, %v212_v3  ;;  %v650_v10 = vsel %vm549_vm3, %v647_v7, %v648_v4  ;;  %v5090_v13 = vpop.permute.xlu1 %234  ;;  %v233_v14 = vpop.permute.xlu0 %232 }
  0xb2   :  { %197 = vst [vmem:[#allocation2 + $0x5] ss:$8 sm:$0xf] %v189_v62  ;;  %198 = vst [vmem:[#allocation2 + $0x5] ss:$8 sm:$0xf0] %v189_v62  ;;  %v216_v11 = vsel %vm215_vm8, %v206_v1, %v214_v9  ;;  %v651_v12 = vsel %vm215_vm8, %v214_v9, %v650_v10 }
  0xb3   :  { %639 = vst [vmem:[#allocation2 + $0x127] ss:$8 sm:$0xf] %v631_v63  ;;  %640 = vst [vmem:[#allocation2 + $0x127] ss:$8 sm:$0xf0] %v631_v63 }
  0xb4   :  { %224 = vst [vmem:[#allocation2 + $0x6] ss:$8 sm:$0xf] %v216_v11  ;;  %225 = vst [vmem:[#allocation2 + $0x6] ss:$8 sm:$0xf0] %v216_v11 }
  0xb5   :  { %659 = vst [vmem:[#allocation2 + $0x1b0] ss:$8 sm:$0xf] %v651_v12  ;;  %660 = vst [vmem:[#allocation2 + $0x1b0] ss:$8 sm:$0xf0] %v651_v12  ;;  %v5102_v29 = vpop.permute.xlu1 %261  ;;  %v260_v30 = vpop.permute.xlu0 %259 }
  0xb6   :  { %v239_v15 = vrot.slane %v5090_v13, 1  ;;  %v668_v16 = vrot.slane %v5090_v13, 2  ;;  %v238_v23 = vrot.slane %v233_v14, 1  ;;  %v667_v24 = vrot.slane %v233_v14, 2 }
  0xb7   :  { %v266_v32 = vrot.slane %v5102_v29, 1  ;;  %v688_v35 = vrot.slane %v5102_v29, 2  ;;  %v265_v36 = vrot.slane %v260_v30, 1  ;;  %v687_v37 = vrot.slane %v260_v30, 2 }
  0xb8   :  { %v241_v25 = vsel %vm78_vm0, %v238_v23, %v239_v15  ;;  %v670_v26 = vsel %vm549_vm3, %v667_v24, %v668_v16 }
  0xb9   :  { %v243_v27 = vsel %vm242_vm9, %v233_v14, %v241_v25  ;;  %v671_v28 = vsel %vm242_vm9, %v241_v25, %v670_v26  ;;  %v268_v38 = vsel %vm78_vm0, %v265_v36, %v266_v32  ;;  %v690_v39 = vsel %vm549_vm3, %v687_v37, %v688_v35  ;;  %v5114_v43 = vpop.permute.xlu1 %288  ;;  %v287_v45 = vpop.permute.xlu0 %286 }
  0xba   :  { %251 = vst [vmem:[#allocation2 + $0x7] ss:$8 sm:$0xf] %v243_v27  ;;  %252 = vst [vmem:[#allocation2 + $0x7] ss:$8 sm:$0xf0] %v243_v27  ;;  %v270_v40 = vsel %vm269_vm10, %v260_v30, %v268_v38  ;;  %v691_v41 = vsel %vm269_vm10, %v268_v38, %v690_v39 }
  0xbb   :  { %679 = vst [vmem:[#allocation2 + $0x1b1] ss:$8 sm:$0xf] %v671_v28  ;;  %680 = vst [vmem:[#allocation2 + $0x1b1] ss:$8 sm:$0xf0] %v671_v28 }
  0xbc   :  { %278 = vst [vmem:[#allocation2 + $0x90] ss:$8 sm:$0xf] %v270_v40  ;;  %279 = vst [vmem:[#allocation2 + $0x90] ss:$8 sm:$0xf0] %v270_v40 }
  0xbd   :  { %699 = vst [vmem:[#allocation2 + $0x1b2] ss:$8 sm:$0xf] %v691_v41  ;;  %700 = vst [vmem:[#allocation2 + $0x1b2] ss:$8 sm:$0xf0] %v691_v41  ;;  %v5121_v52 = vpop.permute.xlu1 %315  ;;  %v314_v53 = vpop.permute.xlu0 %313 }
  0xbe   :  { %v293_v48 = vrot.slane %v5114_v43, 1  ;;  %v292_v49 = vrot.slane %v287_v45, 1  ;;  %v320_v55 = vrot.slane %v5121_v52, 1  ;;  %v319_v58 = vrot.slane %v314_v53, 1 }
  0xc0   :  { %v295_v50 = vsel %vm78_vm0, %v292_v49, %v293_v48  ;;  %v322_v59 = vsel %vm78_vm0, %v319_v58, %v320_v55 }
  0xc1   :  { %v297_v51 = vsel %vm296_vm11, %v287_v45, %v295_v50  ;;  %v324_v60 = vsel %vm323_vm12, %v314_v53, %v322_v59  ;;  %v5128_v61 = vpop.permute.xlu1 %342  ;;  %v341_v62 = vpop.permute.xlu0 %340 }
  0xc2   :  { %305 = vst [vmem:[#allocation2 + $0x91] ss:$8 sm:$0xf] %v297_v51  ;;  %306 = vst [vmem:[#allocation2 + $0x91] ss:$8 sm:$0xf0] %v297_v51 }
  0xc3   :  { %332 = vst [vmem:[#allocation2 + $0x92] ss:$8 sm:$0xf] %v324_v60  ;;  %333 = vst [vmem:[#allocation2 + $0x92] ss:$8 sm:$0xf0] %v324_v60 }
  0xc4   :  { %v347_v63 = vrot.slane %v5128_v61, 1  ;;  %v346_v1 = vrot.slane %v341_v62, 1 }
  0xc5   :  { %v5135_v9 = vpop.permute.xlu1 %369  ;;  %v368_v10 = vpop.permute.xlu0 %367 }
  0xc6   :  { %v349_v5 = vsel %vm78_vm0, %v346_v1, %v347_v63  ;;  %v374_v11 = vrot.slane %v5135_v9, 1  ;;  %v373_v12 = vrot.slane %v368_v10, 1 }
  0xc7   :  { %v351_v7 = vsel %vm7778_vm13, %v341_v62, %v349_v5  ;;  %vm7780_vm13 = vcmask 441344  }
  0xc8   :  { %359 = vst [vmem:[#allocation2 + $0x93] ss:$8 sm:$0xf] %v351_v7  ;;  %360 = vst [vmem:[#allocation2 + $0x93] ss:$8 sm:$0xf0] %v351_v7  ;;  %v376_v14 = vsel %vm78_vm0, %v373_v12, %v374_v11 }
  0xc9   :  { %v378_v23 = vsel %vm7792_vm14, %v368_v10, %v376_v14  ;;  %v5142_v24 = vpop.permute.xlu1 %396  ;;  %v395_v25 = vpop.permute.xlu0 %394 }
  0xca   :  { %386 = vst [vmem:[#allocation2 + $0x94] ss:$8 sm:$0xf] %v378_v23  ;;  %387 = vst [vmem:[#allocation2 + $0x94] ss:$8 sm:$0xf0] %v378_v23 }
  0xcb   :  { %v401_v26 = vrot.slane %v5142_v24, 1  ;;  %v400_v27 = vrot.slane %v395_v25, 1 }
  0xcd   :  { %v403_v28 = vsel %vm78_vm0, %v400_v27, %v401_v26  ;;  %v5149_v36 = vpop.permute.xlu1 %423  ;;  %v422_v37 = vpop.permute.xlu0 %421  ;;  %v710_v27 = vld [vmem:[#allocation2 + $0x8] sm:$0xff] }
  0xce   :  { %v405_v30 = vsel %vm7779_vm15, %v395_v25, %v403_v28  ;;  %v428_v38 = vrot.slane %v5149_v36, 1  ;;  %v427_v39 = vrot.slane %v422_v37, 1  ;;  %vm7781_vm15 = vcmask 392192   ;;  %v712_v28 = vld [vmem:[#allocation2 + $0x18] sm:$0xff] }
  0xcf   :  { %413 = vst [vmem:[#allocation2 + $0x95] ss:$8 sm:$0xf] %v405_v30  ;;  %414 = vst [vmem:[#allocation2 + $0x95] ss:$8 sm:$0xf0] %v405_v30 }
  0xd0   :  { %v430_v40 = vsel %vm78_vm0, %v427_v39, %v428_v38  ;;  %v709_v30 = vld [vmem:[#allocation2] sm:$0xff] }
  0xd1   :  { %v432_v41 = vsel %vm7780_vm13, %v422_v37, %v430_v40  ;;  %v5156_v45 = vpop.permute.xlu1 %450  ;;  %v449_v49 = vpop.permute.xlu0 %448  ;;  %vm7782_vm13 = vcmask 384000  }
  0xd2   :  { %440 = vst [vmem:[#allocation2 + $0x96] ss:$8 sm:$0xf] %v432_v41  ;;  %441 = vst [vmem:[#allocation2 + $0x96] ss:$8 sm:$0xf0] %v432_v41 }
  0xd3   :  { %v7787_v50 = vrot.slane %v5156_v45, 1  ;;  %v454_v51 = vrot.slane %v449_v49, 1 }
  0xd5   :  { %v457_v53 = vsel %vm78_vm0, %v454_v51, %v7787_v50  ;;  %v5163_v59 = vpop.permute.xlu1 %477  ;;  %v476_v60 = vpop.permute.xlu0 %475 }
  0xd6   :  { %v459_v58 = vsel %vm7781_vm15, %v449_v49, %v457_v53  ;;  %v7788_v62 = vrot.slane %v5163_v59, 1  ;;  %v481_v1 = vrot.slane %v476_v60, 1  ;;  %vm512_vm15 = vcmask 375808  }
  0xd7   :  { %467 = vst [vmem:[#allocation2 + $0x97] ss:$8 sm:$0xf] %v459_v58  ;;  %468 = vst [vmem:[#allocation2 + $0x97] ss:$8 sm:$0xf0] %v459_v58 }
  0xd8   :  { %v484_v5 = vsel %vm78_vm0, %v481_v1, %v7788_v62 }
  0xd9   :  { %v486_v7 = vsel %vm7782_vm13, %v476_v60, %v484_v5  ;;  %v5170_v10 = vpop.permute.xlu1 %504  ;;  %v503_v12 = vpop.permute.xlu0 %502  ;;  %vm800_vm13 = vcmask 1042432   ;;  %v711_v5 = vld [vmem:[#allocation2 + $0x10] sm:$0xff] }
  0xda   :  { %494 = vst [vmem:[#allocation2 + $0x120] ss:$8 sm:$0xf] %v486_v7  ;;  %495 = vst [vmem:[#allocation2 + $0x120] ss:$8 sm:$0xf0] %v486_v7 }
  0xdb   :  { %v7786_v14 = vrot.slane %v5170_v10, 1  ;;  %v508_v23 = vrot.slane %v503_v12, 1 }
  0xdd   :  { %v511_v25 = vsel %vm78_vm0, %v508_v23, %v7786_v14  ;;  %v102_v39 = vpop.permute.xlu1 %101  ;;  %v74_v40 = vpop.permute.xlu0 %73 }
  0xde   :  { %v513_v37 = vsel %vm512_vm15, %v503_v12, %v511_v25  ;;  %v728_v41 = vld [vmem:[#allocation2 + $0x98] sm:$0xff]  ;;  %v730_v49 = vld [vmem:[#allocation2 + $0xa8] sm:$0xff]  ;;  %v727_v51 = vld [vmem:[#allocation2 + $0x90] sm:$0xff]  ;;  %v105_v53 = vrot.slane %v102_v39, 1  ;;  %v569_v58 = vrot.slane %v102_v39, 2  ;;  %v77_v60 = vrot.slane %v74_v40, 1 }
  0xdf   :  { %521 = vst [vmem:[#allocation2 + $0x121] ss:$8 sm:$0xf] %v513_v37  ;;  %522 = vst [vmem:[#allocation2 + $0x121] ss:$8 sm:$0xf0] %v513_v37  ;;  %v4567_v23 = vpack.c.bf16 %v728_v41, %v710_v27  ;;  %v4577_v44 = vpack.c.bf16 %v730_v49, %v712_v28  ;;  %v4569_v2 = vpack.c.bf16 %v727_v51, %v709_v30 }
  0xe0   :  { %v548_v1 = vrot.slane %v74_v40, 2  ;;  %v729_v7 = vld [vmem:[#allocation2 + $0xa0] sm:$0xff]  ;;  %v109_v12 = vsel %vm78_vm0, %v104_v19, %v105_v53  ;;  %v111_v25 = vsel %vm7790_vm2, %v102_v39, %v105_v53  ;;  %v572_v37 = vsel %vm549_vm3, %v568_v20, %v569_v58  ;;  %v5196_v39 = vld [vmem:[#allocation2 + $0xb8] sm:$0xff] }
  0xe1   :  { %v4579_v14 = vpack.c.bf16 %v729_v7, %v711_v5  ;;  %v574_v50 = vsel %vm7790_vm2, %v105_v53, %v569_v58  ;;  %v110_v62 = vsel %vm7790_vm2, %v5010_v17, %v109_v12  ;;  %122 = vst.msk [vmem:[#allocation2 + $0x82] ss:$8 sm:$0x3] %vm4973_vm1, %v111_v25  ;;  %v573_v27 = vsel %vm7790_vm2, %v109_v12, %v572_v37  ;;  %v156_v20 = vpop.permute.xlu1 %155  ;;  %v129_v30 = vpop.permute.xlu0 %128  ;;  %v5198_v17 = vld [vmem:[#allocation2 + $0xc8] sm:$0xff] }
  0xe2   :  { %585 = vst.msk [vmem:[#allocation2 + $0x1a4] ss:$8 sm:$0x3] %vm4973_vm1, %v574_v50  ;;  %v82_v19 = vsel %vm78_vm0, %v76_v21, %v77_v60  ;;  %v84_v28 = vsel %vm7791_vm4, %v74_v40, %v77_v60  ;;  %4568 = vmatprep.subr.bf16.mxu0 %v4567_v23  ;;  %119 = vst [vmem:[#allocation2 + $0x42] ss:$8 sm:$0xf] %v110_v62  ;;  %v552_v21 = vsel %vm549_vm3, %v547_v22, %v548_v1 }
  0xe3   :  { %120 = vst [vmem:[#allocation2 + $0x42] ss:$8 sm:$0xf0] %v110_v62  ;;  %582 = vst [vmem:[#allocation2 + $0x164] ss:$8 sm:$0xf] %v573_v27  ;;  %v83_v50 = vsel %vm7791_vm4, %v5012_v18, %v82_v19  ;;  %v554_v40 = vsel %vm7791_vm4, %v77_v60, %v548_v1  ;;  %4578 = vmatprep.subr.bf16.mxu1 %v4577_v44  ;;  %4570 = vmatpush1.bf16.msra.mxu0 %v4569_v2 }
  0xe4   :  { %583 = vst [vmem:[#allocation2 + $0x164] ss:$8 sm:$0xf0] %v573_v27  ;;  %95 = vst.msk [vmem:[#allocation2 + $0x81] ss:$8 sm:$0x3] %vm4973_vm1, %v84_v28  ;;  %v553_v62 = vsel %vm7791_vm4, %v82_v19, %v552_v21  ;;  %4580 = vmatpush1.bf16.msra.mxu1 %v4579_v14 }
  0xe5   :  { %v159_v41 = vrot.slane %v156_v20, 1  ;;  %92 = vst [vmem:[#allocation2 + $0x41] ss:$8 sm:$0xf] %v83_v50  ;;  %v609_v49 = vrot.slane %v156_v20, 2  ;;  %v132_v51 = vrot.slane %v129_v30, 1  ;;  %v210_v7 = vpop.permute.xlu1 %209  ;;  %v183_v23 = vpop.permute.xlu0 %182 }
  0xe6   :  { %93 = vst [vmem:[#allocation2 + $0x41] ss:$8 sm:$0xf0] %v83_v50  ;;  %565 = vst.msk [vmem:[#allocation2 + $0x1a3] ss:$8 sm:$0x3] %vm4973_vm1, %v554_v40 }
  0xe7   :  { %v589_v53 = vrot.slane %v129_v30, 2  ;;  %v5211_v58 = vld [vmem:[#allocation2 + $0x28] sm:$0xff]  ;;  %v5213_v18 = vld [vmem:[#allocation2 + $0x38] sm:$0xff]  ;;  %562 = vst [vmem:[#allocation2 + $0x163] ss:$8 sm:$0xf] %v553_v62  ;;  %v163_v2 = vsel %vm78_vm0, %v158_v46, %v159_v41  ;;  %v165_v22 = vsel %vm7789_vm6, %v156_v20, %v159_v41  ;;  %v612_v1 = vsel %vm549_vm3, %v608_v47, %v609_v49 }
  0xe8   :  { %563 = vst [vmem:[#allocation2 + $0x163] ss:$8 sm:$0xf0] %v553_v62  ;;  %v4587_v44 = vpack.c.bf16 %v5196_v39, %v5211_v58  ;;  %v4597_v60 = vpack.c.bf16 %v5198_v17, %v5213_v18  ;;  %v164_v14 = vsel %vm7789_vm6, %v5049_v42, %v163_v2  ;;  %176 = vst.msk [vmem:[#allocation2 + $0x84] ss:$8 sm:$0x3] %vm4973_vm1, %v165_v22 }
  0xe9   :  { %v614_v46 = vsel %vm7789_vm6, %v159_v41, %v609_v49  ;;  %v136_v5 = vsel %vm78_vm0, %v131_v33, %v132_v51  ;;  %v746_v12 = vld [vmem:[#allocation2 + $0x128] sm:$0xff]  ;;  %v748_v25 = vld [vmem:[#allocation2 + $0x138] sm:$0xff]  ;;  %173 = vst [vmem:[#allocation2 + $0x44] ss:$8 sm:$0xf] %v164_v14  ;;  %v613_v37 = vsel %vm7789_vm6, %v163_v2, %v612_v1  ;;  %v138_v47 = vsel %vm134_vm5, %v129_v30, %v132_v51  ;;  %v264_v2 = vpop.permute.xlu1 %263  ;;  %v5262_v22 = vpop.permute.xlu0 %236  ;;  %v749_v58 = vld [vmem:[#allocation2 + $0x140] sm:$0xff] }
  0xea   :  { %174 = vst [vmem:[#allocation2 + $0x44] ss:$8 sm:$0xf0] %v164_v14  ;;  %625 = vst.msk [vmem:[#allocation2 + $0x1a6] ss:$8 sm:$0x3] %vm4973_vm1, %v614_v46  ;;  %v137_v42 = vsel %vm134_vm5, %v5034_v31, %v136_v5  ;;  %v592_v33 = vsel %vm549_vm3, %v588_v34, %v589_v53  ;;  %v594_v19 = vsel %vm134_vm5, %v132_v51, %v589_v53 }
  0xeb   :  { %622 = vst [vmem:[#allocation2 + $0x166] ss:$8 sm:$0xf] %v613_v37  ;;  %623 = vst [vmem:[#allocation2 + $0x166] ss:$8 sm:$0xf0] %v613_v37  ;;  %v593_v27 = vsel %vm134_vm5, %v136_v5, %v592_v33 }
  0xec   :  { %146 = vst [vmem:[#allocation2 + $0x43] ss:$8 sm:$0xf] %v137_v42  ;;  %147 = vst [vmem:[#allocation2 + $0x43] ss:$8 sm:$0xf0] %v137_v42 }
  0xed   :  { %149 = vst.msk [vmem:[#allocation2 + $0x83] ss:$8 sm:$0x3] %vm4973_vm1, %v138_v47  ;;  %v213_v28 = vrot.slane %v210_v7, 1  ;;  %v649_v20 = vrot.slane %v210_v7, 2  ;;  %vm4831_vm6 = vmmov 1  }
  0xee   :  { %v764_v50 = vld [vmem:[#allocation2 + $0x1b8] sm:$0x7]  ;;  %vm5248_vm2 = vmpackc.low %vm800_vm13, %vm4831_vm6  ;;  %v766_v34 = vld [vmem:[#allocation2 + $0x1c8] sm:$0x7]  ;;  %vm793_vm4 = vcmask 220160   ;;  %v186_v30 = vrot.slane %v183_v23, 1 }
  0xef   :  { %602 = vst [vmem:[#allocation2 + $0x165] ss:$8 sm:$0xf] %v593_v27  ;;  %603 = vst [vmem:[#allocation2 + $0x165] ss:$8 sm:$0xf0] %v593_v27  ;;  %v4571_v40 = vpack.c.bf16 %v764_v50, %v746_v12  ;;  %v4581_v41 = vpack.c.bf16 %v766_v34, %v748_v25  ;;  %v217_v62 = vsel %vm78_vm0, %v212_v3, %v213_v28 }
  0xf0   :  { %605 = vst.msk [vmem:[#allocation2 + $0x1a5] ss:$8 sm:$0x3] %vm4973_vm1, %v594_v19  ;;  %v629_v21 = vrot.slane %v183_v23, 2  ;;  %v219_v49 = vsel %vm215_vm8, %v210_v7, %v213_v28  ;;  %v652_v51 = vsel %vm549_vm3, %v648_v4, %v649_v20  ;;  %v654_v53 = vsel %vm215_vm8, %v213_v28, %v649_v20  ;;  %v745_v46 = vld [vmem:[#allocation2 + $0x120] sm:$0xff]  ;;  %v747_v5 = vld [vmem:[#allocation2 + $0x130] sm:$0xff]  ;;  %v318_v28 = vpop.permute.xlu1 %317  ;;  %v291_v20 = vpop.permute.xlu0 %290 }
  0xf1   :  { %v218_v14 = vsel %vm215_vm8, %v5078_v0, %v217_v62  ;;  %230 = vst.msk [vmem:[#allocation2 + $0x86] ss:$8 sm:$0x3] %vm4973_vm1, %v219_v49  ;;  %v653_v1 = vsel %vm215_vm8, %v217_v62, %v652_v51  ;;  %665 = vst.msk [vmem:[#allocation2 + $0x230] ss:$8 sm:$0x3] %vm4973_vm1, %v654_v53  ;;  %v190_v3 = vsel %vm78_vm0, %v185_v56, %v186_v30  ;;  %4573 = vmatprep.subr.msk.bf16.mxu0 %vm5248_vm2, %v4571_v40 }
  0xf2   :  { %v192_v4 = vsel %vm188_vm7, %v183_v23, %v186_v30  ;;  %227 = vst [vmem:[#allocation2 + $0x46] ss:$8 sm:$0xf] %v218_v14  ;;  %228 = vst [vmem:[#allocation2 + $0x46] ss:$8 sm:$0xf0] %v218_v14  ;;  %v191_v0 = vsel %vm188_vm7, %v5066_v54, %v190_v3  ;;  %v632_v56 = vsel %vm549_vm3, %v628_v57, %v629_v21  ;;  %4583 = vmatprep.subr.msk.bf16.mxu1 %vm5248_vm2, %v4581_v41 }
  0xf3   :  { %662 = vst [vmem:[#allocation2 + $0x1f0] ss:$8 sm:$0xf] %v653_v1  ;;  %663 = vst [vmem:[#allocation2 + $0x1f0] ss:$8 sm:$0xf0] %v653_v1  ;;  %v634_v7 = vsel %vm188_vm7, %v186_v30, %v629_v21  ;;  %v633_v25 = vsel %vm188_vm7, %v190_v3, %v632_v56 }
  0xf4   :  { %203 = vst.msk [vmem:[#allocation2 + $0x85] ss:$8 sm:$0x3] %vm4973_vm1, %v192_v4  ;;  %v267_v23 = vrot.slane %v264_v2, 1  ;;  %v763_v12 = vld [vmem:[#allocation2 + $0x1b0] sm:$0x7]  ;;  %v372_v56 = vpop.permute.xlu1 %371  ;;  %v345_v39 = vpop.permute.xlu0 %344 }
  0xf5   :  { %200 = vst [vmem:[#allocation2 + $0x45] ss:$8 sm:$0xf] %v191_v0  ;;  %201 = vst [vmem:[#allocation2 + $0x45] ss:$8 sm:$0xf0] %v191_v0  ;;  %v4574_v27 = vpack.c.bf16 %v763_v12, %v745_v46 }
  0xf6   :  { %645 = vst.msk [vmem:[#allocation2 + $0x1a7] ss:$8 sm:$0x3] %vm4973_vm1, %v634_v7  ;;  %v689_v37 = vrot.slane %v264_v2, 2  ;;  %v240_v42 = vrot.slane %v5262_v22, 1  ;;  %v669_v54 = vrot.slane %v5262_v22, 2  ;;  %v271_v47 = vsel %vm78_vm0, %v266_v32, %v267_v23 }
  0xf7   :  { %v765_v57 = vld [vmem:[#allocation2 + $0x1c0] sm:$0x7]  ;;  %642 = vst [vmem:[#allocation2 + $0x167] ss:$8 sm:$0xf] %v633_v25  ;;  %v273_v33 = vsel %vm269_vm10, %v264_v2, %v267_v23  ;;  %v731_v50 = vld [vmem:[#allocation2 + $0xb0] sm:$0xff]  ;;  %v272_v34 = vsel %vm269_vm10, %v5102_v29, %v271_v47  ;;  %4576 = vmatpush1.bf16.msk.msra.mxu0 %vm5248_vm2, %v4574_v27 }
  0xf8   :  { %643 = vst [vmem:[#allocation2 + $0x167] ss:$8 sm:$0xf0] %v633_v25  ;;  %v4584_v19 = vpack.c.bf16 %v765_v57, %v747_v5  ;;  %284 = vst.msk [vmem:[#allocation2 + $0x110] ss:$8 sm:$0x3] %vm4973_vm1, %v273_v33  ;;  %v692_v30 = vsel %vm549_vm3, %v688_v35, %v689_v37  ;;  %v694_v21 = vsel %vm269_vm10, %v267_v23, %v689_v37  ;;  %4588 = vmatprep.subr.bf16.mxu0 %v4587_v44  ;;  %v426_v33 = vpop.permute.xlu1 %425  ;;  %v399_v27 = vpop.permute.xlu0 %398 }
  0xf9   :  { %v244_v32 = vsel %vm78_vm0, %v239_v15, %v240_v42  ;;  %v733_v40 = vld [vmem:[#allocation2 + $0xc0] sm:$0xff]  ;;  %v750_v41 = vld [vmem:[#allocation2 + $0x148] sm:$0xff]  ;;  %v752_v62 = vld [vmem:[#allocation2 + $0x158] sm:$0xff]  ;;  %281 = vst [vmem:[#allocation2 + $0xd0] ss:$8 sm:$0xf] %v272_v34  ;;  %v693_v49 = vsel %vm269_vm10, %v271_v47, %v692_v30  ;;  %v246_v35 = vsel %vm242_vm9, %v5262_v22, %v240_v42  ;;  %v672_v15 = vsel %vm549_vm3, %v668_v16, %v669_v54 }
  0xfa   :  { %282 = vst [vmem:[#allocation2 + $0xd0] ss:$8 sm:$0xf0] %v272_v34  ;;  %705 = vst.msk [vmem:[#allocation2 + $0x232] ss:$8 sm:$0x3] %vm4973_vm1, %v694_v21  ;;  %v245_v29 = vsel %vm242_vm9, %v5090_v13, %v244_v32  ;;  %v673_v22 = vsel %vm242_vm9, %v244_v32, %v672_v15  ;;  %v674_v13 = vsel %vm242_vm9, %v240_v42, %v669_v54  ;;  %4586 = vmatpush1.bf16.msk.msra.mxu1 %vm5248_vm2, %v4584_v19 }
  0xfb   :  { %v5319_v51 = vld [vmem:[#allocation4] sm:$0xff]  ;;  %v715_v2 = vld [vmem:[#allocation2 + $0x30] sm:$0xff]  ;;  %702 = vst [vmem:[#allocation2 + $0x1f2] ss:$8 sm:$0xf] %v693_v49  ;;  %v321_v16 = vrot.slane %v318_v28, 1  ;;  %4598 = vmatprep.subr.bf16.mxu1 %v4597_v60 }
  0xfc   :  { %v713_v53 = vld [vmem:[#allocation2 + $0x20] sm:$0xff]  ;;  %703 = vst [vmem:[#allocation2 + $0x1f2] ss:$8 sm:$0xf0] %v693_v49  ;;  %v294_v14 = vrot.slane %v291_v20, 1  ;;  %v4599_v46 = vpack.c.bf16 %v733_v40, %v715_v2  ;;  %v751_v44 = vld [vmem:[#allocation2 + $0x150] sm:$0xff]  ;;  %4525 = vmatmul.mubr.msk.f32.vlgmr.msra.gmra.mrb[0].mxu0 %vm793_vm4, %v5319_v51  ;;  %v480_v21 = vpop.permute.xlu1 %479  ;;  %v453_v32 = vpop.permute.xlu0 %452 }
  0xfd   :  { %254 = vst [vmem:[#allocation2 + $0x47] ss:$8 sm:$0xf] %v245_v29  ;;  %255 = vst [vmem:[#allocation2 + $0x47] ss:$8 sm:$0xf0] %v245_v29  ;;  %v4589_v4 = vpack.c.bf16 %v731_v50, %v713_v53  ;;  %v325_v7 = vsel %vm78_vm0, %v320_v55, %v321_v16  ;;  %v327_v23 = vsel %vm323_vm12, %v318_v28, %v321_v16  ;;  %4529 = vmatmul.mubr.msk.f32.vlgmr.msra.gmra.mrb[0].mxu1 %vm793_vm4, %v5319_v51 }
  0xfe   :  { %257 = vst.msk [vmem:[#allocation2 + $0x87] ss:$8 sm:$0x3] %vm4973_vm1, %v246_v35  ;;  %v768_v1 = vld [vmem:[#allocation2 + $0x1d8] sm:$0x7]  ;;  %v298_v17 = vsel %vm78_vm0, %v293_v48, %v294_v14  ;;  %v300_v18 = vsel %vm296_vm11, %v291_v20, %v294_v14  ;;  %v5345_v60 = vld [vmem:[#allocation4 + $0x8] sm:$0xff]  ;;  %v326_v12 = vsel %vm323_vm12, %v5121_v52, %v325_v7  ;;  %4600 = vmatpush1.bf16.msra.mxu1 %v4599_v46 }
  0xff   :  { %v770_v3 = vld [vmem:[#allocation2 + $0x1e8] sm:$0x7]  ;;  %682 = vst [vmem:[#allocation2 + $0x1f1] ss:$8 sm:$0xf] %v673_v22  ;;  %v4591_v5 = vpack.c.bf16 %v768_v1, %v750_v41  ;;  %v299_v55 = vsel %vm296_vm11, %v5114_v43, %v298_v17  ;;  %4590 = vmatpush1.bf16.msra.mxu0 %v4589_v4  ;;  %v375_v48 = vrot.slane %v372_v56, 1  ;;  %925 = vmatprep.mubr.f32.mxu0 %v4829_v8 }
 0x100   :  { %683 = vst [vmem:[#allocation2 + $0x1f1] ss:$8 sm:$0xf0] %v673_v22  ;;  %685 = vst.msk [vmem:[#allocation2 + $0x231] ss:$8 sm:$0x3] %vm4973_vm1, %v674_v13  ;;  %v4601_v0 = vpack.c.bf16 %v770_v3, %v752_v62  ;;  %1002 = vmatprep.mubr.f32.mxu1 %v4829_v8  ;;  %4526 = vmatmul.mubr.msk.f32.gmra.mrb[2].mxu0 %vm793_vm4, %v5345_v60  ;;  %v507_v53 = vpop.permute.xlu0 %506 }
 0x101   :  { %338 = vst.msk [vmem:[#allocation2 + $0x112] ss:$8 sm:$0x3] %vm4973_vm1, %v327_v23  ;;  %311 = vst.msk [vmem:[#allocation2 + $0x111] ss:$8 sm:$0x3] %vm4973_vm1, %v300_v18  ;;  %4593 = vmatprep.subr.msk.bf16.mxu0 %vm5248_vm2, %v4591_v5  ;;  %v379_v43 = vsel %vm78_vm0, %v374_v11, %v375_v48  ;;  %v381_v57 = vsel %vm7792_vm14, %v372_v56, %v375_v48  ;;  %4530 = vmatmul.mubr.msk.f32.gmra.mrb[2].mxu1 %vm793_vm4, %v5345_v60 }
 0x102   :  { %v348_v25 = vrot.slane %v345_v39, 1  ;;  %v767_v37 = vld [vmem:[#allocation2 + $0x1d0] sm:$0x7]  ;;  %v769_v42 = vld [vmem:[#allocation2 + $0x1e0] sm:$0x7]  ;;  %4603 = vmatprep.subr.msk.bf16.mxu1 %vm5248_vm2, %v4601_v0  ;;  %v380_v19 = vsel %vm7792_vm14, %v5135_v9, %v379_v43  ;;  %vm7826_vm3 = vcmask 506880   ;;  %1073 = vmatprep.mubr.f32.mxu0 %v4829_v8 }
 0x103   :  { %335 = vst [vmem:[#allocation2 + $0xd2] ss:$8 sm:$0xf] %v326_v12  ;;  %336 = vst [vmem:[#allocation2 + $0xd2] ss:$8 sm:$0xf0] %v326_v12  ;;  %v4594_v52 = vpack.c.bf16 %v767_v37, %v749_v58  ;;  %v4604_v54 = vpack.c.bf16 %v769_v42, %v751_v44  ;;  %1150 = vmatprep.mubr.f32.mxu1 %v4829_v8 }
 0x104   :  { %308 = vst [vmem:[#allocation2 + $0xd1] ss:$8 sm:$0xf] %v299_v55  ;;  %309 = vst [vmem:[#allocation2 + $0xd1] ss:$8 sm:$0xf0] %v299_v55  ;;  %v352_v47 = vsel %vm78_vm0, %v347_v63, %v348_v25 }
 0x105   :  { %392 = vst.msk [vmem:[#allocation2 + $0x114] ss:$8 sm:$0x3] %vm4973_vm1, %v381_v57  ;;  %v353_v11 = vsel %vm7826_vm3, %v5128_v61, %v352_v47  ;;  %vm7827_vm6 = vmmov %vm7826_vm3  ;;  %v429_v20 = vrot.slane %v426_v33, 1  ;;  %4596 = vmatpush1.bf16.msk.msra.mxu0 %vm5248_vm2, %v4594_v52  ;;  %v402_v63 = vrot.slane %v399_v27, 1  ;;  %4606 = vmatpush1.bf16.msk.msra.mxu1 %vm5248_vm2, %v4604_v54  ;;  %vm7828_vm13 = vcmask 441344  }
 0x106   :  { %v354_v28 = vsel %vm7827_vm6, %v345_v39, %v348_v25  ;;  %389 = vst [vmem:[#allocation2 + $0xd4] ss:$8 sm:$0xf] %v380_v19  ;;  %390 = vst [vmem:[#allocation2 + $0xd4] ss:$8 sm:$0xf0] %v380_v19 }
 0x107   :  { %362 = vst [vmem:[#allocation2 + $0xd3] ss:$8 sm:$0xf] %v353_v11  ;;  %363 = vst [vmem:[#allocation2 + $0xd3] ss:$8 sm:$0xf0] %v353_v11  ;;  %v433_v61 = vsel %vm78_vm0, %v428_v38, %v429_v20  ;;  %v435_v9 = vsel %vm7828_vm13, %v426_v33, %v429_v20  ;;  %v406_v34 = vsel %vm78_vm0, %v401_v26, %v402_v63 }
 0x108   :  { %365 = vst.msk [vmem:[#allocation2 + $0x113] ss:$8 sm:$0x3] %vm4973_vm1, %v354_v28  ;;  %vm7829_vm3 = vmmov %vm7828_vm13  ;;  %vm7830_vm6 = vcmask 449536   ;;  %4533 = vmatmul.mubr.msk.f32.vlgmr.msra.gmra.mrb[4].mxu0 %vm793_vm4, %v5319_v51  ;;  %v456_v40 = vrot.slane %v453_v32, 1  ;;  %4537 = vmatmul.mubr.msk.f32.vlgmr.msra.gmra.mrb[4].mxu1 %vm793_vm4, %v5319_v51  ;;  %v7832_v26 = vrot.slane %v5163_v59, 1 }
 0x109   :  { %v434_v50 = vsel %vm7829_vm3, %v5149_v36, %v433_v61  ;;  %446 = vst.msk [vmem:[#allocation2 + $0x116] ss:$8 sm:$0x3] %vm4973_vm1, %v435_v9  ;;  %v408_v30 = vsel %vm7830_vm6, %v399_v27, %v402_v63  ;;  %vm7831_vm13 = vmmov %vm7830_vm6  ;;  %v483_v36 = vrot.slane %v480_v21, 1  ;;  %1079 = vmatprep.mubr.f32.mxu0 %v4829_v8  ;;  %1156 = vmatprep.mubr.f32.mxu1 %v4829_v8  ;;  %vm7833_vm3 = vcmask 384000   ;;  %v718_v16 = vld [vmem:[#allocation2 + $0x48] sm:$0xff] }
 0x10a   :  { %443 = vst [vmem:[#allocation2 + $0xd6] ss:$8 sm:$0xf] %v434_v50  ;;  %444 = vst [vmem:[#allocation2 + $0xd6] ss:$8 sm:$0xf0] %v434_v50  ;;  %v407_v38 = vsel %vm7831_vm13, %v5142_v24, %v406_v34 }
 0x10b   :  { %419 = vst.msk [vmem:[#allocation2 + $0x115] ss:$8 sm:$0x3] %vm4973_vm1, %v408_v30  ;;  %416 = vst [vmem:[#allocation2 + $0xd5] ss:$8 sm:$0xf] %v407_v38  ;;  %v487_v41 = vsel %vm78_vm0, %v7832_v26, %v483_v36  ;;  %v489_v24 = vsel %vm7833_vm3, %v480_v21, %v483_v36 }
 0x10c   :  { %417 = vst [vmem:[#allocation2 + $0xd5] ss:$8 sm:$0xf0] %v407_v38  ;;  %v7834_v62 = vrot.slane %v5156_v45, 1  ;;  %vm7835_vm6 = vcmask 392192   ;;  %vm7836_vm13 = vmmov %vm7833_vm3  ;;  %4534 = vmatmul.mubr.msk.f32.gmra.mrb[6].mxu0 %vm793_vm4, %v5345_v60  ;;  %v510_v2 = vrot.slane %v507_v53, 1  ;;  %4538 = vmatmul.mubr.msk.f32.gmra.mrb[6].mxu1 %vm793_vm4, %v5345_v60 }
 0x10d   :  { %v462_v29 = vsel %vm7835_vm6, %v453_v32, %v456_v40  ;;  %v488_v35 = vsel %vm7836_vm13, %v5163_v59, %v487_v41  ;;  %500 = vst.msk [vmem:[#allocation2 + $0x1a0] ss:$8 sm:$0x3] %vm4973_vm1, %v489_v24  ;;  %vm7837_vm14 = vmmov %vm7835_vm6  ;;  %1227 = vmatprep.mubr.f32.mxu0 %v4829_v8  ;;  %v7838_v59 = vrot.slane %v5170_v10, 1  ;;  %1304 = vmatprep.mubr.f32.mxu1 %v4829_v8  ;;  %v720_v14 = vld [vmem:[#allocation2 + $0x58] sm:$0xff]  ;;  %v717_v1 = vld [vmem:[#allocation2 + $0x40] sm:$0xff] }
 0x10e   :  { %v460_v49 = vsel %vm78_vm0, %v7834_v62, %v456_v40  ;;  %473 = vst.msk [vmem:[#allocation2 + $0x117] ss:$8 sm:$0x3] %vm4973_vm1, %v462_v29  ;;  %497 = vst [vmem:[#allocation2 + $0x160] ss:$8 sm:$0xf] %v488_v35  ;;  %v516_v22 = vsel %vm512_vm15, %v507_v53, %v510_v2 }
 0x10f   :  { %v461_v15 = vsel %vm7837_vm14, %v5156_v45, %v460_v49  ;;  %498 = vst [vmem:[#allocation2 + $0x160] ss:$8 sm:$0xf0] %v488_v35  ;;  %v514_v45 = vsel %vm78_vm0, %v7838_v59, %v510_v2  ;;  %527 = vst.msk [vmem:[#allocation2 + $0x1a1] ss:$8 sm:$0x3] %vm4973_vm1, %v516_v22 }
 0x110   :  { %470 = vst [vmem:[#allocation2 + $0xd7] ss:$8 sm:$0xf] %v461_v15  ;;  %471 = vst [vmem:[#allocation2 + $0xd7] ss:$8 sm:$0xf0] %v461_v15  ;;  %v515_v13 = vsel %vm512_vm15, %v5170_v10, %v514_v45 }
 0x111   :  { %524 = vst [vmem:[#allocation2 + $0x161] ss:$8 sm:$0xf] %v515_v13  ;;  %525 = vst [vmem:[#allocation2 + $0x161] ss:$8 sm:$0xf0] %v515_v13 }
 0x112   :  { %v719_v39 = vld [vmem:[#allocation2 + $0x50] sm:$0xff]  ;;  %v772_v7 = vld [vmem:[#allocation2 + $0x1f8] sm:$0x7]  ;;  %v774_v23 = vld [vmem:[#allocation2 + $0x208] sm:$0x7]  ;;  %vm7849_vm0 = vcmask 1039360  }
 0x113   :  { %v771_v6 = vld [vmem:[#allocation2 + $0x1f0] sm:$0x7]  ;;  %v773_v52 = vld [vmem:[#allocation2 + $0x200] sm:$0x7]  ;;  %v722_v43 = vld [vmem:[#allocation2 + $0x68] sm:$0xff]  ;;  %vm7853_vm14 = vcmask 973824  }
 0x114   :  { %v724_v57 = vld [vmem:[#allocation2 + $0x78] sm:$0xff]  ;;  %v721_v20 = vld [vmem:[#allocation2 + $0x60] sm:$0xff]  ;;  %v723_v63 = vld [vmem:[#allocation2 + $0x70] sm:$0xff]  ;;  %vm7855_vm6 = vcmask 506880  }
 0x115   :  { %v776_v50 = vld [vmem:[#allocation2 + $0x218] sm:$0x7]  ;;  %v778_v34 = vld [vmem:[#allocation2 + $0x228] sm:$0x7]  ;;  %v775_v26 = vld [vmem:[#allocation2 + $0x210] sm:$0x7] }
 0x116   :  { %v726_v30 = vld [vmem:[#allocation2 + $0x88] sm:$0xff]  ;;  %v744_v40 = vld [vmem:[#allocation2 + $0x118] sm:$0xff]  ;;  %v777_v41 = vld [vmem:[#allocation2 + $0x220] sm:$0x7] }
 0x117   :  { %v736_v3 = vld [vmem:[#allocation2 + $0xd8] sm:$0xff]  ;;  %v738_v4 = vld [vmem:[#allocation2 + $0xe8] sm:$0xff]  ;;  %v735_v46 = vld [vmem:[#allocation2 + $0xd0] sm:$0xff]  ;;  %v4647_v35 = vpack.c.bf16 %v744_v40, %v726_v30 }
 0x118   :  { %v4607_v5 = vpack.c.bf16 %v736_v3, %v718_v16  ;;  %v4617_v0 = vpack.c.bf16 %v738_v4, %v720_v14  ;;  %v4609_v56 = vpack.c.bf16 %v735_v46, %v717_v1  ;;  %v737_v58 = vld [vmem:[#allocation2 + $0xe0] sm:$0xff]  ;;  %v740_v10 = vld [vmem:[#allocation2 + $0xf8] sm:$0xff]  ;;  %v742_v17 = vld [vmem:[#allocation2 + $0x108] sm:$0xff]  ;;  %v5489_v16 = vpop.permute.xlu1 %785 }
 0x119   :  { %v4619_v44 = vpack.c.bf16 %v737_v58, %v719_v39  ;;  %v754_v18 = vld [vmem:[#allocation2 + $0x168] sm:$0xff]  ;;  %v756_v12 = vld [vmem:[#allocation2 + $0x178] sm:$0xff]  ;;  %v753_v55 = vld [vmem:[#allocation2 + $0x160] sm:$0xff]  ;;  %v4627_v47 = vpack.c.bf16 %v740_v10, %v722_v43  ;;  %v4637_v33 = vpack.c.bf16 %v742_v17, %v724_v57 }
 0x11a   :  { %4608 = vmatprep.subr.bf16.mxu0 %v4607_v5  ;;  %4618 = vmatprep.subr.bf16.mxu1 %v4617_v0  ;;  %v4611_v48 = vpack.c.bf16 %v772_v7, %v754_v18  ;;  %v4621_v25 = vpack.c.bf16 %v774_v23, %v756_v12  ;;  %v4614_v37 = vpack.c.bf16 %v771_v6, %v753_v55  ;;  %v755_v42 = vld [vmem:[#allocation2 + $0x170] sm:$0xff]  ;;  %v741_v19 = vld [vmem:[#allocation2 + $0x100] sm:$0xff]  ;;  %v758_v11 = vld [vmem:[#allocation2 + $0x188] sm:$0xff]  ;;  %v5493_v5 = vpop.permute.xlu0 %790 }
 0x11b   :  { %4610 = vmatpush1.bf16.msra.mxu0 %v4609_v56  ;;  %4620 = vmatpush1.bf16.msra.mxu1 %v4619_v44  ;;  %v4624_v54 = vpack.c.bf16 %v773_v52, %v755_v42  ;;  %v739_v27 = vld [vmem:[#allocation2 + $0xf0] sm:$0xff]  ;;  %v760_v28 = vld [vmem:[#allocation2 + $0x198] sm:$0xff]  ;;  %v4639_v9 = vpack.c.bf16 %v741_v19, %v723_v63  ;;  %v4631_v21 = vpack.c.bf16 %v776_v50, %v758_v11  ;;  %v757_v38 = vld [vmem:[#allocation2 + $0x180] sm:$0xff] }
 0x11c   :  { %4613 = vmatprep.subr.msk.bf16.mxu0 %vm5248_vm2, %v4611_v48  ;;  %4623 = vmatprep.subr.msk.bf16.mxu1 %vm5248_vm2, %v4621_v25  ;;  %v4629_v61 = vpack.c.bf16 %v739_v27, %v721_v20  ;;  %v4641_v32 = vpack.c.bf16 %v778_v34, %v760_v28  ;;  %v759_v36 = vld [vmem:[#allocation2 + $0x190] sm:$0xff]  ;;  %v725_v24 = vld [vmem:[#allocation2 + $0x80] sm:$0xff]  ;;  %v4634_v49 = vpack.c.bf16 %v775_v26, %v757_v38  ;;  %v762_v15 = vld [vmem:[#allocation2 + $0x1a8] sm:$0xff] }
 0x11d   :  { %v743_v62 = vld [vmem:[#allocation2 + $0x110] sm:$0xff]  ;;  %v4644_v29 = vpack.c.bf16 %v777_v41, %v759_v36  ;;  %v780_v53 = vld [vmem:[#allocation2 + $0x238] sm:$0x7]  ;;  %v761_v45 = vld [vmem:[#allocation2 + $0x1a0] sm:$0xff] }
 0x11e   :  { %v4649_v2 = vpack.c.bf16 %v743_v62, %v725_v24  ;;  %v4651_v59 = vpack.c.bf16 %v780_v53, %v762_v15  ;;  %v779_v22 = vld [vmem:[#allocation2 + $0x230] sm:$0x7]  ;;  %vm7850_vm1 = vmmov %vm7849_vm0 }
 0x11f   :  { %4616 = vmatpush1.bf16.msk.msra.mxu0 %vm5248_vm2, %v4614_v37  ;;  %4626 = vmatpush1.bf16.msk.msra.mxu1 %vm5248_vm2, %v4624_v54  ;;  %v4654_v13 = vpack.c.bf16 %v779_v22, %v761_v45  ;;  %vm7854_vm3 = vmmov %vm7853_vm14 }
 0x120   :  { %4628 = vmatprep.subr.bf16.mxu0 %v4627_v47  ;;  %4638 = vmatprep.subr.bf16.mxu1 %v4637_v33  ;;  %vm7856_vm13 = vmmov %vm7855_vm6 }
 0x122   :  { %4541 = vmatmul.mubr.msk.f32.vlgmr.msra.gmra.mrb[8].mxu0 %vm793_vm4, %v5319_v51  ;;  %4545 = vmatmul.mubr.msk.f32.vlgmr.msra.gmra.mrb[8].mxu1 %vm793_vm4, %v5319_v51 }
 0x123   :  { %4630 = vmatpush1.bf16.msra.mxu0 %v4629_v61  ;;  %4640 = vmatpush1.bf16.msra.mxu1 %v4639_v9 }
 0x124   :  { %4633 = vmatprep.subr.msk.bf16.mxu0 %vm5248_vm2, %v4631_v21  ;;  %4643 = vmatprep.subr.msk.bf16.mxu1 %vm5248_vm2, %v4641_v32 }
 0x125   :  { %1233 = vmatprep.mubr.f32.mxu0 %v4829_v8  ;;  %1310 = vmatprep.mubr.f32.mxu1 %v4829_v8 }
 0x126   :  { %4542 = vmatmul.mubr.msk.f32.gmra.mrb[10].mxu0 %vm793_vm4, %v5345_v60  ;;  %4546 = vmatmul.mubr.msk.f32.gmra.mrb[10].mxu1 %vm793_vm4, %v5345_v60 }
 0x127   :  { %4636 = vmatpush1.bf16.msk.msra.mxu0 %vm5248_vm2, %v4634_v49  ;;  %4646 = vmatpush1.bf16.msk.msra.mxu1 %vm5248_vm2, %v4644_v29 }
 0x128   :  { %1381 = vmatprep.mubr.f32.mxu0 %v4829_v8  ;;  %1458 = vmatprep.mubr.f32.mxu1 %v4829_v8 }
 0x129   :  { %4648 = vmatprep.subr.bf16.mxu0 %v4647_v35 }
 0x12a   :  { %4549 = vmatmul.mubr.msk.f32.vlgmr.msra.gmra.mrb[12].mxu0 %vm793_vm4, %v5319_v51  ;;  %4553 = vmatmul.mubr.msk.f32.vlgmr.msra.gmra.mrb[12].mxu1 %vm793_vm4, %v5319_v51 }
 0x12b   :  { %4650 = vmatpush1.bf16.msra.mxu0 %v4649_v2  ;;  %1387 = vmatprep.mubr.f32.mxu0 %v4829_v8 }
 0x12c   :  { %1464 = vmatprep.mubr.f32.mxu1 %v4829_v8  ;;  %4653 = vmatprep.subr.msk.bf16.mxu0 %vm5248_vm2, %v4651_v59 }
 0x12e   :  { %4550 = vmatmul.mubr.msk.f32.gmra.mrb[14].mxu0 %vm793_vm4, %v5345_v60  ;;  %4554 = vmatmul.mubr.msk.f32.gmra.mrb[14].mxu1 %vm793_vm4, %v5345_v60 }
 0x12f   :  { %4656 = vmatpush1.bf16.msk.msra.mxu0 %vm5248_vm2, %v4654_v13  ;;  %1535 = vmatprep.mubr.f32.mxu0 %v4829_v8  ;;  %vm7851_vm2 = vcmask 1031168  }
 0x132   :  { %4557 = vmatmul.mubr.msk.f32.vlgmr.msra.gmra.mrb[16].mxu0 %vm793_vm4, %v5319_v51 }
 0x133   :  { %1541 = vmatprep.mubr.f32.mxu0 %v4829_v8 }
 0x136   :  { %4558 = vmatmul.mubr.msk.f32.gmra.mrb[18].mxu0 %vm793_vm4, %v5345_v60  ;;  %vm7852_vm4 = vmmov %vm7851_vm2 }
 0x1cf   :  { %v921_v14 = vpop.f32.mrb[0].mxu0 }
 0x1d0   :  { %v998_v1 = vpop.f32.mrb[0].mxu1  ;;  %v922_v3 = vadd.f32 %v921_v14, %v5489_v16  ;;  %v923_v4 = vpop.f32.mrb[1].mxu0 }
 0x1d1   :  { %v1000_v46 = vpop.f32.mrb[1].mxu1  ;;  %v924_v31 = vadd.f32 %v923_v4, %v5489_v16  ;;  %v999_v0 = vadd.f32 %v998_v1, %v5489_v16 }
 0x1d2   :  { %v1001_v8 = vadd.f32 %v1000_v46, %v5489_v16  ;;  %v1548_v56 = vmax.f32 %v922_v3, 0.0 }
 0x1d3   :  { %v927_v51 = vpop.f32.mrb[2].mxu0  ;;  %v1549_v44 = vmax.f32 %v924_v31, 0.0  ;;  %v1550_v18 = vmax.f32 %v999_v0, 0.0 }
 0x1d4   :  { %v928_v60 = vadd.f32 %v927_v51, %v5493_v5  ;;  %v1004_v39 = vpop.f32.mrb[2].mxu1  ;;  %v929_v58 = vpop.f32.mrb[3].mxu0  ;;  %v1551_v25 = vmax.f32 %v1001_v8, 0.0 }
 0x1d5   :  { %v1005_v7 = vadd.f32 %v1004_v39, %v5493_v5  ;;  %v930_v23 = vadd.f32 %v929_v58, %v5493_v5  ;;  %v1006_v6 = vpop.f32.mrb[3].mxu1 }
 0x1d6   :  { %v1566_v10 = vmax.f32 %v928_v60, 0.0  ;;  %v1007_v17 = vadd.f32 %v1006_v6, %v5493_v5 }
 0x1d7   :  { %v1568_v12 = vmax.f32 %v1005_v7, 0.0  ;;  %v1567_v55 = vmax.f32 %v930_v23, 0.0 }
 0x1d8   :  { %v5501_v37 = vpack.c.bf16 %v1566_v10, %v1548_v56  ;;  %v1569_v42 = vmax.f32 %v1007_v17, 0.0 }
 0x1d9   :  { %v5503_v43 = vpack.c.bf16 %v1568_v12, %v1550_v18  ;;  %v5505_v57 = vpack.c.bf16 %v1567_v55, %v1549_v44 }
 0x1da   :  { %v5507_v33 = vpack.c.bf16 %v1569_v42, %v1551_v25  ;;  %1634 = vrot.lane.b32.xlu0 %v5501_v37, %s4813_s3 }
 0x1db   :  { %v1075_v48 = vpop.f32.mrb[4].mxu0  ;;  %v1152_v52 = vpop.f32.mrb[4].mxu1  ;;  %1638 = vrot.lane.b32.xlu1 %v5503_v43, %s4813_s3  ;;  %3686 = vmatprep.subr.bf16.mxu1 %v5505_v57 }
 0x1dc   :  { %v1077_v54 = vpop.f32.mrb[5].mxu0  ;;  %v1154_v47 = vpop.f32.mrb[5].mxu1  ;;  %v1076_v27 = vadd.f32 %v1075_v48, %v5489_v16  ;;  %v1153_v19 = vadd.f32 %v1152_v52, %v5489_v16  ;;  %3768 = vmatprep.subr.bf16.mxu0 %v5507_v33  ;;  %3687 = vmatpush1.bf16.msra.mxu1 %v5501_v37 }
 0x1dd   :  { %v1078_v11 = vadd.f32 %v1077_v54, %v5489_v16  ;;  %v1155_v20 = vadd.f32 %v1154_v47, %v5489_v16  ;;  %3769 = vmatpush1.bf16.msra.mxu0 %v5503_v43 }
 0x1de   :  { %v1552_v21 = vmax.f32 %v1076_v27, 0.0  ;;  %1721 = vrot.lane.b32.xlu0 %v5503_v43, %s4812_s26  ;;  %v1554_v36 = vmax.f32 %v1153_v19, 0.0 }
 0x1df   :  { %v1081_v28 = vpop.f32.mrb[6].mxu0  ;;  %v1158_v61 = vpop.f32.mrb[6].mxu1  ;;  %v1553_v40 = vmax.f32 %v1078_v11, 0.0  ;;  %1717 = vrot.lane.b32.xlu1 %v5501_v37, %s4812_s26  ;;  %v1555_v24 = vmax.f32 %v1155_v20, 0.0 }
 0x1e0   :  { %v1082_v63 = vadd.f32 %v1081_v28, %v5493_v5  ;;  %v1083_v9 = vpop.f32.mrb[7].mxu0  ;;  %v1159_v50 = vadd.f32 %v1158_v61, %v5493_v5  ;;  %v1160_v30 = vpop.f32.mrb[7].mxu1 }
 0x1e1   :  { %v1084_v34 = vadd.f32 %v1083_v9, %v5493_v5  ;;  %v1161_v38 = vadd.f32 %v1160_v30, %v5493_v5 }
 0x1e2   :  { %v1570_v32 = vmax.f32 %v1082_v63, 0.0  ;;  %v1572_v26 = vmax.f32 %v1159_v50, 0.0  ;;  %1800 = vrot.lane.b32.xlu0 %v5501_v37, %s4814_s27 }
 0x1e3   :  { %v1571_v41 = vmax.f32 %v1084_v34, 0.0  ;;  %v1573_v49 = vmax.f32 %v1161_v38, 0.0  ;;  %1804 = vrot.lane.b32.xlu1 %v5503_v43, %s4814_s27 }
 0x1e4   :  { %v5529_v62 = vpack.c.bf16 %v1570_v32, %v1552_v21  ;;  %v5531_v29 = vpack.c.bf16 %v1572_v26, %v1554_v36 }
 0x1e5   :  { %v5533_v35 = vpack.c.bf16 %v1571_v41, %v1553_v40  ;;  %v5535_v15 = vpack.c.bf16 %v1573_v49, %v1555_v24 }
 0x1e6   :  { %1887 = vrot.lane.b32.xlu0 %v5503_v43, %s4815_s28 }
 0x1e7   :  { %1883 = vrot.lane.b32.xlu1 %v5501_v37, %s4815_s28 }
 0x1ea   :  { %1966 = vrot.lane.b32.xlu0 %v5501_v37, %s4816_s29 }
 0x1eb   :  { %1970 = vrot.lane.b32.xlu1 %v5503_v43, %s4816_s29 }
 0x1ee   :  { %2053 = vrot.lane.b32.xlu0 %v5503_v43, %s4817_s30 }
 0x1ef   :  { %2049 = vrot.lane.b32.xlu1 %v5501_v37, %s4817_s30 }
 0x1f2   :  { %2132 = vrot.lane.b32.xlu0 %v5501_v37, %s4818_s7 }
 0x1f3   :  { %2136 = vrot.lane.b32.xlu1 %v5503_v43, %s4818_s7 }
 0x1f5   :  { %v1229_v53 = vpop.f32.mrb[8].mxu0  ;;  %v1306_v2 = vpop.f32.mrb[8].mxu1 }
 0x1f6   :  { %v1231_v59 = vpop.f32.mrb[9].mxu0  ;;  %v1308_v45 = vpop.f32.mrb[9].mxu1  ;;  %v1230_v22 = vadd.f32 %v1229_v53, %v5489_v16  ;;  %v1307_v13 = vadd.f32 %v1306_v2, %v5489_v16  ;;  %2219 = vrot.lane.b32.xlu0 %v5503_v43, %s4819_s8 }
 0x1f7   :  { %v1232_v14 = vadd.f32 %v1231_v59, %v5489_v16  ;;  %v1309_v1 = vadd.f32 %v1308_v45, %v5489_v16  ;;  %2215 = vrot.lane.b32.xlu1 %v5501_v37, %s4819_s8 }
 0x1f8   :  { %v1556_v60 = vmax.f32 %v1230_v22, 0.0  ;;  %v1558_v39 = vmax.f32 %v1307_v13, 0.0 }
 0x1f9   :  { %v1235_v3 = vpop.f32.mrb[10].mxu0  ;;  %v1312_v4 = vpop.f32.mrb[10].mxu1  ;;  %v1557_v7 = vmax.f32 %v1232_v14, 0.0  ;;  %v1559_v23 = vmax.f32 %v1309_v1, 0.0 }
 0x1fa   :  { %v1236_v46 = vadd.f32 %v1235_v3, %v5493_v5  ;;  %v1313_v31 = vadd.f32 %v1312_v4, %v5493_v5  ;;  %v1237_v0 = vpop.f32.mrb[11].mxu0  ;;  %v1314_v51 = vpop.f32.mrb[11].mxu1  ;;  %2298 = vrot.lane.b32.xlu0 %v5501_v37, %s4820_s9 }
 0x1fb   :  { %v1238_v8 = vadd.f32 %v1237_v0, %v5493_v5  ;;  %v1315_v56 = vadd.f32 %v1314_v51, %v5493_v5  ;;  %2302 = vrot.lane.b32.xlu1 %v5503_v43, %s4820_s9 }
 0x1fc   :  { %v1574_v58 = vmax.f32 %v1236_v46, 0.0  ;;  %v1576_v44 = vmax.f32 %v1313_v31, 0.0 }
 0x1fd   :  { %v1575_v6 = vmax.f32 %v1238_v8, 0.0  ;;  %v1577_v10 = vmax.f32 %v1315_v56, 0.0  ;;  %v1383_v17 = vpop.f32.mrb[12].mxu0  ;;  %v1460_v18 = vpop.f32.mrb[12].mxu1  ;;  %v4832_v56 = vmov 1983009808  }
 0x1fe   :  { %v5567_v12 = vpack.c.bf16 %v1574_v58, %v1556_v60  ;;  %v5569_v55 = vpack.c.bf16 %v1576_v44, %v1558_v39  ;;  %v1385_v48 = vpop.f32.mrb[13].mxu0  ;;  %v1462_v25 = vpop.f32.mrb[13].mxu1  ;;  %v1384_v54 = vadd.f32 %v1383_v17, %v5489_v16  ;;  %v1461_v47 = vadd.f32 %v1460_v18, %v5489_v16  ;;  %2385 = vrot.lane.b32.xlu0 %v5503_v43, %s4821_s10 }
 0x1ff   :  { %v5573_v42 = vpack.c.bf16 %v1575_v6, %v1557_v7  ;;  %v5575_v52 = vpack.c.bf16 %v1577_v10, %v1559_v23  ;;  %v1386_v27 = vadd.f32 %v1385_v48, %v5489_v16  ;;  %v1463_v19 = vadd.f32 %v1462_v25, %v5489_v16  ;;  %2381 = vrot.lane.b32.xlu1 %v5501_v37, %s4821_s10  ;;  %v3223_v6 = vld [vmem:[#allocation7] sm:$0xff] }
 0x200   :  { %v1560_v30 = vmax.f32 %v1384_v54, 0.0  ;;  %v1562_v21 = vmax.f32 %v1461_v47, 0.0  ;;  %v3665_v60 = vunpack.c.l.s4 %v4832_v56  ;;  %v7845_v39 = vlaneseq }
 0x201   :  { %v1389_v11 = vpop.f32.mrb[14].mxu0  ;;  %v1466_v28 = vpop.f32.mrb[14].mxu1  ;;  %v1561_v36 = vmax.f32 %v1386_v27, 0.0  ;;  %v1563_v40 = vmax.f32 %v1463_v19, 0.0 }
 0x202   :  { %v1390_v20 = vadd.f32 %v1389_v11, %v5493_v5  ;;  %v1467_v63 = vadd.f32 %v1466_v28, %v5493_v5  ;;  %v1391_v61 = vpop.f32.mrb[15].mxu0  ;;  %v1468_v9 = vpop.f32.mrb[15].mxu1  ;;  %2464 = vrot.lane.b32.xlu0 %v5501_v37, %s4822_s11  ;;  %v5692_v58 = vshrl.u32 %v7845_v39, 7  ;;  %v3666_v7 = vunpack.c.0.s8 %v3665_v60 }
 0x203   :  { %v1392_v50 = vadd.f32 %v1391_v61, %v5493_v5  ;;  %v1469_v34 = vadd.f32 %v1468_v9, %v5493_v5  ;;  %2468 = vrot.lane.b32.xlu1 %v5503_v43, %s4822_s11 }
 0x204   :  { %v1578_v32 = vmax.f32 %v1390_v20, 0.0  ;;  %v1580_v38 = vmax.f32 %v1467_v63, 0.0  ;;  %7846 = vst [vmem:[#allocation19_spill] sm:$0xff] %v5692_v58  ;;  %v3669_v10 = vsub.s32 %v3666_v7, %v5692_v58 }
 0x205   :  { %v1579_v26 = vmax.f32 %v1392_v50, 0.0  ;;  %v1581_v41 = vmax.f32 %v1469_v34, 0.0  ;;  %v1537_v24 = vpop.f32.mrb[16].mxu0 }
 0x206   :  { %v5591_v49 = vpack.c.bf16 %v1578_v32, %v1560_v30  ;;  %v5593_v53 = vpack.c.bf16 %v1580_v38, %v1562_v21  ;;  %v1539_v2 = vpop.f32.mrb[17].mxu0  ;;  %v1538_v22 = vadd.f32 %v1537_v24, %v5489_v16  ;;  %2551 = vrot.lane.b32.xlu0 %v5503_v43, %s4823_s12  ;;  %v5707_v18 = vrot.slane %v3223_v6, %v3669_v10 }
 0x207   :  { %v5597_v59 = vpack.c.bf16 %v1579_v26, %v1561_v36  ;;  %v5599_v45 = vpack.c.bf16 %v1581_v41, %v1563_v40  ;;  %v1540_v13 = vadd.f32 %v1539_v2, %v5489_v16  ;;  %2547 = vrot.lane.b32.xlu1 %v5501_v37, %s4823_s12  ;;  %v3663_v26 = vcombine.high %v3223_v6, %v3223_v6 }
 0x208   :  { %7839 = vst [vmem:[#allocation13_spill] sm:$0xff] %v5591_v49  ;;  %7840 = vst [vmem:[#allocation14_spill] sm:$0xff] %v5593_v53  ;;  %v1564_v46 = vmax.f32 %v1538_v22, 0.0  ;;  %v5715_v25 = vcombine.high %v5707_v18, %v5707_v18 }
 0x209   :  { %7841 = vst [vmem:[#allocation15_spill] sm:$0xff] %v5597_v59  ;;  %7842 = vst [vmem:[#allocation16_spill] sm:$0xff] %v5599_v45  ;;  %v1543_v14 = vpop.f32.mrb[18].mxu0  ;;  %v1565_v0 = vmax.f32 %v1540_v13, 0.0  ;;  %v5797_v2 = vrot.slane %v3663_v26, %v3669_v10 }
 0x20a   :  { %v1544_v1 = vadd.f32 %v1543_v14, %v5493_v5  ;;  %v1545_v3 = vpop.f32.mrb[19].mxu0  ;;  %2630 = vrot.lane.b32.xlu0 %v5501_v37, %s4824_s13  ;;  %7847 = vst [vmem:[#allocation20_spill] sm:$0xff] %v5715_v25  ;;  %3718 = vmatprep.mubr.bf16.mxu1 %v5715_v25 }
 0x20b   :  { %v1546_v4 = vadd.f32 %v1545_v3, %v5493_v5  ;;  %2634 = vrot.lane.b32.xlu1 %v5503_v43, %s4824_s13  ;;  %3800 = vmatprep.mubr.bf16.mxu0 %v5715_v25  ;;  %7848 = vst [vmem:[#allocation21_spill] sm:$0xff] %v5797_v2 }
 0x20c   :  { %v1582_v31 = vmax.f32 %v1544_v1, 0.0 }
 0x20d   :  { %v1583_v51 = vmax.f32 %v1546_v4, 0.0 }
 0x20e   :  { %v5611_v16 = vpack.c.bf16 %v1582_v31, %v1564_v46  ;;  %2717 = vrot.lane.b32.xlu0 %v5503_v43, %s4825_s14 }
 0x20f   :  { %v5615_v8 = vpack.c.bf16 %v1583_v51, %v1565_v0  ;;  %2713 = vrot.lane.b32.xlu1 %v5501_v37, %s4825_s14 }
 0x210   :  { %7843 = vst [vmem:[#allocation17_spill] sm:$0xff] %v5611_v16 }
 0x211   :  { %7844 = vst [vmem:[#allocation18_spill] sm:$0xff] %v5615_v8 }
 0x212   :  { %2796 = vrot.lane.b32.xlu0 %v5501_v37, %s4826_s15 }
 0x213   :  { %2800 = vrot.lane.b32.xlu1 %v5503_v43, %s4826_s15 }
 0x216   :  { %2883 = vrot.lane.b32.xlu0 %v5503_v43, %s4827_s18 }
 0x217   :  { %2879 = vrot.lane.b32.xlu1 %v5501_v37, %s4827_s18 }
 0x21a   :  { %2962 = vrot.lane.b32.xlu0 %v5501_v37, %s4828_s0 }
 0x21b   :  { %2966 = vrot.lane.b32.xlu1 %v5503_v43, %s4828_s0 }
 0x21e   :  { %1640 = vrot.lane.b32.xlu0 %v5507_v33, %s4813_s3 }
 0x21f   :  { %1636 = vrot.lane.b32.xlu1 %v5505_v57, %s4813_s3 }
 0x222   :  { %1802 = vrot.lane.b32.xlu0 %v5505_v57, %s4814_s27 }
 0x223   :  { %1719 = vrot.lane.b32.xlu1 %v5505_v57, %s4812_s26 }
 0x226   :  { %1806 = vrot.lane.b32.xlu0 %v5507_v33, %s4814_s27 }
 0x227   :  { %1723 = vrot.lane.b32.xlu1 %v5507_v33, %s4812_s26 }
 0x22a   :  { %1968 = vrot.lane.b32.xlu0 %v5505_v57, %s4816_s29 }
 0x22b   :  { %1885 = vrot.lane.b32.xlu1 %v5505_v57, %s4815_s28 }
 0x22e   :  { %1972 = vrot.lane.b32.xlu0 %v5507_v33, %s4816_s29 }
 0x22f   :  { %1889 = vrot.lane.b32.xlu1 %v5507_v33, %s4815_s28 }
 0x232   :  { %2134 = vrot.lane.b32.xlu0 %v5505_v57, %s4818_s7 }
 0x233   :  { %2051 = vrot.lane.b32.xlu1 %v5505_v57, %s4817_s30 }
 0x236   :  { %2138 = vrot.lane.b32.xlu0 %v5507_v33, %s4818_s7 }
 0x237   :  { %2055 = vrot.lane.b32.xlu1 %v5507_v33, %s4817_s30 }
 0x23a   :  { %2300 = vrot.lane.b32.xlu0 %v5505_v57, %s4820_s9 }
 0x23b   :  { %2217 = vrot.lane.b32.xlu1 %v5505_v57, %s4819_s8 }
 0x23e   :  { %2304 = vrot.lane.b32.xlu0 %v5507_v33, %s4820_s9 }
 0x23f   :  { %2221 = vrot.lane.b32.xlu1 %v5507_v33, %s4819_s8 }
 0x242   :  { %2466 = vrot.lane.b32.xlu0 %v5505_v57, %s4822_s11 }
 0x243   :  { %2383 = vrot.lane.b32.xlu1 %v5505_v57, %s4821_s10 }
 0x246   :  { %2470 = vrot.lane.b32.xlu0 %v5507_v33, %s4822_s11 }
 0x247   :  { %2387 = vrot.lane.b32.xlu1 %v5507_v33, %s4821_s10 }
 0x24a   :  { %2632 = vrot.lane.b32.xlu0 %v5505_v57, %s4824_s13 }
 0x24b   :  { %2549 = vrot.lane.b32.xlu1 %v5505_v57, %s4823_s12 }
 0x24c   :  { %v5685_v5 = vpop.permute.xlu0 %1634 }
 0x24d   :  { %v5687_v37 = vpop.permute.xlu1 %1638 }
 0x24e   :  { %2636 = vrot.lane.b32.xlu0 %v5507_v33, %s4824_s13 }
 0x24f   :  { %2553 = vrot.lane.b32.xlu1 %v5507_v33, %s4823_s12 }
 0x250   :  { %v5696_v44 = vpop.permute.xlu0 %1721 }
 0x251   :  { %v5698_v23 = vpop.permute.xlu1 %1717 }
 0x252   :  { %2798 = vrot.lane.b32.xlu0 %v5505_v57, %s4826_s15 }
 0x253   :  { %2715 = vrot.lane.b32.xlu1 %v5505_v57, %s4825_s14 }
 0x254   :  { %v5705_v17 = vpop.permute.xlu0 %1800 }
 0x255   :  { %v5709_v48 = vpop.permute.xlu1 %1804 }
 0x256   :  { %2802 = vrot.lane.b32.xlu0 %v5507_v33, %s4826_s15 }
 0x257   :  { %2719 = vrot.lane.b32.xlu1 %v5507_v33, %s4825_s14 }
 0x258   :  { %v5719_v54 = vpop.permute.xlu0 %1887 }
 0x259   :  { %v5723_v47 = vpop.permute.xlu1 %1883 }
 0x25a   :  { %2964 = vrot.lane.b32.xlu0 %v5505_v57, %s4828_s0 }
 0x25b   :  { %2881 = vrot.lane.b32.xlu1 %v5505_v57, %s4827_s18 }
 0x25c   :  { %v5729_v27 = vpop.permute.xlu0 %1966 }
 0x25d   :  { %v5731_v19 = vpop.permute.xlu1 %1970 }
 0x25e   :  { %2968 = vrot.lane.b32.xlu0 %v5507_v33, %s4828_s0 }
 0x25f   :  { %2885 = vrot.lane.b32.xlu1 %v5507_v33, %s4827_s18 }
 0x260   :  { %v5737_v11 = vpop.permute.xlu0 %2053 }
 0x261   :  { %v5739_v28 = vpop.permute.xlu1 %2049 }
 0x262   :  { %1725 = vrot.lane.b32.xlu0 %v5529_v62, %s4812_s26 }
 0x263   :  { %1642 = vrot.lane.b32.xlu1 %v5529_v62, %s4813_s3 }
 0x264   :  { %v5745_v20 = vpop.permute.xlu0 %2132 }
 0x265   :  { %v5747_v63 = vpop.permute.xlu1 %2136 }
 0x266   :  { %1891 = vrot.lane.b32.xlu0 %v5529_v62, %s4815_s28 }
 0x267   :  { %1808 = vrot.lane.b32.xlu1 %v5529_v62, %s4814_s27 }
 0x268   :  { %v5753_v61 = vpop.permute.xlu0 %2219 }
 0x269   :  { %v5755_v9 = vpop.permute.xlu1 %2215 }
 0x26a   :  { %2057 = vrot.lane.b32.xlu0 %v5529_v62, %s4817_s30 }
 0x26b   :  { %1974 = vrot.lane.b32.xlu1 %v5529_v62, %s4816_s29 }
 0x26c   :  { %v5761_v50 = vpop.permute.xlu0 %2298 }
 0x26d   :  { %v5763_v34 = vpop.permute.xlu1 %2302 }
 0x26e   :  { %2223 = vrot.lane.b32.xlu0 %v5529_v62, %s4819_s8 }
 0x26f   :  { %2140 = vrot.lane.b32.xlu1 %v5529_v62, %s4818_s7 }
 0x270   :  { %v5769_v30 = vpop.permute.xlu0 %2385 }
 0x271   :  { %v5771_v21 = vpop.permute.xlu1 %2381 }
 0x272   :  { %2389 = vrot.lane.b32.xlu0 %v5529_v62, %s4821_s10 }
 0x273   :  { %2306 = vrot.lane.b32.xlu1 %v5529_v62, %s4820_s9 }
 0x274   :  { %v5777_v32 = vpop.permute.xlu0 %2464 }
 0x275   :  { %v5779_v38 = vpop.permute.xlu1 %2468 }
 0x276   :  { %2555 = vrot.lane.b32.xlu0 %v5529_v62, %s4823_s12 }
 0x277   :  { %2472 = vrot.lane.b32.xlu1 %v5529_v62, %s4822_s11 }
 0x278   :  { %v5785_v36 = vpop.permute.xlu0 %2551 }
 0x279   :  { %v5787_v40 = vpop.permute.xlu1 %2547 }
 0x27a   :  { %2721 = vrot.lane.b32.xlu0 %v5529_v62, %s4825_s14 }
 0x27b   :  { %2638 = vrot.lane.b32.xlu1 %v5529_v62, %s4824_s13 }
 0x27c   :  { %v5793_v41 = vpop.permute.xlu0 %2630 }
 0x27d   :  { %v5795_v24 = vpop.permute.xlu1 %2634 }
 0x27e   :  { %2887 = vrot.lane.b32.xlu0 %v5529_v62, %s4827_s18 }
 0x27f   :  { %2804 = vrot.lane.b32.xlu1 %v5529_v62, %s4826_s15 }
 0x280   :  { %v5803_v22 = vpop.permute.xlu0 %2717 }
 0x281   :  { %v5805_v13 = vpop.permute.xlu1 %2713 }
 0x282   :  { %1729 = vrot.lane.b32.xlu0 %v5531_v29, %s4812_s26 }
 0x283   :  { %2970 = vrot.lane.b32.xlu1 %v5529_v62, %s4828_s0 }
 0x284   :  { %v5811_v14 = vpop.permute.xlu0 %2796 }
 0x285   :  { %v5813_v1 = vpop.permute.xlu1 %2800 }
 0x286   :  { %1895 = vrot.lane.b32.xlu0 %v5531_v29, %s4815_s28 }
 0x287   :  { %1646 = vrot.lane.b32.xlu1 %v5531_v29, %s4813_s3 }
 0x288   :  { %v5819_v3 = vpop.permute.xlu0 %2883 }
 0x289   :  { %v5821_v4 = vpop.permute.xlu1 %2879 }
 0x28a   :  { %2061 = vrot.lane.b32.xlu0 %v5531_v29, %s4817_s30 }
 0x28b   :  { %1812 = vrot.lane.b32.xlu1 %v5531_v29, %s4814_s27 }
 0x28c   :  { %v5827_v46 = vpop.permute.xlu0 %2962 }
 0x28d   :  { %v5829_v31 = vpop.permute.xlu1 %2966 }
 0x28e   :  { %2227 = vrot.lane.b32.xlu0 %v5531_v29, %s4819_s8 }
 0x28f   :  { %1978 = vrot.lane.b32.xlu1 %v5531_v29, %s4816_s29 }
 0x290   :  { %v5835_v0 = vpop.permute.xlu0 %1640 }
 0x291   :  { %v1637_v51 = vpop.permute.xlu1 %1636 }
 0x292   :  { %2310 = vrot.lane.b32.xlu0 %v5531_v29, %s4820_s9  ;;  %v5841_v56 = vsel %vm7849_vm0, %v1637_v51, %v5687_v37  ;;  %v1669_v60 = vsel %vm7850_vm1, %v5685_v5, %v1637_v51  ;;  %vm7857_vm0 = vcmask 457728  }
 0x293   :  { %2144 = vrot.lane.b32.xlu1 %v5531_v29, %s4818_s7  ;;  %3688 = vmatprep.subr.bf16.mxu1 %v5841_v56  ;;  %vm7858_vm1 = vmmov %vm7857_vm0 }
 0x294   :  { %3689 = vmatpush1.bf16.msra.mxu1 %v1669_v60  ;;  %v1803_v39 = vpop.permute.xlu0 %1802 }
 0x295   :  { %v1720_v7 = vpop.permute.xlu1 %1719  ;;  %v5863_v26 = vsel %vm134_vm5, %v1803_v39, %v5709_v48 }
 0x296   :  { %2393 = vrot.lane.b32.xlu0 %v5531_v29, %s4821_s10  ;;  %v5852_v6 = vsel %vm7851_vm2, %v1720_v7, %v5696_v44  ;;  %v1752_v10 = vsel %vm7852_vm4, %v5698_v23, %v1720_v7  ;;  %v1835_v23 = vsel %vm134_vm5, %v5705_v17, %v1803_v39  ;;  %vm7859_vm2 = vcmask 449536  }
 0x297   :  { %1644 = vrot.lane.b32.xlu1 %v5533_v35, %s4813_s3  ;;  %3690 = vmatprep.subr.bf16.mxu1 %v5852_v6  ;;  %vm7860_vm4 = vmmov %vm7859_vm2 }
 0x298   :  { %3691 = vmatpush1.bf16.msra.mxu1 %v1752_v10  ;;  %v5859_v5 = vpop.permute.xlu0 %1806 }
 0x299   :  { %v5865_v51 = vpop.permute.xlu1 %1723  ;;  %3692 = vmatprep.subr.bf16.mxu1 %v5863_v26 }
 0x29a   :  { %2476 = vrot.lane.b32.xlu0 %v5531_v29, %s4822_s11 }
 0x29b   :  { %1810 = vrot.lane.b32.xlu1 %v5533_v35, %s4814_s27 }
 0x29c   :  { %3693 = vmatpush1.bf16.msra.mxu1 %v1835_v23  ;;  %v1969_v60 = vpop.permute.xlu0 %1968 }
 0x29d   :  { %v1886_v7 = vpop.permute.xlu1 %1885  ;;  %v5889_v39 = vsel %vm188_vm7, %v1969_v60, %v5731_v19 }
 0x29e   :  { %2559 = vrot.lane.b32.xlu0 %v5531_v29, %s4823_s12  ;;  %v5878_v10 = vsel %vm7853_vm14, %v1886_v7, %v5719_v54  ;;  %v1918_v58 = vsel %vm7854_vm3, %v5723_v47, %v1886_v7  ;;  %v2001_v47 = vsel %vm188_vm7, %v5729_v27, %v1969_v60  ;;  %vm7861_vm14 = vcmask 441344  }
 0x29f   :  { %1976 = vrot.lane.b32.xlu1 %v5533_v35, %s4816_s29  ;;  %3694 = vmatprep.subr.bf16.mxu1 %v5878_v10  ;;  %vm7862_vm3 = vmmov %vm7861_vm14 }
 0x2a0   :  { %3695 = vmatpush1.bf16.msra.mxu1 %v1918_v58  ;;  %v5885_v17 = vpop.permute.xlu0 %1972 }
 0x2a1   :  { %v5891_v23 = vpop.permute.xlu1 %1889  ;;  %3696 = vmatprep.subr.bf16.mxu1 %v5889_v39 }
 0x2a2   :  { %2642 = vrot.lane.b32.xlu0 %v5531_v29, %s4824_s13 }
 0x2a3   :  { %2142 = vrot.lane.b32.xlu1 %v5533_v35, %s4818_s7 }
 0x2a4   :  { %3697 = vmatpush1.bf16.msra.mxu1 %v2001_v47  ;;  %v2135_v58 = vpop.permute.xlu0 %2134 }
 0x2a5   :  { %v2052_v7 = vpop.permute.xlu1 %2051  ;;  %v5915_v60 = vsel %vm242_vm9, %v2135_v58, %v5747_v63 }
 0x2a6   :  { %1727 = vrot.lane.b32.xlu0 %v5533_v35, %s4812_s26  ;;  %v5904_v8 = vsel %vm215_vm8, %v2052_v7, %v5737_v11  ;;  %v2084_v16 = vsel %vm215_vm8, %v5739_v28, %v2052_v7  ;;  %v2167_v28 = vsel %vm242_vm9, %v5745_v20, %v2135_v58 }
 0x2a7   :  { %1731 = vrot.lane.b32.xlu1 %v5535_v15, %s4812_s26  ;;  %3698 = vmatprep.subr.bf16.mxu1 %v5904_v8 }
 0x2a8   :  { %3699 = vmatpush1.bf16.msra.mxu1 %v2084_v16  ;;  %v5911_v27 = vpop.permute.xlu0 %2138 }
 0x2a9   :  { %v5917_v47 = vpop.permute.xlu1 %2055  ;;  %3700 = vmatprep.subr.bf16.mxu1 %v5915_v60 }
 0x2aa   :  { %1893 = vrot.lane.b32.xlu0 %v5533_v35, %s4815_s28 }
 0x2ab   :  { %1897 = vrot.lane.b32.xlu1 %v5535_v15, %s4815_s28 }
 0x2ac   :  { %3701 = vmatpush1.bf16.msra.mxu1 %v2167_v28  ;;  %v2301_v16 = vpop.permute.xlu0 %2300 }
 0x2ad   :  { %v2218_v7 = vpop.permute.xlu1 %2217  ;;  %v2334_v58 = vsel %vm296_vm11, %v2301_v16, %v5763_v34 }
 0x2ae   :  { %2059 = vrot.lane.b32.xlu0 %v5533_v35, %s4817_s30  ;;  %v5930_v53 = vsel %vm269_vm10, %v2218_v7, %v5753_v61  ;;  %v2250_v45 = vsel %vm269_vm10, %v5755_v9, %v2218_v7  ;;  %v2333_v9 = vsel %vm296_vm11, %v5761_v50, %v2301_v16 }
 0x2af   :  { %2063 = vrot.lane.b32.xlu1 %v5535_v15, %s4817_s30  ;;  %3702 = vmatprep.subr.bf16.mxu1 %v5930_v53 }
 0x2b0   :  { %3703 = vmatpush1.bf16.msra.mxu1 %v2250_v45  ;;  %v5937_v20 = vpop.permute.xlu0 %2304 }
 0x2b1   :  { %v5941_v28 = vpop.permute.xlu1 %2221  ;;  %3704 = vmatprep.subr.bf16.mxu1 %v2334_v58 }
 0x2b2   :  { %2225 = vrot.lane.b32.xlu0 %v5533_v35, %s4819_s8 }
 0x2b3   :  { %2229 = vrot.lane.b32.xlu1 %v5535_v15, %s4819_s8 }
 0x2b4   :  { %3705 = vmatpush1.bf16.msra.mxu1 %v2333_v9  ;;  %v2467_v7 = vpop.permute.xlu0 %2466 }
 0x2b5   :  { %v2384_v45 = vpop.permute.xlu1 %2383  ;;  %v2500_v50 = vsel %vm7855_vm6, %v2467_v7, %v5779_v38  ;;  %vm7863_vm6 = vcmask 392192  }
 0x2b6   :  { %1648 = vrot.lane.b32.xlu0 %v5535_v15, %s4813_s3  ;;  %v2417_v59 = vsel %vm323_vm12, %v2384_v45, %v5769_v30  ;;  %v2416_v58 = vsel %vm323_vm12, %v5771_v21, %v2384_v45  ;;  %v2499_v21 = vsel %vm7856_vm13, %v5777_v32, %v2467_v7  ;;  %vm7864_vm13 = vmmov %vm7863_vm6 }
 0x2b7   :  { %2308 = vrot.lane.b32.xlu1 %v5533_v35, %s4820_s9  ;;  %3706 = vmatprep.subr.bf16.mxu1 %v2417_v59 }
 0x2b8   :  { %3707 = vmatpush1.bf16.msra.mxu1 %v2416_v58  ;;  %v5957_v49 = vpop.permute.xlu0 %2470 }
 0x2b9   :  { %v5961_v16 = vpop.permute.xlu1 %2387  ;;  %3708 = vmatprep.subr.bf16.mxu1 %v2500_v50 }
 0x2ba   :  { %1814 = vrot.lane.b32.xlu0 %v5535_v15, %s4814_s27 }
 0x2bb   :  { %2312 = vrot.lane.b32.xlu1 %v5535_v15, %s4820_s9 }
 0x2bc   :  { %3709 = vmatpush1.bf16.msra.mxu1 %v2499_v21  ;;  %v2633_v59 = vpop.permute.xlu0 %2632 }
 0x2bd   :  { %v2550_v9 = vpop.permute.xlu1 %2549  ;;  %v2666_v32 = vsel %vm7859_vm2, %v2633_v59, %v5795_v24  ;;  %vm7867_vm2 = vmmov %vm7863_vm6 }
 0x2be   :  { %1980 = vrot.lane.b32.xlu0 %v5535_v15, %s4816_s29  ;;  %v2583_v45 = vsel %vm7857_vm0, %v2550_v9, %v5785_v36  ;;  %v2582_v58 = vsel %vm7858_vm1, %v5787_v40, %v2550_v9  ;;  %v2665_v40 = vsel %vm7860_vm4, %v5793_v41, %v2633_v59  ;;  %vm7865_vm0 = vcmask 384000  }
 0x2bf   :  { %2391 = vrot.lane.b32.xlu1 %v5533_v35, %s4821_s10  ;;  %3710 = vmatprep.subr.bf16.mxu1 %v2583_v45  ;;  %vm7866_vm1 = vmmov %vm7865_vm0  ;;  %vm7868_vm4 = vcmask 1039360  }
 0x2c0   :  { %3711 = vmatpush1.bf16.msra.mxu1 %v2582_v58  ;;  %v5977_v50 = vpop.permute.xlu0 %2636 }
 0x2c1   :  { %v5981_v7 = vpop.permute.xlu1 %2553  ;;  %3712 = vmatprep.subr.bf16.mxu1 %v2666_v32 }
 0x2c2   :  { %2146 = vrot.lane.b32.xlu0 %v5535_v15, %s4818_s7 }
 0x2c3   :  { %2395 = vrot.lane.b32.xlu1 %v5535_v15, %s4821_s10 }
 0x2c4   :  { %3713 = vmatpush1.bf16.msra.mxu1 %v2665_v40  ;;  %v2799_v21 = vpop.permute.xlu0 %2798 }
 0x2c5   :  { %v2716_v9 = vpop.permute.xlu1 %2715  ;;  %v2832_v41 = vsel %vm7863_vm6, %v2799_v21, %v5813_v1 }
 0x2c6   :  { %1733 = vrot.lane.b32.xlu0 %v5567_v12, %s4812_s26  ;;  %v2749_v45 = vsel %vm7861_vm14, %v2716_v9, %v5803_v22  ;;  %v2748_v58 = vsel %vm7862_vm3, %v5805_v13, %v2716_v9  ;;  %v2831_v13 = vsel %vm7864_vm13, %v5811_v14, %v2799_v21  ;;  %vm7869_vm14 = vmmov %vm7868_vm4  ;;  %vm7870_vm3 = vcmask 1031168  }
 0x2c7   :  { %2474 = vrot.lane.b32.xlu1 %v5533_v35, %s4822_s11  ;;  %3714 = vmatprep.subr.bf16.mxu1 %v2749_v45  ;;  %v6011_v45 = vcombine.high %v5797_v2, %v5797_v2  ;;  %vm7871_vm6 = vmmov %vm7870_vm3  ;;  %vm7872_vm13 = vcmask 973824  }
 0x2c8   :  { %3715 = vmatpush1.bf16.msra.mxu1 %v2748_v58  ;;  %v5997_v32 = vpop.permute.xlu0 %2802 }
 0x2c9   :  { %v6001_v59 = vpop.permute.xlu1 %2719  ;;  %3716 = vmatprep.subr.bf16.mxu1 %v2832_v41 }
 0x2ca   :  { %1899 = vrot.lane.b32.xlu0 %v5567_v12, %s4815_s28 }
 0x2cb   :  { %2478 = vrot.lane.b32.xlu1 %v5535_v15, %s4822_s11 }
 0x2cc   :  { %3717 = vmatpush1.bf16.msra.mxu1 %v2831_v13  ;;  %v2965_v40 = vpop.permute.xlu0 %2964 }
 0x2cd   :  { %v2882_v9 = vpop.permute.xlu1 %2881  ;;  %v2998_v13 = vsel %vm512_vm15, %v2965_v40, %v5829_v31 }
 0x2ce   :  { %2065 = vrot.lane.b32.xlu0 %v5567_v12, %s4817_s30  ;;  %v2915_v58 = vsel %vm7865_vm0, %v2882_v9, %v5819_v3  ;;  %v2914_v41 = vsel %vm7866_vm1, %v5821_v4, %v2882_v9  ;;  %v2997_v4 = vsel %vm512_vm15, %v5827_v46, %v2965_v40  ;;  %v1671_v46 = vsel %vm7869_vm14, %v5687_v37, %v5835_v0  ;;  %vm7873_vm0 = vmmov %vm7872_vm13 }
 0x2cf   :  { %2557 = vrot.lane.b32.xlu1 %v5533_v35, %s4823_s12  ;;  %3727 = vmatprep.subr.bf16.mxu1 %v2915_v58  ;;  %v1754_v37 = vsel %vm7871_vm6, %v5696_v44, %v5865_v51  ;;  %v1837_v44 = vsel %vm134_vm5, %v5709_v48, %v5859_v5  ;;  %v1920_v48 = vsel %vm7873_vm0, %v5719_v54, %v5891_v23  ;;  %vm7874_vm1 = vcmask 506880  }
 0x2d0   :  { %3719 = vmatmul.mubr.bf16.vlgmr.msra.gmra.mrb[16].mxu1 %v5707_v18  ;;  %v6022_v14 = vpop.permute.xlu0 %2968  ;;  %v2003_v54 = vsel %vm188_vm7, %v5731_v19, %v5885_v17  ;;  %v2086_v19 = vsel %vm215_vm8, %v5737_v11, %v5917_v47  ;;  %v2169_v11 = vsel %vm242_vm9, %v5747_v63, %v5911_v27  ;;  %v2252_v63 = vsel %vm269_vm10, %v5753_v61, %v5941_v28 }
 0x2d1   :  { %3728 = vmatpush1.bf16.msra.mxu1 %v2914_v41  ;;  %v6024_v21 = vpop.permute.xlu1 %2885  ;;  %4559 = vmatprep.mubr.msk.bf16.mxu1 %vm7867_vm2, %v6011_v45  ;;  %v2335_v61 = vsel %vm296_vm11, %v5763_v34, %v5937_v20  ;;  %v2418_v34 = vsel %vm323_vm12, %v5769_v30, %v5961_v16  ;;  %vm7875_vm2 = vmmov %vm7874_vm1  ;;  %vm7881_vm0 = vcmask 1039360  }
 0x2d2   :  { %3729 = vmatprep.subr.bf16.mxu1 %v2998_v13  ;;  %2231 = vrot.lane.b32.xlu0 %v5567_v12, %s4819_s8  ;;  %v2501_v30 = vsel %vm7875_vm2, %v5779_v38, %v5957_v49 }
 0x2d3   :  { %2561 = vrot.lane.b32.xlu1 %v5535_v15, %s4823_s12 }
 0x2d4   :  { %v6036_v9 = vpop.permute.xlu0 %1725 }
 0x2d5   :  { %3730 = vmatpush1.bf16.msra.mxu1 %v2997_v4  ;;  %v6038_v58 = vpop.permute.xlu1 %1642 }
 0x2d6   :  { %3731 = vmatprep.subr.bf16.mxu1 %v5503_v43  ;;  %2314 = vrot.lane.b32.xlu0 %v5567_v12, %s4820_s9  ;;  %v6046_v41 = vsel %vm7868_vm4, %v5835_v0, %v6038_v58  ;;  %v6057_v43 = vsel %vm7870_vm3, %v5865_v51, %v6036_v9  ;;  %vm7876_vm4 = vcmask 457728   ;;  %vm7878_vm3 = vcmask 449536  }
 0x2d7   :  { %2640 = vrot.lane.b32.xlu1 %v5533_v35, %s4824_s13  ;;  %3770 = vmatprep.subr.bf16.mxu0 %v6046_v41  ;;  %vm7877_vm14 = vmmov %vm7876_vm4 }
 0x2d8   :  { %3771 = vmatpush1.bf16.msra.mxu0 %v1671_v46  ;;  %v6059_v40 = vpop.permute.xlu0 %1891  ;;  %vm7879_vm6 = vmmov %vm7878_vm3 }
 0x2d9   :  { %3732 = vmatpush1.bf16.msra.mxu1 %v5505_v57  ;;  %v6062_v13 = vpop.permute.xlu1 %1808  ;;  %3772 = vmatprep.subr.bf16.mxu0 %v6057_v43 }
 0x2da   :  { %3733 = vmatprep.subr.bf16.mxu1 %v1671_v46  ;;  %2397 = vrot.lane.b32.xlu0 %v5567_v12, %s4821_s10  ;;  %v6075_v57 = vsel %vm134_vm5, %v5859_v5, %v6062_v13 }
 0x2db   :  { %2644 = vrot.lane.b32.xlu1 %v5535_v15, %s4824_s13 }
 0x2dc   :  { %3773 = vmatpush1.bf16.msra.mxu0 %v1754_v37  ;;  %v6077_v0 = vpop.permute.xlu0 %2057 }
 0x2dd   :  { %3734 = vmatpush1.bf16.msra.mxu1 %v5841_v56  ;;  %v6080_v4 = vpop.permute.xlu1 %1974  ;;  %3774 = vmatprep.subr.bf16.mxu0 %v6075_v57  ;;  %v6093_v56 = vsel %vm7872_vm13, %v5891_v23, %v6059_v40  ;;  %vm7880_vm13 = vcmask 441344  }
 0x2de   :  { %3735 = vmatprep.subr.bf16.mxu1 %v1754_v37  ;;  %2480 = vrot.lane.b32.xlu0 %v5567_v12, %s4822_s11  ;;  %vm7883_vm2 = vmmov %vm7880_vm13 }
 0x2df   :  { %2723 = vrot.lane.b32.xlu1 %v5533_v35, %s4825_s14 }
 0x2e0   :  { %3775 = vmatpush1.bf16.msra.mxu0 %v1837_v44  ;;  %v6095_v51 = vpop.permute.xlu0 %2223 }
 0x2e1   :  { %3736 = vmatpush1.bf16.msra.mxu1 %v5852_v6  ;;  %v6098_v46 = vpop.permute.xlu1 %2140  ;;  %3776 = vmatprep.subr.bf16.mxu0 %v6093_v56  ;;  %v6111_v6 = vsel %vm188_vm7, %v5885_v17, %v6080_v4 }
 0x2e2   :  { %3737 = vmatprep.subr.bf16.mxu1 %v1837_v44  ;;  %2563 = vrot.lane.b32.xlu0 %v5567_v12, %s4823_s12 }
 0x2e3   :  { %1650 = vrot.lane.b32.xlu1 %v5567_v12, %s4813_s3 }
 0x2e4   :  { %3777 = vmatpush1.bf16.msra.mxu0 %v1920_v48  ;;  %v6113_v5 = vpop.permute.xlu0 %2389 }
 0x2e5   :  { %3738 = vmatpush1.bf16.msra.mxu1 %v5863_v26  ;;  %v6116_v37 = vpop.permute.xlu1 %2306  ;;  %3778 = vmatprep.subr.bf16.mxu0 %v6111_v6  ;;  %v6129_v26 = vsel %vm215_vm8, %v5917_v47, %v6077_v0 }
 0x2e6   :  { %3739 = vmatprep.subr.bf16.mxu1 %v1920_v48  ;;  %2646 = vrot.lane.b32.xlu0 %v5567_v12, %s4824_s13 }
 0x2e7   :  { %1816 = vrot.lane.b32.xlu1 %v5567_v12, %s4814_s27 }
 0x2e8   :  { %3779 = vmatpush1.bf16.msra.mxu0 %v2003_v54  ;;  %v6131_v23 = vpop.permute.xlu0 %2555 }
 0x2e9   :  { %3740 = vmatpush1.bf16.msra.mxu1 %v5878_v10  ;;  %v6134_v44 = vpop.permute.xlu1 %2472  ;;  %3780 = vmatprep.subr.bf16.mxu0 %v6129_v26  ;;  %v6147_v10 = vsel %vm242_vm9, %v5911_v27, %v6098_v46 }
 0x2ea   :  { %3741 = vmatprep.subr.bf16.mxu1 %v2003_v54  ;;  %2725 = vrot.lane.b32.xlu0 %v5531_v29, %s4825_s14 }
 0x2eb   :  { %1982 = vrot.lane.b32.xlu1 %v5567_v12, %s4816_s29 }
 0x2ec   :  { %3781 = vmatpush1.bf16.msra.mxu0 %v2086_v19  ;;  %v6149_v17 = vpop.permute.xlu0 %2721 }
 0x2ed   :  { %3742 = vmatpush1.bf16.msra.mxu1 %v5889_v39  ;;  %v6152_v48 = vpop.permute.xlu1 %2638  ;;  %3782 = vmatprep.subr.bf16.mxu0 %v6147_v10  ;;  %v6165_v39 = vsel %vm269_vm10, %v5941_v28, %v6095_v51  ;;  %v2419_v28 = vsel %vm323_vm12, %v5961_v16, %v6113_v5  ;;  %v2585_v16 = vsel %vm7876_vm4, %v5981_v7, %v6131_v23  ;;  %vm7884_vm4 = vcmask 392192  }
 0x2ee   :  { %3743 = vmatprep.subr.bf16.mxu1 %v2086_v19  ;;  %2729 = vrot.lane.b32.xlu0 %v5567_v12, %s4825_s14  ;;  %v2668_v38 = vsel %vm7878_vm3, %v5977_v50, %v6152_v48  ;;  %vm7886_vm3 = vcmask 384000  }
 0x2ef   :  { %2148 = vrot.lane.b32.xlu1 %v5567_v12, %s4818_s7 }
 0x2f0   :  { %3783 = vmatpush1.bf16.msra.mxu0 %v2169_v11  ;;  %v6167_v47 = vpop.permute.xlu0 %2887 }
 0x2f1   :  { %3744 = vmatpush1.bf16.msra.mxu1 %v5904_v8  ;;  %v6170_v54 = vpop.permute.xlu1 %2804  ;;  %3784 = vmatprep.subr.bf16.mxu0 %v6165_v39  ;;  %v2336_v8 = vsel %vm296_vm11, %v5937_v20, %v6116_v37 }
 0x2f2   :  { %3745 = vmatprep.subr.bf16.mxu1 %v2169_v11  ;;  %2808 = vrot.lane.b32.xlu0 %v5531_v29, %s4826_s15 }
 0x2f3   :  { %2727 = vrot.lane.b32.xlu1 %v5535_v15, %s4825_s14 }
 0x2f4   :  { %3785 = vmatpush1.bf16.msra.mxu0 %v2252_v63  ;;  %v6183_v27 = vpop.permute.xlu0 %1729 }
 0x2f5   :  { %3746 = vmatpush1.bf16.msra.mxu1 %v5915_v60  ;;  %v6186_v19 = vpop.permute.xlu1 %2970  ;;  %3786 = vmatprep.subr.bf16.mxu0 %v2336_v8 }
 0x2f6   :  { %3747 = vmatprep.subr.bf16.mxu1 %v2252_v63  ;;  %2812 = vrot.lane.b32.xlu0 %v5567_v12, %s4826_s15 }
 0x2f7   :  { %2806 = vrot.lane.b32.xlu1 %v5533_v35, %s4826_s15 }
 0x2f8   :  { %3787 = vmatpush1.bf16.msra.mxu0 %v2335_v61  ;;  %v6198_v60 = vpop.permute.xlu0 %1895 }
 0x2f9   :  { %3748 = vmatpush1.bf16.msra.mxu1 %v5930_v53  ;;  %v6201_v11 = vpop.permute.xlu1 %1646  ;;  %3788 = vmatprep.subr.bf16.mxu0 %v2419_v28  ;;  %v2502_v53 = vsel %vm7874_vm1, %v5957_v49, %v6134_v44  ;;  %v2584_v49 = vsel %vm7877_vm14, %v5785_v36, %v5981_v7  ;;  %v2667_v36 = vsel %vm7879_vm6, %v5795_v24, %v5977_v50  ;;  %vm7882_vm1 = vmmov %vm7881_vm0 }
 0x2fa   :  { %3850 = vmatprep.subr.bf16.mxu1 %v5533_v35  ;;  %2891 = vrot.lane.b32.xlu0 %v5531_v29, %s4827_s18  ;;  %v2751_v7 = vsel %vm7880_vm13, %v6001_v59, %v6149_v17  ;;  %v2750_v24 = vsel %vm7883_vm2, %v5803_v22, %v6001_v59  ;;  %v2834_v50 = vsel %vm7884_vm4, %v5997_v32, %v6170_v54  ;;  %vm7885_vm14 = vmmov %vm7884_vm4  ;;  %vm7891_vm2 = vcmask 973824  }
 0x2fb   :  { %2810 = vrot.lane.b32.xlu1 %v5535_v15, %s4826_s15  ;;  %v2833_v22 = vsel %vm7885_vm14, %v5813_v1, %v5997_v32  ;;  %v2917_v59 = vsel %vm7886_vm3, %v6024_v21, %v6167_v47  ;;  %vm7887_vm6 = vmmov %vm7886_vm3  ;;  %v3000_v32 = vsel %vm512_vm15, %v6022_v14, %v6186_v19  ;;  %vm7895_vm14 = vcmask 506880  }
 0x2fc   :  { %3760 = vmatmul.mubr.bf16.vlgmr.msra.gmra.mrb[16].mxu1 %v5797_v2  ;;  %3789 = vmatpush1.bf16.msra.mxu0 %v2418_v34  ;;  %v6215_v20 = vpop.permute.xlu0 %2061  ;;  %v2916_v1 = vsel %vm7887_vm6, %v5819_v3, %v6024_v21  ;;  %vm7888_vm13 = vmmov %vm7884_vm4  ;;  %v2999_v3 = vsel %vm512_vm15, %v5829_v31, %v6022_v14  ;;  %vm7898_vm6 = vcmask 457728  }
 0x2fd   :  { %3851 = vmatpush1.bf16.msra.mxu1 %v5529_v62  ;;  %v6218_v63 = vpop.permute.xlu1 %1812  ;;  %3790 = vmatprep.subr.bf16.mxu0 %v2502_v53  ;;  %vm7893_vm4 = vmmov %vm7891_vm2 }
 0x2fe   :  { %2895 = vrot.lane.b32.xlu0 %v5567_v12, %s4827_s18  ;;  %3882 = vmatprep.mubr.bf16.mxu1 %v5715_v25  ;;  %vm7896_vm3 = vmmov %vm7895_vm14 }
 0x2ff   :  { %2889 = vrot.lane.b32.xlu1 %v5533_v35, %s4827_s18 }
 0x300   :  { %3791 = vmatpush1.bf16.msra.mxu0 %v2501_v30  ;;  %v6231_v8 = vpop.permute.xlu0 %2227 }
 0x301   :  { %v6233_v61 = vpop.permute.xlu1 %1978  ;;  %3792 = vmatprep.subr.bf16.mxu0 %v2585_v16 }
 0x302   :  { %2974 = vrot.lane.b32.xlu0 %v5531_v29, %s4828_s0 }
 0x303   :  { %2893 = vrot.lane.b32.xlu1 %v5535_v15, %s4827_s18 }
 0x304   :  { %3793 = vmatpush1.bf16.msra.mxu0 %v2584_v49  ;;  %v6245_v28 = vpop.permute.xlu0 %2310 }
 0x305   :  { %v6247_v34 = vpop.permute.xlu1 %2144  ;;  %3794 = vmatprep.subr.bf16.mxu0 %v2668_v38 }
 0x306   :  { %2978 = vrot.lane.b32.xlu0 %v5567_v12, %s4828_s0 }
 0x307   :  { %2972 = vrot.lane.b32.xlu1 %v5533_v35, %s4828_s0 }
 0x308   :  { %3795 = vmatpush1.bf16.msra.mxu0 %v2667_v36  ;;  %v6259_v53 = vpop.permute.xlu0 %2393 }
 0x309   :  { %v1645_v30 = vpop.permute.xlu1 %1644  ;;  %3796 = vmatprep.subr.bf16.mxu0 %v2751_v7 }
 0x30a   :  { %1735 = vrot.lane.b32.xlu0 %v5573_v42, %s4812_s26  ;;  %v6265_v16 = vsel %vm7881_vm0, %v1645_v30, %v6201_v11  ;;  %v1673_v49 = vsel %vm7882_vm1, %v6038_v58, %v1645_v30  ;;  %vm7889_vm0 = vcmask 1031168  }
 0x30b   :  { %2976 = vrot.lane.b32.xlu1 %v5535_v15, %s4828_s0  ;;  %3852 = vmatprep.subr.bf16.mxu1 %v6265_v16  ;;  %vm7890_vm1 = vmmov %vm7889_vm0 }
 0x30c   :  { %3797 = vmatpush1.bf16.msra.mxu0 %v2750_v24  ;;  %3853 = vmatpush1.bf16.msra.mxu1 %v1673_v49  ;;  %v6278_v38 = vpop.permute.xlu0 %2476 }
 0x30d   :  { %v1811_v36 = vpop.permute.xlu1 %1810  ;;  %3798 = vmatprep.subr.bf16.mxu0 %v2834_v50 }
 0x30e   :  { %1901 = vrot.lane.b32.xlu0 %v5573_v42, %s4815_s28  ;;  %v6332_v31 = vsel %vm134_vm5, %v1811_v36, %v6218_v63 }
 0x30f   :  { %1652 = vrot.lane.b32.xlu1 %v5573_v42, %s4813_s3 }
 0x310   :  { %3799 = vmatpush1.bf16.msra.mxu0 %v2833_v22  ;;  %v6290_v58 = vpop.permute.xlu0 %2559 }
 0x311   :  { %v1977_v7 = vpop.permute.xlu1 %1976  ;;  %3809 = vmatprep.subr.bf16.mxu0 %v2917_v59 }
 0x312   :  { %2067 = vrot.lane.b32.xlu0 %v5573_v42, %s4817_s30 }
 0x313   :  { %1818 = vrot.lane.b32.xlu1 %v5573_v42, %s4814_s27  ;;  %3801 = vmatmul.mubr.bf16.vlgmr.msra.gmra.mrb[20].mxu0 %v5707_v18 }
 0x314   :  { %3810 = vmatpush1.bf16.msra.mxu0 %v2916_v1  ;;  %v6303_v30 = vpop.permute.xlu0 %2642  ;;  %4560 = vmatprep.mubr.msk.bf16.mxu0 %vm7888_vm13, %v6011_v45  ;;  %vm7899_vm13 = vmmov %vm7898_vm6 }
 0x315   :  { %v6307_v24 = vpop.permute.xlu1 %2142  ;;  %3811 = vmatprep.subr.bf16.mxu0 %v3000_v32  ;;  %v7892_v32 = vld [vmem:[#allocation13_spill] sm:$0xff] }
 0x316   :  { %2233 = vrot.lane.b32.xlu0 %v5573_v42, %s4819_s8 }
 0x317   :  { %1984 = vrot.lane.b32.xlu1 %v5573_v42, %s4816_s29 }
 0x318   :  { %3812 = vmatpush1.bf16.msra.mxu0 %v2999_v3  ;;  %v1728_v21 = vpop.permute.xlu0 %1727 }
 0x319   :  { %v6316_v50 = vpop.permute.xlu1 %1731  ;;  %3813 = vmatprep.subr.bf16.mxu0 %v5529_v62  ;;  %v6321_v22 = vsel %vm7889_vm0, %v1728_v21, %v6183_v27  ;;  %v1756_v59 = vsel %vm7890_vm1, %v6036_v9, %v1728_v21  ;;  %v1839_v9 = vsel %vm134_vm5, %v6062_v13, %v1811_v36  ;;  %v6360_v36 = vsel %vm188_vm7, %v1977_v7, %v6233_v61 }
 0x31a   :  { %1656 = vrot.lane.b32.xlu0 %v5575_v52, %s4813_s3  ;;  %3854 = vmatprep.subr.bf16.mxu1 %v6321_v22  ;;  %vm7901_vm0 = vcmask 449536  }
 0x31b   :  { %2150 = vrot.lane.b32.xlu1 %v5573_v42, %s4818_s7  ;;  %3855 = vmatpush1.bf16.msra.mxu1 %v1756_v59  ;;  %vm7902_vm1 = vmmov %vm7901_vm0 }
 0x31c   :  { %3814 = vmatpush1.bf16.msra.mxu0 %v5507_v33  ;;  %v1894_v62 = vpop.permute.xlu0 %1893  ;;  %3856 = vmatprep.subr.bf16.mxu1 %v6332_v31 }
 0x31d   :  { %v6336_v14 = vpop.permute.xlu1 %1897  ;;  %3815 = vmatprep.subr.bf16.mxu0 %v1673_v49  ;;  %v6346_v1 = vsel %vm7891_vm2, %v1894_v62, %v6198_v60  ;;  %v1922_v13 = vsel %vm7893_vm4, %v6059_v40, %v1894_v62  ;;  %v2005_v40 = vsel %vm188_vm7, %v6080_v4, %v1977_v7  ;;  %vm7903_vm2 = vcmask 1039360  }
 0x31e   :  { %1737 = vrot.lane.b32.xlu0 %v5569_v55, %s4812_s26  ;;  %vm7904_vm4 = vmmov %vm7903_vm2 }
 0x31f   :  { %1654 = vrot.lane.b32.xlu1 %v5569_v55, %s4813_s3  ;;  %3857 = vmatpush1.bf16.msra.mxu1 %v1839_v9 }
 0x320   :  { %3816 = vmatpush1.bf16.msra.mxu0 %v6046_v41  ;;  %v2060_v33 = vpop.permute.xlu0 %2059  ;;  %3858 = vmatprep.subr.bf16.mxu1 %v6346_v1 }
 0x321   :  { %v6350_v49 = vpop.permute.xlu1 %2063  ;;  %3817 = vmatprep.subr.bf16.mxu0 %v1756_v59  ;;  %v6374_v21 = vsel %vm215_vm8, %v2060_v33, %v6215_v20  ;;  %v2088_v4 = vsel %vm215_vm8, %v6077_v0, %v2060_v33  ;;  %v2171_v0 = vsel %vm242_vm9, %v6098_v46, %v6307_v24 }
 0x322   :  { %1741 = vrot.lane.b32.xlu0 %v7892_v32, %s4812_s26 }
 0x323   :  { %1658 = vrot.lane.b32.xlu1 %v7892_v32, %s4813_s3  ;;  %3859 = vmatpush1.bf16.msra.mxu1 %v1922_v13 }
 0x324   :  { %3818 = vmatpush1.bf16.msra.mxu0 %v6057_v43  ;;  %v2226_v41 = vpop.permute.xlu0 %2225  ;;  %3860 = vmatprep.subr.bf16.mxu1 %v6360_v36 }
 0x325   :  { %v6364_v3 = vpop.permute.xlu1 %2229  ;;  %3819 = vmatprep.subr.bf16.mxu0 %v1839_v9  ;;  %v2254_v46 = vsel %vm269_vm10, %v6095_v51, %v2226_v41 }
 0x326   :  { %1822 = vrot.lane.b32.xlu0 %v5575_v52, %s4814_s27 }
 0x327   :  { %1739 = vrot.lane.b32.xlu1 %v5575_v52, %s4812_s26  ;;  %3861 = vmatpush1.bf16.msra.mxu1 %v2005_v40 }
 0x328   :  { %3820 = vmatpush1.bf16.msra.mxu0 %v6075_v57  ;;  %v6377_v43 = vpop.permute.xlu0 %1648  ;;  %3862 = vmatprep.subr.bf16.mxu1 %v6374_v21  ;;  %v6389_v57 = vsel %vm242_vm9, %v6307_v24, %v6247_v34 }
 0x329   :  { %v2309_v59 = vpop.permute.xlu1 %2308  ;;  %3821 = vmatprep.subr.bf16.mxu0 %v1922_v13 }
 0x32a   :  { %1903 = vrot.lane.b32.xlu0 %v5569_v55, %s4815_s28  ;;  %v2338_v24 = vsel %vm296_vm11, %v2309_v59, %v6245_v28  ;;  %v2337_v51 = vsel %vm296_vm11, %v6116_v37, %v2309_v59 }
 0x32b   :  { %1820 = vrot.lane.b32.xlu1 %v5569_v55, %s4814_s27  ;;  %3863 = vmatpush1.bf16.msra.mxu1 %v2088_v4 }
 0x32c   :  { %3822 = vmatpush1.bf16.msra.mxu0 %v6093_v56  ;;  %v6392_v7 = vpop.permute.xlu0 %1814  ;;  %3864 = vmatprep.subr.bf16.mxu1 %v6389_v57  ;;  %v6406_v56 = vsel %vm269_vm10, %v2226_v41, %v6231_v8 }
 0x32d   :  { %v6395_v62 = vpop.permute.xlu1 %2312  ;;  %3823 = vmatprep.subr.bf16.mxu0 %v2005_v40 }
 0x32e   :  { %1907 = vrot.lane.b32.xlu0 %v7892_v32, %s4815_s28 }
 0x32f   :  { %1824 = vrot.lane.b32.xlu1 %v7892_v32, %s4814_s27  ;;  %3865 = vmatpush1.bf16.msra.mxu1 %v2171_v0 }
 0x330   :  { %3824 = vmatpush1.bf16.msra.mxu0 %v6111_v6  ;;  %v6409_v9 = vpop.permute.xlu0 %1980  ;;  %3866 = vmatprep.subr.bf16.mxu1 %v6406_v56 }
 0x331   :  { %v2392_v33 = vpop.permute.xlu1 %2391  ;;  %3825 = vmatprep.subr.bf16.mxu0 %v2088_v4 }
 0x332   :  { %1988 = vrot.lane.b32.xlu0 %v5575_v52, %s4816_s29  ;;  %v2421_v41 = vsel %vm323_vm12, %v2392_v33, %v6259_v53  ;;  %v2420_v37 = vsel %vm323_vm12, %v6113_v5, %v2392_v33 }
 0x333   :  { %1905 = vrot.lane.b32.xlu1 %v5575_v52, %s4815_s28  ;;  %3867 = vmatpush1.bf16.msra.mxu1 %v2254_v46 }
 0x334   :  { %3826 = vmatpush1.bf16.msra.mxu0 %v6129_v26  ;;  %v6421_v6 = vpop.permute.xlu0 %2146  ;;  %3868 = vmatprep.subr.bf16.mxu1 %v2338_v24 }
 0x335   :  { %v6423_v13 = vpop.permute.xlu1 %2395  ;;  %3827 = vmatprep.subr.bf16.mxu0 %v2171_v0 }
 0x336   :  { %2069 = vrot.lane.b32.xlu0 %v5569_v55, %s4817_s30 }
 0x337   :  { %1986 = vrot.lane.b32.xlu1 %v5569_v55, %s4816_s29  ;;  %3869 = vmatpush1.bf16.msra.mxu1 %v2337_v51 }
 0x338   :  { %3828 = vmatpush1.bf16.msra.mxu0 %v6147_v10  ;;  %v6434_v26 = vpop.permute.xlu0 %1733  ;;  %3870 = vmatprep.subr.bf16.mxu1 %v2421_v41 }
 0x339   :  { %7894 = vst [vmem:[#allocation13_spill] sm:$0xff] %v6434_v26  ;;  %v2475_v40 = vpop.permute.xlu1 %2474  ;;  %3829 = vmatprep.subr.bf16.mxu0 %v2254_v46 }
 0x33a   :  { %2073 = vrot.lane.b32.xlu0 %v7892_v32, %s4817_s30  ;;  %v2504_v59 = vsel %vm7895_vm14, %v2475_v40, %v6278_v38  ;;  %v2503_v5 = vsel %vm7896_vm3, %v6134_v44, %v2475_v40  ;;  %vm7905_vm14 = vcmask 1031168  }
 0x33b   :  { %1990 = vrot.lane.b32.xlu1 %v7892_v32, %s4816_s29  ;;  %3871 = vmatpush1.bf16.msra.mxu1 %v2420_v37  ;;  %vm7908_vm3 = vmmov %vm7905_vm14 }
 0x33c   :  { %3830 = vmatpush1.bf16.msra.mxu0 %v6165_v39  ;;  %v6445_v10 = vpop.permute.xlu0 %1899  ;;  %3872 = vmatprep.subr.bf16.mxu1 %v2504_v59 }
 0x33d   :  { %v6447_v4 = vpop.permute.xlu1 %2478  ;;  %3932 = vmatprep.subr.bf16.mxu0 %v5535_v15 }
 0x33e   :  { %2154 = vrot.lane.b32.xlu0 %v5575_v52, %s4818_s7 }
 0x33f   :  { %2071 = vrot.lane.b32.xlu1 %v5575_v52, %s4817_s30  ;;  %3842 = vmatmul.mubr.bf16.vlgmr.msra.gmra.mrb[20].mxu0 %v5797_v2 }
 0x340   :  { %3873 = vmatpush1.bf16.msra.mxu1 %v2503_v5  ;;  %3933 = vmatpush1.bf16.msra.mxu0 %v5531_v29  ;;  %v6458_v39 = vpop.permute.xlu0 %2065 }
 0x341   :  { %7897 = vst [vmem:[#allocation22_spill] sm:$0xff] %v6458_v39  ;;  %v2558_v0 = vpop.permute.xlu1 %2557  ;;  %3964 = vmatprep.mubr.bf16.mxu0 %v5715_v25 }
 0x342   :  { %2235 = vrot.lane.b32.xlu0 %v5569_v55, %s4819_s8  ;;  %v2587_v33 = vsel %vm7898_vm6, %v2558_v0, %v6290_v58  ;;  %v2586_v46 = vsel %vm7899_vm13, %v6131_v23, %v2558_v0  ;;  %vm7911_vm6 = vcmask 441344  }
 0x343   :  { %2152 = vrot.lane.b32.xlu1 %v5569_v55, %s4818_s7  ;;  %3874 = vmatprep.subr.bf16.mxu1 %v2587_v33  ;;  %vm7912_vm13 = vmmov %vm7911_vm6 }
 0x344   :  { %3875 = vmatpush1.bf16.msra.mxu1 %v2586_v46  ;;  %v6469_v44 = vpop.permute.xlu0 %2231 }
 0x345   :  { %7900 = vst [vmem:[#allocation23_spill] sm:$0xff] %v6469_v44  ;;  %v6471_v24 = vpop.permute.xlu1 %2561 }
 0x346   :  { %2239 = vrot.lane.b32.xlu0 %v7892_v32, %s4819_s8 }
 0x347   :  { %2156 = vrot.lane.b32.xlu1 %v7892_v32, %s4818_s7 }
 0x348   :  { %v6477_v51 = vpop.permute.xlu0 %2314 }
 0x349   :  { %v2641_v41 = vpop.permute.xlu1 %2640 }
 0x34a   :  { %2318 = vrot.lane.b32.xlu0 %v5569_v55, %s4820_s9  ;;  %v2670_v23 = vsel %vm7901_vm0, %v2641_v41, %v6303_v30  ;;  %v2669_v40 = vsel %vm7902_vm1, %v6152_v48, %v2641_v41  ;;  %v6518_v41 = vsel %vm7904_vm4, %v6201_v11, %v6377_v43  ;;  %v6538_v11 = vsel %vm7908_vm3, %v6183_v27, %v6316_v50 }
 0x34b   :  { %2237 = vrot.lane.b32.xlu1 %v5575_v52, %s4819_s8  ;;  %3876 = vmatprep.subr.bf16.mxu1 %v2670_v23  ;;  %v6524_v23 = vsel %vm7905_vm14, %v6316_v50, %v6434_v26  ;;  %v6562_v50 = vsel %vm134_vm5, %v6218_v63, %v6392_v7  ;;  %vm7913_vm0 = vcmask 973824   ;;  %vm7922_vm3 = vcmask 384000  }
 0x34c   :  { %3877 = vmatpush1.bf16.msra.mxu1 %v2669_v40  ;;  %v6487_v37 = vpop.permute.xlu0 %2397  ;;  %7906 = vst [vmem:[#allocation24_spill] sm:$0xff] %v6524_v23  ;;  %vm7914_vm1 = vmmov %vm7913_vm0 }
 0x34d   :  { %v6489_v59 = vpop.permute.xlu1 %2644 }
 0x34e   :  { %2322 = vrot.lane.b32.xlu0 %v7892_v32, %s4820_s9 }
 0x34f   :  { %2316 = vrot.lane.b32.xlu1 %v5573_v42, %s4820_s9 }
 0x350   :  { %v6495_v5 = vpop.permute.xlu0 %2480 }
 0x351   :  { %v2724_v0 = vpop.permute.xlu1 %2723 }
 0x352   :  { %2401 = vrot.lane.b32.xlu0 %v5569_v55, %s4821_s10  ;;  %v2752_v27 = vsel %vm7912_vm13, %v6149_v17, %v2724_v0  ;;  %v6582_v17 = vsel %vm7914_vm1, %v6198_v60, %v6336_v14  ;;  %v6602_v60 = vsel %vm188_vm7, %v6233_v61, %v6409_v9  ;;  %vm7924_vm13 = vcmask 506880  }
 0x353   :  { %2320 = vrot.lane.b32.xlu1 %v5575_v52, %s4820_s9  ;;  %vm7926_vm1 = vcmask 457728  }
 0x354   :  { %v6501_v48 = vpop.permute.xlu0 %2563 }
 0x355   :  { %v6503_v33 = vpop.permute.xlu1 %1650 }
 0x356   :  { %2405 = vrot.lane.b32.xlu0 %v7892_v32, %s4821_s10  ;;  %v6510_v46 = vsel %vm7903_vm2, %v6377_v43, %v6503_v33  ;;  %vm7917_vm2 = vcmask 392192  }
 0x357   :  { %2399 = vrot.lane.b32.xlu1 %v5573_v42, %s4821_s10  ;;  %3934 = vmatprep.subr.bf16.mxu0 %v6510_v46  ;;  %vm7918_vm4 = vmmov %vm7917_vm2 }
 0x358   :  { %3935 = vmatpush1.bf16.msra.mxu0 %v6518_v41  ;;  %v6526_v40 = vpop.permute.xlu0 %2646  ;;  %vm7921_vm14 = vmmov %vm7917_vm2 }
 0x359   :  { %v6528_v25 = vpop.permute.xlu1 %1816  ;;  %3936 = vmatprep.subr.bf16.mxu0 %v6524_v23 }
 0x35a   :  { %7907 = vst [vmem:[#allocation25_spill] sm:$0xff] %v6528_v25  ;;  %2484 = vrot.lane.b32.xlu0 %v5569_v55, %s4822_s11  ;;  %v6544_v43 = vsel %vm134_vm5, %v6392_v7, %v6528_v25 }
 0x35b   :  { %2403 = vrot.lane.b32.xlu1 %v5575_v52, %s4821_s10  ;;  %7909 = vst [vmem:[#allocation26_spill] sm:$0xff] %v6544_v43 }
 0x35c   :  { %3937 = vmatpush1.bf16.msra.mxu0 %v6538_v11  ;;  %v6546_v2 = vpop.permute.xlu0 %2725 }
 0x35d   :  { %v6548_v23 = vpop.permute.xlu1 %1982  ;;  %3938 = vmatprep.subr.bf16.mxu0 %v6544_v43  ;;  %v2753_v26 = vsel %vm7911_vm6, %v2724_v0, %v6546_v2  ;;  %v6568_v43 = vsel %vm7913_vm0, %v6336_v14, %v6445_v10  ;;  %v6608_v14 = vsel %vm215_vm8, %v6350_v49, %v6458_v39  ;;  %vm7923_vm6 = vmmov %vm7922_vm3 }
 0x35e   :  { %7910 = vst [vmem:[#allocation27_spill] sm:$0xff] %v6548_v23  ;;  %2488 = vrot.lane.b32.xlu0 %v7892_v32, %s4822_s11  ;;  %3878 = vmatprep.subr.bf16.mxu1 %v2753_v26  ;;  %v6588_v63 = vsel %vm188_vm7, %v6409_v9, %v6548_v23  ;;  %7916 = vst [vmem:[#allocation29_spill] sm:$0xff] %v6608_v14  ;;  %v6624_v9 = vsel %vm215_vm8, %v6215_v20, %v6350_v49 }
 0x35f   :  { %2482 = vrot.lane.b32.xlu1 %v5573_v42, %s4822_s11  ;;  %3879 = vmatpush1.bf16.msra.mxu1 %v2752_v27  ;;  %7915 = vst [vmem:[#allocation28_spill] sm:$0xff] %v6588_v63  ;;  %v6644_v20 = vsel %vm242_vm9, %v6247_v34, %v6421_v6  ;;  %v6651_v49 = vsel %vm269_vm10, %v6364_v3, %v6469_v44  ;;  %vm7925_vm0 = vmmov %vm7924_vm13 }
 0x360   :  { %3939 = vmatpush1.bf16.msra.mxu0 %v6562_v50  ;;  %v6570_v26 = vpop.permute.xlu0 %2729  ;;  %7920 = vst [vmem:[#allocation31_spill] sm:$0xff] %v6651_v49 }
 0x361   :  { %v6572_v25 = vpop.permute.xlu1 %2148  ;;  %3940 = vmatprep.subr.bf16.mxu0 %v6568_v43 }
 0x362   :  { %2567 = vrot.lane.b32.xlu0 %v5569_v55, %s4823_s12 }
 0x363   :  { %2486 = vrot.lane.b32.xlu1 %v5575_v52, %s4822_s11 }
 0x364   :  { %3941 = vmatpush1.bf16.msra.mxu0 %v6582_v17  ;;  %v6590_v7 = vpop.permute.xlu0 %2808 }
 0x365   :  { %v6592_v0 = vpop.permute.xlu1 %2727  ;;  %3942 = vmatprep.subr.bf16.mxu0 %v6588_v63 }
 0x366   :  { %2571 = vrot.lane.b32.xlu0 %v7892_v32, %s4823_s12 }
 0x367   :  { %2565 = vrot.lane.b32.xlu1 %v5573_v42, %s4823_s12 }
 0x368   :  { %3943 = vmatpush1.bf16.msra.mxu0 %v6602_v60  ;;  %v6610_v27 = vpop.permute.xlu0 %2812 }
 0x369   :  { %v2807_v63 = vpop.permute.xlu1 %2806  ;;  %3944 = vmatprep.subr.bf16.mxu0 %v6608_v14  ;;  %v6630_v14 = vsel %vm242_vm9, %v6421_v6, %v6572_v25 }
 0x36a   :  { %2650 = vrot.lane.b32.xlu0 %v5569_v55, %s4824_s13  ;;  %v2836_v23 = vsel %vm7917_vm2, %v2807_v63, %v6590_v7  ;;  %v2835_v61 = vsel %vm7918_vm4, %v6170_v54, %v2807_v63  ;;  %7919 = vst [vmem:[#allocation30_spill] sm:$0xff] %v6630_v14  ;;  %vm7927_vm2 = vmmov %vm7926_vm1  ;;  %vm7928_vm4 = vcmask 449536  }
 0x36b   :  { %2569 = vrot.lane.b32.xlu1 %v5575_v52, %s4823_s12  ;;  %3880 = vmatprep.subr.bf16.mxu1 %v2836_v23 }
 0x36c   :  { %3881 = vmatpush1.bf16.msra.mxu1 %v2835_v61  ;;  %3945 = vmatpush1.bf16.msra.mxu0 %v6624_v9  ;;  %v6632_v39 = vpop.permute.xlu0 %2891  ;;  %v6669_v61 = vsel %vm269_vm10, %v6231_v8, %v6364_v3  ;;  %v2423_v8 = vsel %vm323_vm12, %v6423_v13, %v6487_v37 }
 0x36d   :  { %v6634_v54 = vpop.permute.xlu1 %2810  ;;  %3946 = vmatprep.subr.bf16.mxu0 %v6630_v14 }
 0x36e   :  { %2654 = vrot.lane.b32.xlu0 %v7892_v32, %s4824_s13 }
 0x36f   :  { %2648 = vrot.lane.b32.xlu1 %v5573_v42, %s4824_s13  ;;  %3883 = vmatmul.mubr.bf16.vlgmr.msra.gmra.mrb[20].mxu1 %v5707_v18 }
 0x370   :  { %3947 = vmatpush1.bf16.msra.mxu0 %v6644_v20  ;;  %v6653_v23 = vpop.permute.xlu0 %2895  ;;  %4561 = vmatprep.mubr.msk.bf16.mxu1 %vm7921_vm14, %v6011_v45  ;;  %vm7929_vm14 = vmmov %vm7928_vm4 }
 0x371   :  { %v2890_v63 = vpop.permute.xlu1 %2889  ;;  %3948 = vmatprep.subr.bf16.mxu0 %v6651_v49  ;;  %v2340_v49 = vsel %vm296_vm11, %v6395_v62, %v6477_v51 }
 0x372   :  { %2733 = vrot.lane.b32.xlu0 %v5569_v55, %s4825_s14  ;;  %v2919_v34 = vsel %vm7922_vm3, %v2890_v63, %v6632_v39  ;;  %v2918_v6 = vsel %vm7923_vm6, %v6167_v47, %v2890_v63  ;;  %v2339_v47 = vsel %vm296_vm11, %v6245_v28, %v6395_v62  ;;  %v2422_v28 = vsel %vm323_vm12, %v6259_v53, %v6423_v13 }
 0x373   :  { %2652 = vrot.lane.b32.xlu1 %v5575_v52, %s4824_s13  ;;  %3891 = vmatprep.subr.bf16.mxu1 %v2919_v34  ;;  %v2506_v62 = vsel %vm7924_vm13, %v6447_v4, %v6495_v5  ;;  %v2589_v53 = vsel %vm7926_vm1, %v6471_v24, %v6501_v48  ;;  %vm7930_vm3 = vcmask 441344   ;;  %vm7932_vm13 = vcmask 392192  }
 0x374   :  { %3892 = vmatpush1.bf16.msra.mxu1 %v2918_v6  ;;  %3949 = vmatpush1.bf16.msra.mxu0 %v6669_v61  ;;  %v6675_v44 = vpop.permute.xlu0 %2974  ;;  %vm7931_vm6 = vmmov %vm7930_vm3  ;;  %vm7934_vm1 = vcmask 384000  }
 0x375   :  { %v6677_v14 = vpop.permute.xlu1 %2893  ;;  %3950 = vmatprep.subr.bf16.mxu0 %v2340_v49 }
 0x376   :  { %2737 = vrot.lane.b32.xlu0 %v7892_v32, %s4825_s14 }
 0x377   :  { %2731 = vrot.lane.b32.xlu1 %v5573_v42, %s4825_s14 }
 0x378   :  { %3951 = vmatpush1.bf16.msra.mxu0 %v2339_v47  ;;  %v6689_v3 = vpop.permute.xlu0 %2978 }
 0x379   :  { %v2973_v63 = vpop.permute.xlu1 %2972  ;;  %3952 = vmatprep.subr.bf16.mxu0 %v2423_v8  ;;  %v7935_v8 = vld [vmem:[#allocation15_spill] sm:$0xff] }
 0x37a   :  { %2816 = vrot.lane.b32.xlu0 %v5569_v55, %s4826_s15  ;;  %v3002_v49 = vsel %vm512_vm15, %v2973_v63, %v6675_v44  ;;  %v3001_v34 = vsel %vm512_vm15, %v6186_v19, %v2973_v63  ;;  %v2505_v19 = vsel %vm7925_vm0, %v6278_v38, %v6447_v4  ;;  %v2672_v38 = vsel %vm7928_vm4, %v6489_v59, %v6526_v40  ;;  %vm7933_vm0 = vmmov %vm7932_vm13  ;;  %v7944_v63 = vld [vmem:[#allocation25_spill] sm:$0xff] }
 0x37b   :  { %2735 = vrot.lane.b32.xlu1 %v5575_v52, %s4825_s14  ;;  %3893 = vmatprep.subr.bf16.mxu1 %v3002_v49  ;;  %vm7937_vm4 = vmmov %vm7933_vm0 }
 0x37c   :  { %3894 = vmatpush1.bf16.msra.mxu1 %v3001_v34  ;;  %3953 = vmatpush1.bf16.msra.mxu0 %v2422_v28  ;;  %v6705_v6 = vpop.permute.xlu0 %1735 }
 0x37d   :  { %v6707_v47 = vpop.permute.xlu1 %2976  ;;  %3954 = vmatprep.subr.bf16.mxu0 %v2506_v62  ;;  %3895 = vmatprep.subr.bf16.mxu1 %v5531_v29 }
 0x37e   :  { %2820 = vrot.lane.b32.xlu0 %v7892_v32, %s4826_s15 }
 0x37f   :  { %2814 = vrot.lane.b32.xlu1 %v5573_v42, %s4826_s15 }
 0x380   :  { %3896 = vmatpush1.bf16.msra.mxu1 %v5533_v35  ;;  %3955 = vmatpush1.bf16.msra.mxu0 %v2505_v19  ;;  %v6721_v13 = vpop.permute.xlu0 %1901  ;;  %v2588_v35 = vsel %vm7927_vm2, %v6290_v58, %v6471_v24  ;;  %v2755_v58 = vsel %vm7930_vm3, %v6592_v0, %v6570_v26  ;;  %vm7936_vm2 = vmmov %vm7934_vm1  ;;  %vm7940_vm3 = vcmask 1031168   ;;  %v7948_v19 = vld [vmem:[#allocation26_spill] sm:$0xff] }
 0x381   :  { %v6723_v29 = vpop.permute.xlu1 %1652  ;;  %3956 = vmatprep.subr.bf16.mxu0 %v2589_v53  ;;  %3897 = vmatprep.subr.bf16.mxu1 %v6518_v41 }
 0x382   :  { %2899 = vrot.lane.b32.xlu0 %v5569_v55, %s4827_s18 }
 0x383   :  { %2818 = vrot.lane.b32.xlu1 %v5575_v52, %s4826_s15 }
 0x384   :  { %3898 = vmatpush1.bf16.msra.mxu1 %v6265_v16  ;;  %3957 = vmatpush1.bf16.msra.mxu0 %v2588_v35  ;;  %v6737_v4 = vpop.permute.xlu0 %2067  ;;  %v2671_v16 = vsel %vm7929_vm14, %v6303_v30, %v6489_v59  ;;  %v2754_v30 = vsel %vm7931_vm6, %v6546_v2, %v6592_v0  ;;  %v2837_v2 = vsel %vm7933_vm0, %v6590_v7, %v6634_v54  ;;  %vm7938_vm14 = vcmask 1039360   ;;  %vm7950_vm0 = vmmov %vm7940_vm3 }
 0x385   :  { %v6739_v41 = vpop.permute.xlu1 %1818  ;;  %3958 = vmatprep.subr.bf16.mxu0 %v2672_v38  ;;  %3899 = vmatprep.subr.bf16.mxu1 %v6538_v11  ;;  %v3004_v7 = vsel %vm512_vm15, %v6707_v47, %v6689_v3  ;;  %vm7945_vm6 = vmmov %vm7938_vm14 }
 0x386   :  { %2903 = vrot.lane.b32.xlu0 %v7892_v32, %s4827_s18  ;;  %v1843_v49 = vsel %vm134_vm5, %v7944_v63, %v6739_v41 }
 0x387   :  { %2897 = vrot.lane.b32.xlu1 %v5573_v42, %s4827_s18 }
 0x388   :  { %3900 = vmatpush1.bf16.msra.mxu1 %v6321_v22  ;;  %3959 = vmatpush1.bf16.msra.mxu0 %v2671_v16  ;;  %v6753_v24 = vpop.permute.xlu0 %2233  ;;  %v2838_v22 = vsel %vm7932_vm13, %v6634_v54, %v6610_v27  ;;  %vm7949_vm13 = vcmask 973824   ;;  %v7951_v16 = vld [vmem:[#allocation17_spill] sm:$0xff] }
 0x389   :  { %v6755_v11 = vpop.permute.xlu1 %1984  ;;  %3960 = vmatprep.subr.bf16.mxu0 %v2755_v58  ;;  %3901 = vmatprep.subr.bf16.mxu1 %v6562_v50  ;;  %v1926_v53 = vsel %vm7949_vm13, %v6445_v10, %v6721_v13  ;;  %v7952_v10 = vld [vmem:[#allocation27_spill] sm:$0xff] }
 0x38a   :  { %2982 = vrot.lane.b32.xlu0 %v5569_v55, %s4828_s0  ;;  %v2009_v58 = vsel %vm188_vm7, %v7952_v10, %v6755_v11 }
 0x38b   :  { %2901 = vrot.lane.b32.xlu1 %v5575_v52, %s4827_s18 }
 0x38c   :  { %3902 = vmatpush1.bf16.msra.mxu1 %v6332_v31  ;;  %3961 = vmatpush1.bf16.msra.mxu0 %v2754_v30  ;;  %v6769_v59 = vpop.permute.xlu0 %1656  ;;  %v2921_v31 = vsel %vm7934_vm1, %v6677_v14, %v6653_v23  ;;  %vm7955_vm1 = vmmov %vm7949_vm13 }
 0x38d   :  { %v6771_v50 = vpop.permute.xlu1 %2150  ;;  %3962 = vmatprep.subr.bf16.mxu0 %v2838_v22  ;;  %3903 = vmatprep.subr.bf16.mxu1 %v6582_v17  ;;  %vm7968_vm13 = vmmov %vm7955_vm1 }
 0x38e   :  { %2986 = vrot.lane.b32.xlu0 %v7892_v32, %s4828_s0 }
 0x38f   :  { %2980 = vrot.lane.b32.xlu1 %v5573_v42, %s4828_s0 }
 0x390   :  { %3904 = vmatpush1.bf16.msra.mxu1 %v6346_v1  ;;  %3963 = vmatpush1.bf16.msra.mxu0 %v2837_v2  ;;  %v6785_v0 = vpop.permute.xlu0 %1737  ;;  %v2920_v1 = vsel %vm7936_vm2, %v6632_v39, %v6677_v14  ;;  %v7954_v2 = vld [vmem:[#allocation22_spill] sm:$0xff]  ;;  %vm7961_vm2 = vmmov %vm7945_vm6 }
 0x391   :  { %v6787_v17 = vpop.permute.xlu1 %1654  ;;  %3973 = vmatprep.subr.bf16.mxu0 %v2921_v31  ;;  %3905 = vmatprep.subr.bf16.mxu1 %v6602_v60  ;;  %v6885_v35 = vsel %vm7950_vm0, %v6705_v6, %v6785_v0  ;;  %v2092_v31 = vsel %vm215_vm8, %v7954_v2, %v6737_v4 }
 0x392   :  { %1743 = vrot.lane.b32.xlu0 %v7935_v8, %s4812_s26  ;;  %v6866_v28 = vsel %vm7945_vm6, %v6723_v29, %v6787_v17  ;;  %vm7967_vm6 = vmmov %vm7955_vm1 }
 0x393   :  { %2984 = vrot.lane.b32.xlu1 %v5575_v52, %s4828_s0  ;;  %3965 = vmatmul.mubr.bf16.vlgmr.msra.gmra.mrb[24].mxu0 %v5707_v18 }
 0x394   :  { %3906 = vmatpush1.bf16.msra.mxu1 %v6360_v36  ;;  %3974 = vmatpush1.bf16.msra.mxu0 %v2920_v1  ;;  %v6802_v60 = vpop.permute.xlu0 %1741  ;;  %v3003_v36 = vsel %vm512_vm15, %v6675_v44, %v6707_v47  ;;  %v7946_v47 = vld [vmem:[#allocation14_spill] sm:$0xff] }
 0x395   :  { %v6804_v54 = vpop.permute.xlu1 %1658  ;;  %3975 = vmatprep.subr.bf16.mxu0 %v3004_v7  ;;  %3907 = vmatprep.subr.bf16.mxu1 %v6624_v9 }
 0x396   :  { %1909 = vrot.lane.b32.xlu0 %v7935_v8, %s4815_s28  ;;  %4562 = vmatprep.mubr.msk.bf16.mxu0 %vm7937_vm4, %v6011_v45  ;;  %vm7964_vm4 = vmmov %vm7961_vm2 }
 0x397   :  { %1660 = vrot.lane.b32.xlu1 %v7935_v8, %s4813_s3 }
 0x398   :  { %3908 = vmatpush1.bf16.msra.mxu1 %v6374_v21  ;;  %3976 = vmatpush1.bf16.msra.mxu0 %v3003_v36  ;;  %v6817_v39 = vpop.permute.xlu0 %1822  ;;  %v1677_v21 = vsel %vm7938_vm14, %v6503_v33, %v6723_v29  ;;  %v7956_v36 = vld [vmem:[#allocation29_spill] sm:$0xff]  ;;  %vm7965_vm14 = vmmov %vm7950_vm0 }
 0x399   :  { %v6819_v14 = vpop.permute.xlu1 %1739  ;;  %3977 = vmatprep.subr.bf16.mxu0 %v5567_v12  ;;  %3909 = vmatprep.subr.bf16.mxu1 %v6644_v20 }
 0x39a   :  { %2075 = vrot.lane.b32.xlu0 %v7935_v8, %s4817_s30 }
 0x39b   :  { %1826 = vrot.lane.b32.xlu1 %v7935_v8, %s4814_s27 }
 0x39c   :  { %3910 = vmatpush1.bf16.msra.mxu1 %v6389_v57  ;;  %3978 = vmatpush1.bf16.msra.mxu0 %v5535_v15  ;;  %v6832_v44 = vpop.permute.xlu0 %1903  ;;  %v7939_v15 = vld [vmem:[#allocation13_spill] sm:$0xff] }
 0x39d   :  { %v6834_v9 = vpop.permute.xlu1 %1820  ;;  %3979 = vmatprep.subr.bf16.mxu0 %v1677_v21  ;;  %3911 = vmatprep.subr.bf16.mxu1 %v6669_v61  ;;  %v1760_v57 = vsel %vm7940_vm3, %v7939_v15, %v6705_v6  ;;  %v7941_v61 = vld [vmem:[#allocation16_spill] sm:$0xff]  ;;  %v6921_v1 = vsel %vm7955_vm1, %v6721_v13, %v6832_v44  ;;  %vm7966_vm3 = vmmov %vm7950_vm0  ;;  %vm7971_vm0 = vcmask 506880  }
 0x39e   :  { %2241 = vrot.lane.b32.xlu0 %v7935_v8, %s4819_s8  ;;  %v6903_v30 = vsel %vm134_vm5, %v6739_v41, %v6834_v9  ;;  %vm7972_vm1 = vmmov %vm7971_vm0 }
 0x39f   :  { %1992 = vrot.lane.b32.xlu1 %v7935_v8, %s4816_s29 }
 0x3a0   :  { %3912 = vmatpush1.bf16.msra.mxu1 %v6406_v56  ;;  %3980 = vmatpush1.bf16.msra.mxu0 %v6510_v46  ;;  %v6846_v33 = vpop.permute.xlu0 %1907  ;;  %v7942_v56 = vld [vmem:[#allocation21_spill] sm:$0xff]  ;;  %v7943_v46 = vld [vmem:[#allocation24_spill] sm:$0xff] }
 0x3a1   :  { %v6848_v20 = vpop.permute.xlu1 %1824  ;;  %3981 = vmatprep.subr.bf16.mxu0 %v1760_v57  ;;  %4014 = vmatprep.subr.bf16.mxu1 %v5573_v42 }
 0x3a2   :  { %1664 = vrot.lane.b32.xlu0 %v7941_v61, %s4813_s3 }
 0x3a3   :  { %2158 = vrot.lane.b32.xlu1 %v7935_v8, %s4818_s7  ;;  %3924 = vmatmul.mubr.bf16.vlgmr.msra.gmra.mrb[20].mxu1 %v7942_v56 }
 0x3a4   :  { %3982 = vmatpush1.bf16.msra.mxu0 %v7943_v46  ;;  %4015 = vmatpush1.bf16.msra.mxu1 %v5567_v12  ;;  %v6861_v34 = vpop.permute.xlu0 %1988  ;;  %v7947_v12 = vld [vmem:[#allocation20_spill] sm:$0xff]  ;;  %v7957_v46 = vld [vmem:[#allocation30_spill] sm:$0xff] }
 0x3a5   :  { %v6868_v62 = vpop.permute.xlu1 %1905  ;;  %3983 = vmatprep.subr.bf16.mxu0 %v1843_v49  ;;  %4016 = vmatprep.subr.bf16.mxu1 %v6866_v28 }
 0x3a6   :  { %1745 = vrot.lane.b32.xlu0 %v7946_v47, %s4812_s26  ;;  %4046 = vmatprep.mubr.bf16.mxu1 %v7947_v12 }
 0x3a7   :  { %1662 = vrot.lane.b32.xlu1 %v7946_v47, %s4813_s3 }
 0x3a8   :  { %3984 = vmatpush1.bf16.msra.mxu0 %v7948_v19  ;;  %4017 = vmatpush1.bf16.msra.mxu1 %v1677_v21  ;;  %v6880_v29 = vpop.permute.xlu0 %2069  ;;  %v2175_v21 = vsel %vm242_vm9, %v6572_v25, %v6771_v50  ;;  %v7958_v25 = vld [vmem:[#allocation23_spill] sm:$0xff] }
 0x3a9   :  { %v6887_v38 = vpop.permute.xlu1 %1986  ;;  %3985 = vmatprep.subr.bf16.mxu0 %v1926_v53  ;;  %4018 = vmatprep.subr.bf16.mxu1 %v6885_v35  ;;  %v2258_v63 = vsel %vm269_vm10, %v7958_v25, %v6753_v24 }
 0x3aa   :  { %1749 = vrot.lane.b32.xlu0 %v7951_v16, %s4812_s26  ;;  %v6939_v15 = vsel %vm188_vm7, %v6755_v11, %v6887_v38 }
 0x3ab   :  { %1666 = vrot.lane.b32.xlu1 %v7951_v16, %s4813_s3 }
 0x3ac   :  { %3986 = vmatpush1.bf16.msra.mxu0 %v6568_v43  ;;  %4019 = vmatpush1.bf16.msra.mxu1 %v1760_v57  ;;  %v6898_v6 = vpop.permute.xlu0 %2073  ;;  %v7953_v43 = vld [vmem:[#allocation28_spill] sm:$0xff] }
 0x3ad   :  { %v6905_v22 = vpop.permute.xlu1 %1990  ;;  %3987 = vmatprep.subr.bf16.mxu0 %v2009_v58  ;;  %4020 = vmatprep.subr.bf16.mxu1 %v6903_v30 }
 0x3ae   :  { %1830 = vrot.lane.b32.xlu0 %v7941_v61, %s4814_s27 }
 0x3af   :  { %1747 = vrot.lane.b32.xlu1 %v7941_v61, %s4812_s26 }
 0x3b0   :  { %3988 = vmatpush1.bf16.msra.mxu0 %v7953_v43  ;;  %4021 = vmatpush1.bf16.msra.mxu1 %v1843_v49  ;;  %v6916_v41 = vpop.permute.xlu0 %2154  ;;  %v6957_v49 = vsel %vm215_vm8, %v6737_v4, %v6880_v29 }
 0x3b1   :  { %v6923_v7 = vpop.permute.xlu1 %2071  ;;  %3989 = vmatprep.subr.bf16.mxu0 %v2092_v31  ;;  %4022 = vmatprep.subr.bf16.mxu1 %v6921_v1 }
 0x3b2   :  { %1911 = vrot.lane.b32.xlu0 %v7946_v47, %s4815_s28 }
 0x3b3   :  { %1828 = vrot.lane.b32.xlu1 %v7946_v47, %s4814_s27 }
 0x3b4   :  { %3990 = vmatpush1.bf16.msra.mxu0 %v7956_v36  ;;  %4023 = vmatpush1.bf16.msra.mxu1 %v1926_v53  ;;  %v6934_v13 = vpop.permute.xlu0 %2235  ;;  %v7960_v53 = vld [vmem:[#allocation31_spill] sm:$0xff]  ;;  %v7006_v36 = vsel %vm7964_vm4, %v6787_v17, %v6769_v59  ;;  %v7030_v17 = vsel %vm7966_vm3, %v6785_v0, %v6819_v14 }
 0x3b5   :  { %v6941_v57 = vpop.permute.xlu1 %2152  ;;  %3991 = vmatprep.subr.bf16.mxu0 %v2175_v21  ;;  %4024 = vmatprep.subr.bf16.mxu1 %v6939_v15  ;;  %v6994_v2 = vsel %vm269_vm10, %v6753_v24, %v6934_v13  ;;  %v7012_v24 = vsel %vm7965_vm14, %v6819_v14, %v6802_v60  ;;  %v7052_v14 = vsel %vm134_vm5, %v6834_v9, %v6817_v39  ;;  %vm7976_vm14 = vcmask 449536  }
 0x3b6   :  { %1915 = vrot.lane.b32.xlu0 %v7951_v16, %s4815_s28  ;;  %v6972_v4 = vsel %vm242_vm9, %v6771_v50, %v6941_v57  ;;  %v6987_v50 = vsel %vm7961_vm2, %v6769_v59, %v6804_v54  ;;  %7963 = vst [vmem:[#allocation16_spill] sm:$0xff] %v6994_v2  ;;  %vm7974_vm2 = vcmask 457728   ;;  %vm7977_vm3 = vmmov %vm7976_vm14 }
 0x3b7   :  { %1832 = vrot.lane.b32.xlu1 %v7951_v16, %s4814_s27  ;;  %vm7975_vm4 = vmmov %vm7974_vm2 }
 0x3b8   :  { %3992 = vmatpush1.bf16.msra.mxu0 %v7957_v46  ;;  %4025 = vmatpush1.bf16.msra.mxu1 %v2009_v58  ;;  %v6952_v11 = vpop.permute.xlu0 %2239 }
 0x3b9   :  { %v6959_v19 = vpop.permute.xlu1 %2156  ;;  %3993 = vmatprep.subr.bf16.mxu0 %v2258_v63  ;;  %4026 = vmatprep.subr.bf16.mxu1 %v6957_v49 }
 0x3ba   :  { %7959 = vst [vmem:[#allocation15_spill] sm:$0xff] %v6959_v19  ;;  %1996 = vrot.lane.b32.xlu0 %v7941_v61, %s4816_s29 }
 0x3bb   :  { %1913 = vrot.lane.b32.xlu1 %v7941_v61, %s4815_s28 }
 0x3bc   :  { %3994 = vmatpush1.bf16.msra.mxu0 %v7960_v53  ;;  %4027 = vmatpush1.bf16.msra.mxu1 %v2092_v31  ;;  %v6967_v10 = vpop.permute.xlu0 %2318 }
 0x3bd   :  { %v6974_v58 = vpop.permute.xlu1 %2237  ;;  %4096 = vmatprep.subr.bf16.mxu0 %v5575_v52  ;;  %4028 = vmatprep.subr.bf16.mxu1 %v6972_v4 }
 0x3be   :  { %2077 = vrot.lane.b32.xlu0 %v7946_v47, %s4817_s30 }
 0x3bf   :  { %1994 = vrot.lane.b32.xlu1 %v7946_v47, %s4816_s29  ;;  %4006 = vmatmul.mubr.bf16.vlgmr.msra.gmra.mrb[24].mxu0 %v7942_v56 }
 0x3c0   :  { %4029 = vmatpush1.bf16.msra.mxu1 %v2175_v21  ;;  %4097 = vmatpush1.bf16.msra.mxu0 %v5569_v55  ;;  %v6989_v43 = vpop.permute.xlu0 %2322 }
 0x3c1   :  { %7962 = vst [vmem:[#allocation13_spill] sm:$0xff] %v6989_v43  ;;  %v2317_v31 = vpop.permute.xlu1 %2316  ;;  %4098 = vmatprep.subr.bf16.mxu0 %v6987_v50  ;;  %4030 = vmatprep.subr.bf16.mxu1 %v6994_v2 }
 0x3c2   :  { %2081 = vrot.lane.b32.xlu0 %v7951_v16, %s4817_s30  ;;  %4128 = vmatprep.mubr.bf16.mxu0 %v7947_v12  ;;  %v2342_v46 = vsel %vm296_vm11, %v2317_v31, %v6967_v10  ;;  %v2341_v59 = vsel %vm296_vm11, %v6477_v51, %v2317_v31  ;;  %v7058_v31 = vsel %vm7967_vm6, %v6868_v62, %v6846_v33  ;;  %vm7978_vm6 = vmmov %vm7971_vm0 }
 0x3c3   :  { %1998 = vrot.lane.b32.xlu1 %v7951_v16, %s4816_s29 }
 0x3c4   :  { %4031 = vmatpush1.bf16.msra.mxu1 %v2258_v63  ;;  %4099 = vmatpush1.bf16.msra.mxu0 %v7006_v36  ;;  %v7014_v21 = vpop.permute.xlu0 %2401  ;;  %v7036_v63 = vsel %vm134_vm5, %v6817_v39, %v6848_v20  ;;  %v7072_v39 = vsel %vm7968_vm13, %v6832_v44, %v6868_v62  ;;  %vm7979_vm13 = vcmask 441344  }
 0x3c5   :  { %v7018_v25 = vpop.permute.xlu1 %2320  ;;  %4100 = vmatprep.subr.bf16.mxu0 %v7012_v24  ;;  %4032 = vmatprep.subr.bf16.mxu1 %v2342_v46 }
 0x3c6   :  { %2162 = vrot.lane.b32.xlu0 %v7941_v61, %s4818_s7 }
 0x3c7   :  { %2079 = vrot.lane.b32.xlu1 %v7941_v61, %s4817_s30 }
 0x3c8   :  { %4033 = vmatpush1.bf16.msra.mxu1 %v2341_v59  ;;  %4101 = vmatpush1.bf16.msra.mxu0 %v7030_v17  ;;  %v7038_v53 = vpop.permute.xlu0 %2405 }
 0x3c9   :  { %v2400_v46 = vpop.permute.xlu1 %2399  ;;  %4102 = vmatprep.subr.bf16.mxu0 %v7036_v63 }
 0x3ca   :  { %2243 = vrot.lane.b32.xlu0 %v7946_v47, %s4819_s8  ;;  %v2425_v51 = vsel %vm323_vm12, %v2400_v46, %v7014_v21  ;;  %v2424_v0 = vsel %vm323_vm12, %v6487_v37, %v2400_v46  ;;  %v7080_v46 = vsel %vm188_vm7, %v6861_v34, %v6905_v22 }
 0x3cb   :  { %2160 = vrot.lane.b32.xlu1 %v7946_v47, %s4818_s7  ;;  %4034 = vmatprep.subr.bf16.mxu1 %v2425_v51 }
 0x3cc   :  { %4035 = vmatpush1.bf16.msra.mxu1 %v2424_v0  ;;  %4103 = vmatpush1.bf16.msra.mxu0 %v7052_v14  ;;  %v7060_v59 = vpop.permute.xlu0 %2484 }
 0x3cd   :  { %v7062_v37 = vpop.permute.xlu1 %2403  ;;  %4104 = vmatprep.subr.bf16.mxu0 %v7058_v31 }
 0x3ce   :  { %2247 = vrot.lane.b32.xlu0 %v7951_v16, %s4819_s8 }
 0x3cf   :  { %2164 = vrot.lane.b32.xlu1 %v7951_v16, %s4818_s7  ;;  %v7074_v9 = vpop.f32.mrb[16].mxu1 }
 0x3d0   :  { %7969 = vst [vmem:[#allocation24_spill] sm:$0xff] %v7074_v9  ;;  %4105 = vmatpush1.bf16.msra.mxu0 %v7072_v39  ;;  %v7082_v51 = vpop.permute.xlu0 %2488  ;;  %v7084_v0 = vpop.f32.mrb[17].mxu1 }
 0x3d1   :  { %7970 = vst [vmem:[#allocation25_spill] sm:$0xff] %v7084_v0  ;;  %v2483_v12 = vpop.permute.xlu1 %2482  ;;  %4106 = vmatprep.subr.bf16.mxu0 %v7080_v46  ;;  %v3765_v56 = vpop.f32.mrb[18].mxu1  ;;  %v7098_v0 = vsel %vm188_vm7, %v6887_v38, %v6861_v34  ;;  %v7116_v34 = vsel %vm215_vm8, %v6880_v29, %v6923_v7 }
 0x3d2   :  { %2326 = vrot.lane.b32.xlu0 %v7946_v47, %s4820_s9  ;;  %v2508_v44 = vsel %vm7971_vm0, %v2483_v12, %v7060_v59  ;;  %v2507_v62 = vsel %vm7972_vm1, %v6495_v5, %v2483_v12  ;;  %v3766_v9 = vpop.f32.mrb[19].mxu1  ;;  %v7104_v56 = vsel %vm215_vm8, %v6923_v7, %v6898_v6  ;;  %v7122_v12 = vsel %vm242_vm9, %v6916_v41, %v6959_v19  ;;  %vm7980_vm0 = vmmov %vm7979_vm13 }
 0x3d3   :  { %2245 = vrot.lane.b32.xlu1 %v7941_v61, %s4819_s8  ;;  %4036 = vmatprep.subr.bf16.mxu1 %v2508_v44  ;;  %7973 = vst [vmem:[#allocation14_spill] sm:$0xff] %v7122_v12  ;;  %v7138_v7 = vsel %vm242_vm9, %v6941_v57, %v6916_v41  ;;  %v2344_v41 = vsel %vm296_vm11, %v7018_v25, %v6989_v43 }
 0x3d4   :  { %4037 = vmatpush1.bf16.msra.mxu1 %v2507_v62  ;;  %4107 = vmatpush1.bf16.msra.mxu0 %v7098_v0  ;;  %v7106_v2 = vpop.permute.xlu0 %2567  ;;  %v7144_v62 = vsel %vm269_vm10, %v6974_v58, %v6952_v11 }
 0x3d5   :  { %v2487_v5 = vpop.permute.xlu1 %2486  ;;  %4108 = vmatprep.subr.bf16.mxu0 %v7104_v56 }
 0x3d6   :  { %2330 = vrot.lane.b32.xlu0 %v7951_v16, %s4820_s9 }
 0x3d7   :  { %2324 = vrot.lane.b32.xlu1 %v7935_v8, %s4820_s9 }
 0x3d8   :  { %4109 = vmatpush1.bf16.msra.mxu0 %v7116_v34  ;;  %v7124_v38 = vpop.permute.xlu0 %2571 }
 0x3d9   :  { %v2566_v9 = vpop.permute.xlu1 %2565  ;;  %4110 = vmatprep.subr.bf16.mxu0 %v7122_v12 }
 0x3da   :  { %2409 = vrot.lane.b32.xlu0 %v7946_v47, %s4821_s10  ;;  %v2591_v44 = vsel %vm7974_vm2, %v2566_v9, %v7106_v2  ;;  %v2590_v29 = vsel %vm7975_vm4, %v6501_v48, %v2566_v9  ;;  %v7154_v48 = vsel %vm269_vm10, %v6934_v13, %v6974_v58  ;;  %v2343_v13 = vsel %vm296_vm11, %v6967_v10, %v7018_v25  ;;  %vm7981_vm4 = vmmov %vm7974_vm2 }
 0x3db   :  { %2328 = vrot.lane.b32.xlu1 %v7941_v61, %s4820_s9  ;;  %4038 = vmatprep.subr.bf16.mxu1 %v2591_v44  ;;  %v2427_v58 = vsel %vm323_vm12, %v7062_v37, %v7038_v53  ;;  %v2510_v10 = vsel %vm7978_vm6, %v2487_v5, %v7082_v51 }
 0x3dc   :  { %4039 = vmatpush1.bf16.msra.mxu1 %v2590_v29  ;;  %4111 = vmatpush1.bf16.msra.mxu0 %v7138_v7  ;;  %v2651_v12 = vpop.permute.xlu0 %2650 }
 0x3dd   :  { %v2570_v19 = vpop.permute.xlu1 %2569  ;;  %4112 = vmatprep.subr.bf16.mxu0 %v7144_v62 }
 0x3de   :  { %2413 = vrot.lane.b32.xlu0 %v7951_v16, %s4821_s10 }
 0x3df   :  { %2407 = vrot.lane.b32.xlu1 %v7935_v8, %s4821_s10 }
 0x3e0   :  { %4113 = vmatpush1.bf16.msra.mxu0 %v7154_v48  ;;  %v7160_v57 = vpop.permute.xlu0 %2654 }
 0x3e1   :  { %v2649_v9 = vpop.permute.xlu1 %2648  ;;  %4114 = vmatprep.subr.bf16.mxu0 %v2344_v41 }
 0x3e2   :  { %2492 = vrot.lane.b32.xlu0 %v7946_v47, %s4822_s11  ;;  %v2674_v44 = vsel %vm7976_vm14, %v2649_v9, %v2651_v12  ;;  %v2673_v29 = vsel %vm7977_vm3, %v6526_v40, %v2649_v9  ;;  %v2426_v40 = vsel %vm323_vm12, %v7014_v21, %v7062_v37  ;;  %v2509_v21 = vsel %vm7972_vm1, %v7060_v59, %v2487_v5  ;;  %vm7982_vm14 = vmmov %vm7977_vm3 }
 0x3e3   :  { %2411 = vrot.lane.b32.xlu1 %v7941_v61, %s4821_s10  ;;  %4040 = vmatprep.subr.bf16.mxu1 %v2674_v44  ;;  %v2593_v37 = vsel %vm7974_vm2, %v2570_v19, %v7124_v38  ;;  %vm7983_vm3 = vcmask 392192   ;;  %vm7986_vm1 = vmmov %vm7980_vm0 }
 0x3e4   :  { %4041 = vmatpush1.bf16.msra.mxu1 %v2673_v29  ;;  %4115 = vmatpush1.bf16.msra.mxu0 %v2343_v13  ;;  %v2734_v41 = vpop.permute.xlu0 %2733  ;;  %vm7984_vm6 = vmmov %vm7983_vm3 }
 0x3e5   :  { %v2653_v43 = vpop.permute.xlu1 %2652  ;;  %4116 = vmatprep.subr.bf16.mxu0 %v2427_v58  ;;  %vm7987_vm2 = vmmov %vm7983_vm3 }
 0x3e6   :  { %2496 = vrot.lane.b32.xlu0 %v7951_v16, %s4822_s11  ;;  %v2676_v59 = vsel %vm7982_vm14, %v2653_v43, %v7160_v57 }
 0x3e7   :  { %2490 = vrot.lane.b32.xlu1 %v7935_v8, %s4822_s11 }
 0x3e8   :  { %4117 = vmatpush1.bf16.msra.mxu0 %v2426_v40  ;;  %v7184_v25 = vpop.permute.xlu0 %2737 }
 0x3e9   :  { %v2732_v9 = vpop.permute.xlu1 %2731  ;;  %4118 = vmatprep.subr.bf16.mxu0 %v2510_v10 }
 0x3ea   :  { %v2756_v44 = vsel %vm7979_vm13, %v6570_v26, %v2732_v9  ;;  %2575 = vrot.lane.b32.xlu0 %v7946_v47, %s4823_s12  ;;  %v2757_v29 = vsel %vm7980_vm0, %v2732_v9, %v2734_v41  ;;  %v2592_v26 = vsel %vm7981_vm4, %v7106_v2, %v2570_v19  ;;  %vm7985_vm13 = vmmov %vm7982_vm14  ;;  %vm7989_vm14 = vcmask 384000  }
 0x3eb   :  { %2494 = vrot.lane.b32.xlu1 %v7941_v61, %s4822_s11  ;;  %4042 = vmatprep.subr.bf16.mxu1 %v2757_v29  ;;  %vm7988_vm4 = vmmov %vm7987_vm2 }
 0x3ec   :  { %4043 = vmatpush1.bf16.msra.mxu1 %v2756_v44  ;;  %4119 = vmatpush1.bf16.msra.mxu0 %v2509_v21  ;;  %v2817_v13 = vpop.permute.xlu0 %2816  ;;  %v2675_v44 = vsel %vm7985_vm13, %v2651_v12, %v2653_v43 }
 0x3ed   :  { %v2736_v58 = vpop.permute.xlu1 %2735  ;;  %4120 = vmatprep.subr.bf16.mxu0 %v2593_v37 }
 0x3ee   :  { %2579 = vrot.lane.b32.xlu0 %v7951_v16, %s4823_s12  ;;  %v2759_v19 = vsel %vm7980_vm0, %v2736_v58, %v7184_v25 }
 0x3ef   :  { %2573 = vrot.lane.b32.xlu1 %v7935_v8, %s4823_s12 }
 0x3f0   :  { %4121 = vmatpush1.bf16.msra.mxu0 %v2592_v26  ;;  %v7205_v5 = vpop.permute.xlu0 %2820 }
 0x3f1   :  { %v2815_v40 = vpop.permute.xlu1 %2814  ;;  %4122 = vmatprep.subr.bf16.mxu0 %v2676_v59 }
 0x3f2   :  { %v2839_v10 = vsel %vm7983_vm3, %v6610_v27, %v2815_v40  ;;  %2658 = vrot.lane.b32.xlu0 %v7946_v47, %s4824_s13  ;;  %v2840_v9 = vsel %vm7984_vm6, %v2815_v40, %v2817_v13  ;;  %v2758_v27 = vsel %vm7986_vm1, %v2734_v41, %v2736_v58  ;;  %vm7990_vm3 = vmmov %vm7989_vm14 }
 0x3f3   :  { %2577 = vrot.lane.b32.xlu1 %v7941_v61, %s4823_s12  ;;  %4044 = vmatprep.subr.bf16.mxu1 %v2840_v9  ;;  %vm7991_vm6 = vmmov %vm7987_vm2 }
 0x3f4   :  { %4045 = vmatpush1.bf16.msra.mxu1 %v2839_v10  ;;  %4123 = vmatpush1.bf16.msra.mxu0 %v2675_v44  ;;  %v2900_v2 = vpop.permute.xlu0 %2899  ;;  %vm7992_vm13 = vmmov %vm7990_vm3 }
 0x3f5   :  { %v2819_v29 = vpop.permute.xlu1 %2818  ;;  %4124 = vmatprep.subr.bf16.mxu0 %v2759_v19  ;;  %vm7993_vm0 = vmmov %vm7990_vm3 }
 0x3f6   :  { %2662 = vrot.lane.b32.xlu0 %v7951_v16, %s4824_s13  ;;  %v2842_v43 = vsel %vm7987_vm2, %v2819_v29, %v7205_v5  ;;  %v2841_v58 = vsel %vm7991_vm6, %v2817_v13, %v2819_v29  ;;  %vm7994_vm1 = vmmov %vm7987_vm2  ;;  %vm7995_vm2 = vcmask 1039360  }
 0x3f7   :  { %2656 = vrot.lane.b32.xlu1 %v7935_v8, %s4824_s13  ;;  %4047 = vmatmul.mubr.bf16.vlgmr.msra.gmra.mrb[24].mxu1 %v5707_v18  ;;  %vm8005_vm6 = vmmov %vm7995_vm2 }
 0x3f8   :  { %4125 = vmatpush1.bf16.msra.mxu0 %v2758_v27  ;;  %v7225_v12 = vpop.permute.xlu0 %2903  ;;  %4563 = vmatprep.mubr.msk.bf16.mxu1 %vm7988_vm4, %v6011_v45  ;;  %vm7996_vm4 = vcmask 1031168  }
 0x3f9   :  { %v2898_v21 = vpop.permute.xlu1 %2897  ;;  %4126 = vmatprep.subr.bf16.mxu0 %v2842_v43 }
 0x3fa   :  { %v2922_v37 = vsel %vm7989_vm14, %v6653_v23, %v2898_v21  ;;  %2741 = vrot.lane.b32.xlu0 %v7946_v47, %s4825_s14  ;;  %v2923_v41 = vsel %vm7990_vm3, %v2898_v21, %v2900_v2  ;;  %vm7997_vm14 = vcmask 973824   ;;  %vm8003_vm3 = vmmov %vm7995_vm2 }
 0x3fb   :  { %2660 = vrot.lane.b32.xlu1 %v7941_v61, %s4824_s13  ;;  %4055 = vmatprep.subr.bf16.mxu1 %v2923_v41 }
 0x3fc   :  { %4056 = vmatpush1.bf16.msra.mxu1 %v2922_v37  ;;  %4127 = vmatpush1.bf16.msra.mxu0 %v2841_v58  ;;  %v2983_v26 = vpop.permute.xlu0 %2982 }
 0x3fd   :  { %v2902_v59 = vpop.permute.xlu1 %2901 }
 0x3fe   :  { %v2924_v40 = vsel %vm7992_vm13, %v2900_v2, %v2902_v59  ;;  %2745 = vrot.lane.b32.xlu0 %v7951_v16, %s4825_s14  ;;  %v2925_v23 = vsel %vm7993_vm0, %v2902_v59, %v7225_v12  ;;  %vm8006_vm13 = vmmov %vm7996_vm4 }
 0x3ff   :  { %2739 = vrot.lane.b32.xlu1 %v7935_v8, %s4825_s14  ;;  %4137 = vmatprep.subr.bf16.mxu0 %v2925_v23  ;;  %vm8007_vm0 = vmmov %vm7995_vm2 }
 0x400   :  { %4129 = vmatmul.mubr.bf16.vlgmr.msra.gmra.mrb[28].mxu0 %v5707_v18  ;;  %v7245_v13 = vpop.permute.xlu0 %2986 }
 0x401   :  { %4138 = vmatpush1.bf16.msra.mxu0 %v2924_v40  ;;  %v2981_v10 = vpop.permute.xlu1 %2980  ;;  %4564 = vmatprep.mubr.msk.bf16.mxu0 %vm7994_vm1, %v6011_v45  ;;  %v8004_v40 = vld [vmem:[#allocation20_spill] sm:$0xff]  ;;  %vm8008_vm1 = vmmov %vm7996_vm4 }
 0x402   :  { %v3005_v9 = vsel %vm512_vm15, %v6689_v3, %v2981_v10  ;;  %2824 = vrot.lane.b32.xlu0 %v7946_v47, %s4826_s15  ;;  %v3006_v44 = vsel %vm512_vm15, %v2981_v10, %v2983_v26 }
 0x403   :  { %2743 = vrot.lane.b32.xlu1 %v7941_v61, %s4825_s14  ;;  %4057 = vmatprep.subr.bf16.mxu1 %v3006_v44 }
 0x404   :  { %4058 = vmatpush1.bf16.msra.mxu1 %v3005_v9  ;;  %v7256_v19 = vpop.permute.xlu0 %1743 }
 0x405   :  { %v2985_v2 = vpop.permute.xlu1 %2984  ;;  %4059 = vmatprep.subr.bf16.mxu1 %v5569_v55 }
 0x406   :  { %v3007_v29 = vsel %vm512_vm15, %v2983_v26, %v2985_v2  ;;  %2828 = vrot.lane.b32.xlu0 %v7951_v16, %s4826_s15  ;;  %v3008_v3 = vsel %vm512_vm15, %v2985_v2, %v7245_v13  ;;  %v3656_v26 = vld [vmem:[%s7775_s4] sm:$0xf] }
 0x407   :  { %2822 = vrot.lane.b32.xlu1 %v7935_v8, %s4826_s15  ;;  %4139 = vmatprep.subr.bf16.mxu0 %v3008_v3 }
 0x408   :  { %4060 = vmatpush1.bf16.msra.mxu1 %v5573_v42  ;;  %4140 = vmatpush1.bf16.msra.mxu0 %v3007_v29  ;;  %v7267_v27 = vpop.permute.xlu0 %1909 }
 0x409   :  { %v7269_v43 = vpop.permute.xlu1 %1660  ;;  %4141 = vmatprep.subr.bf16.mxu0 %v7892_v32  ;;  %4061 = vmatprep.subr.bf16.mxu1 %v7006_v36 }
 0x40a   :  { %2907 = vrot.lane.b32.xlu0 %v7946_v47, %s4827_s18  ;;  %v7282_v55 = vsel %vm7995_vm2, %v6804_v54, %v7269_v43  ;;  %vm8009_vm2 = vmmov %vm8008_vm1 }
 0x40b   :  { %2826 = vrot.lane.b32.xlu1 %v7941_v61, %s4826_s15 }
 0x40c   :  { %4062 = vmatpush1.bf16.msra.mxu1 %v6866_v28  ;;  %4142 = vmatpush1.bf16.msra.mxu0 %v5575_v52  ;;  %v7284_v42 = vpop.permute.xlu0 %2075  ;;  %v7299_v52 = vsel %vm7996_vm4, %v6802_v60, %v7256_v19  ;;  %vm8010_vm4 = vmmov %vm7997_vm14 }
 0x40d   :  { %v7286_v21 = vpop.permute.xlu1 %1826  ;;  %4143 = vmatprep.subr.bf16.mxu0 %v7282_v55  ;;  %4063 = vmatprep.subr.bf16.mxu1 %v7030_v17 }
 0x40e   :  { %2911 = vrot.lane.b32.xlu0 %v7951_v16, %s4827_s18  ;;  %v7320_v60 = vsel %vm134_vm5, %v6848_v20, %v7286_v21  ;;  %v7337_v20 = vsel %vm7997_vm14, %v6846_v33, %v7267_v27  ;;  %vm8011_vm14 = vmmov %vm8010_vm4 }
 0x40f   :  { %2905 = vrot.lane.b32.xlu1 %v7935_v8, %s4827_s18 }
 0x410   :  { %4064 = vmatpush1.bf16.msra.mxu1 %v6885_v35  ;;  %4144 = vmatpush1.bf16.msra.mxu0 %v6987_v50  ;;  %v7301_v54 = vpop.permute.xlu0 %2241 }
 0x411   :  { %v7303_v28 = vpop.permute.xlu1 %1992  ;;  %4145 = vmatprep.subr.bf16.mxu0 %v7299_v52  ;;  %4065 = vmatprep.subr.bf16.mxu1 %v7052_v14 }
 0x412   :  { %2990 = vrot.lane.b32.xlu0 %v7946_v47, %s4828_s0  ;;  %v7309_v36 = vpop.f32.mrb[20].mxu0  ;;  %v7352_v33 = vsel %vm188_vm7, %v6905_v22, %v7303_v28  ;;  %v7369_v22 = vsel %vm215_vm8, %v6898_v6, %v7284_v42  ;;  %v7999_v6 = vld [vmem:[#allocation15_spill] sm:$0xff] }
 0x413   :  { %2909 = vrot.lane.b32.xlu1 %v7941_v61, %s4827_s18  ;;  %v7313_v35 = vpop.f32.mrb[21].mxu0 }
 0x414   :  { %4066 = vmatpush1.bf16.msra.mxu1 %v6903_v30  ;;  %4146 = vmatpush1.bf16.msra.mxu0 %v7012_v24  ;;  %v7322_v50 = vpop.permute.xlu0 %1664  ;;  %v3847_v17 = vpop.f32.mrb[22].mxu0 }
 0x415   :  { %v7324_v14 = vpop.permute.xlu1 %2158  ;;  %4147 = vmatprep.subr.bf16.mxu0 %v7320_v60  ;;  %4067 = vmatprep.subr.bf16.mxu1 %v7072_v39  ;;  %v3848_v37 = vpop.f32.mrb[23].mxu0  ;;  %v7998_v39 = vld [vmem:[#allocation18_spill] sm:$0xff] }
 0x416   :  { %2994 = vrot.lane.b32.xlu0 %v7951_v16, %s4828_s0 }
 0x417   :  { %2988 = vrot.lane.b32.xlu1 %v7935_v8, %s4828_s0 }
 0x418   :  { %4068 = vmatpush1.bf16.msra.mxu1 %v6921_v1  ;;  %4148 = vmatpush1.bf16.msra.mxu0 %v7036_v63  ;;  %v7339_v30 = vpop.permute.xlu0 %1745 }
 0x419   :  { %v1663_v24 = vpop.permute.xlu1 %1662  ;;  %4149 = vmatprep.subr.bf16.mxu0 %v7337_v20  ;;  %4069 = vmatprep.subr.bf16.mxu1 %v7098_v0  ;;  %v7433_v23 = vsel %vm8006_vm13, %v7256_v19, %v7339_v30 }
 0x41a   :  { %3083 = vrot.lane.b32.xlu0 %v7998_v39, %s4812_s26  ;;  %v7440_v9 = vsel %vm8007_vm0, %v1663_v24, %v7322_v50 }
 0x41b   :  { %2992 = vrot.lane.b32.xlu1 %v7941_v61, %s4828_s0 }
 0x41c   :  { %4070 = vmatpush1.bf16.msra.mxu1 %v6939_v15  ;;  %4150 = vmatpush1.bf16.msra.mxu0 %v7058_v31  ;;  %v7354_v1 = vpop.permute.xlu0 %1749 }
 0x41d   :  { %v7356_v63 = vpop.permute.xlu1 %1666  ;;  %4151 = vmatprep.subr.bf16.mxu0 %v7352_v33  ;;  %4071 = vmatprep.subr.bf16.mxu1 %v7116_v34  ;;  %v7399_v34 = vsel %vm269_vm10, %v6952_v11, %v7301_v54  ;;  %v7414_v11 = vsel %vm8003_vm3, %v7269_v43, %v1663_v24  ;;  %vm8012_vm3 = vmmov %vm8010_vm4 }
 0x41e   :  { %3123 = vrot.lane.b32.xlu0 %v7998_v39, %s4815_s28 }
 0x41f   :  { %3063 = vrot.lane.b32.xlu1 %v7998_v39, %s4813_s3 }
 0x420   :  { %4072 = vmatpush1.bf16.msra.mxu1 %v6957_v49  ;;  %4152 = vmatpush1.bf16.msra.mxu0 %v7080_v46  ;;  %v7371_v15 = vpop.permute.xlu0 %1830  ;;  %v7384_v49 = vsel %vm242_vm9, %v7999_v6, %v7324_v14 }
 0x421   :  { %v1748_v31 = vpop.permute.xlu1 %1747  ;;  %4153 = vmatprep.subr.bf16.mxu0 %v7369_v22  ;;  %4073 = vmatprep.subr.bf16.mxu1 %v7138_v7 }
 0x422   :  { %3163 = vrot.lane.b32.xlu0 %v7998_v39, %s4817_s30  ;;  %v7446_v44 = vsel %vm8008_vm1, %v1748_v31, %v7354_v1  ;;  %v7460_v3 = vsel %vm8009_vm2, %v7339_v30, %v1748_v31 }
 0x423   :  { %3103 = vrot.lane.b32.xlu1 %v7998_v39, %s4814_s27 }
 0x424   :  { %4074 = vmatpush1.bf16.msra.mxu1 %v6972_v4  ;;  %4154 = vmatpush1.bf16.msra.mxu0 %v7104_v56  ;;  %v7386_v46 = vpop.permute.xlu0 %1911  ;;  %v8000_v4 = vld [vmem:[#allocation16_spill] sm:$0xff]  ;;  %v8001_v56 = vld [vmem:[#allocation14_spill] sm:$0xff] }
 0x425   :  { %v1829_v0 = vpop.permute.xlu1 %1828  ;;  %4155 = vmatprep.subr.bf16.mxu0 %v7384_v49  ;;  %4075 = vmatprep.subr.bf16.mxu1 %v7154_v48  ;;  %v8002_v48 = vld [vmem:[#allocation21_spill] sm:$0xff] }
 0x426   :  { %3203 = vrot.lane.b32.xlu0 %v7998_v39, %s4819_s8  ;;  %v7452_v2 = vsel %vm134_vm5, %v7286_v21, %v1829_v0  ;;  %v7472_v21 = vsel %vm8010_vm4, %v7267_v27, %v7386_v46 }
 0x427   :  { %3143 = vrot.lane.b32.xlu1 %v7998_v39, %s4816_s29 }
 0x428   :  { %4076 = vmatpush1.bf16.msra.mxu1 %v8000_v4  ;;  %4156 = vmatpush1.bf16.msra.mxu0 %v8001_v56  ;;  %v7401_v7 = vpop.permute.xlu0 %1915 }
 0x429   :  { %v7403_v41 = vpop.permute.xlu1 %1832  ;;  %4157 = vmatprep.subr.bf16.mxu0 %v7399_v34  ;;  %4178 = vmatprep.subr.bf16.mxu1 %v7935_v8 }
 0x42a   :  { %v7467_v43 = vsel %vm134_vm5, %v7371_v15, %v7403_v41 }
 0x42b   :  { %3183 = vrot.lane.b32.xlu1 %v7998_v39, %s4818_s7  ;;  %4088 = vmatmul.mubr.bf16.vlgmr.msra.gmra.mrb[24].mxu1 %v8002_v48 }
 0x42c   :  { %4158 = vmatpush1.bf16.msra.mxu0 %v7144_v62  ;;  %4179 = vmatpush1.bf16.msra.mxu1 %v7892_v32  ;;  %v1997_v58 = vpop.permute.xlu0 %1996  ;;  %v7428_v32 = vsel %vm8005_vm6, %v7322_v50, %v7356_v63  ;;  %vm8014_vm6 = vcmask 506880  }
 0x42d   :  { %v1914_v59 = vpop.permute.xlu1 %1913  ;;  %4260 = vmatprep.subr.bf16.mxu0 %v7941_v61  ;;  %4180 = vmatprep.subr.bf16.mxu1 %v7414_v11  ;;  %vm8015_vm13 = vmmov %vm8014_vm6 }
 0x42e   :  { %4210 = vmatprep.mubr.bf16.mxu1 %v8004_v40  ;;  %v7484_v50 = vsel %vm8011_vm14, %v1914_v59, %v7401_v7  ;;  %v7494_v30 = vsel %vm8012_vm3, %v7386_v46, %v1914_v59  ;;  %vm8017_vm0 = vmmov %vm8014_vm6  ;;  %vm8022_vm14 = vcmask 449536  }
 0x42f   :  { %3659 = vperm.xlu1 %4731, %v3656_v26   ;;  %4170 = vmatmul.mubr.bf16.vlgmr.msra.gmra.mrb[28].mxu0 %v8002_v48  ;;  %vm8023_vm3 = vmmov %vm8022_vm14 }
 0x430   :  { %4181 = vmatpush1.bf16.msra.mxu1 %v7282_v55  ;;  %4261 = vmatpush1.bf16.msra.mxu0 %v7946_v47  ;;  %v2078_v62 = vpop.permute.xlu0 %2077 }
 0x431   :  { %v1995_v10 = vpop.permute.xlu1 %1994  ;;  %4262 = vmatprep.subr.bf16.mxu0 %v7428_v32  ;;  %4182 = vmatprep.subr.bf16.mxu1 %v7433_v23 }
 0x432   :  { %4292 = vmatprep.mubr.bf16.mxu0 %v8004_v40  ;;  %v7488_v27 = vsel %vm188_vm7, %v7303_v28, %v1995_v10  ;;  %v7506_v28 = vsel %vm215_vm8, %v7284_v42, %v2078_v62  ;;  %v8013_v40 = vld [vmem:[#allocation13_spill] sm:$0xff] }
 0x434   :  { %4183 = vmatpush1.bf16.msra.mxu1 %v7299_v52  ;;  %4263 = vmatpush1.bf16.msra.mxu0 %v7440_v9  ;;  %v7448_v19 = vpop.permute.xlu0 %2081 }
 0x435   :  { %v7454_v29 = vpop.permute.xlu1 %1998  ;;  %4264 = vmatprep.subr.bf16.mxu0 %v7446_v44  ;;  %4184 = vmatprep.subr.bf16.mxu1 %v7452_v2 }
 0x438   :  { %4185 = vmatpush1.bf16.msra.mxu1 %v7320_v60  ;;  %4265 = vmatpush1.bf16.msra.mxu0 %v7460_v3  ;;  %v2163_v55 = vpop.permute.xlu0 %2162  ;;  %v7478_v60 = vsel %vm134_vm5, %v1829_v0, %v7371_v15 }
 0x439   :  { %v2080_v52 = vpop.permute.xlu1 %2079  ;;  %4266 = vmatprep.subr.bf16.mxu0 %v7467_v43  ;;  %4186 = vmatprep.subr.bf16.mxu1 %v7472_v21 }
 0x43a   :  { %v7519_v15 = vsel %vm215_vm8, %v2080_v52, %v7448_v19  ;;  %v7528_v46 = vsel %vm215_vm8, %v2078_v62, %v2080_v52 }
 0x43c   :  { %4187 = vmatpush1.bf16.msra.mxu1 %v7337_v20  ;;  %4267 = vmatpush1.bf16.msra.mxu0 %v7478_v60  ;;  %v2244_v17 = vpop.permute.xlu0 %2243  ;;  %v7500_v20 = vsel %vm188_vm7, %v1997_v58, %v7454_v29 }
 0x43d   :  { %v2161_v37 = vpop.permute.xlu1 %2160  ;;  %4268 = vmatprep.subr.bf16.mxu0 %v7484_v50  ;;  %4188 = vmatprep.subr.bf16.mxu1 %v7488_v27 }
 0x43e   :  { %v7523_v42 = vsel %vm242_vm9, %v7324_v14, %v2161_v37  ;;  %v7538_v14 = vsel %vm269_vm10, %v7301_v54, %v2244_v17  ;;  %v7543_v56 = vsel %vm242_vm9, %v2161_v37, %v2163_v55 }
 0x440   :  { %4189 = vmatpush1.bf16.msra.mxu1 %v7352_v33  ;;  %4269 = vmatpush1.bf16.msra.mxu0 %v7494_v30  ;;  %v7502_v24 = vpop.permute.xlu0 %2247  ;;  %v7513_v33 = vsel %vm188_vm7, %v1995_v10, %v1997_v58 }
 0x441   :  { %v7508_v39 = vpop.permute.xlu1 %2164  ;;  %4270 = vmatprep.subr.bf16.mxu0 %v7500_v20  ;;  %4190 = vmatprep.subr.bf16.mxu1 %v7506_v28 }
 0x444   :  { %4191 = vmatpush1.bf16.msra.mxu1 %v7369_v22  ;;  %4271 = vmatpush1.bf16.msra.mxu0 %v7513_v33  ;;  %v2327_v31 = vpop.permute.xlu0 %2326  ;;  %v7534_v22 = vsel %vm242_vm9, %v2163_v55, %v7508_v39 }
 0x445   :  { %v2246_v6 = vpop.permute.xlu1 %2245  ;;  %4272 = vmatprep.subr.bf16.mxu0 %v7519_v15  ;;  %4192 = vmatprep.subr.bf16.mxu1 %v7523_v42 }
 0x446   :  { %v7554_v59 = vsel %vm269_vm10, %v2244_v17, %v2246_v6 }
 0x448   :  { %4193 = vmatpush1.bf16.msra.mxu1 %v7384_v49  ;;  %4273 = vmatpush1.bf16.msra.mxu0 %v7528_v46  ;;  %v2331_v0 = vpop.permute.xlu0 %2330  ;;  %v7549_v49 = vsel %vm269_vm10, %v2246_v6, %v7502_v24 }
 0x449   :  { %v2325_v4 = vpop.permute.xlu1 %2324  ;;  %4274 = vmatprep.subr.bf16.mxu0 %v7534_v22  ;;  %4194 = vmatprep.subr.bf16.mxu1 %v7538_v14 }
 0x44a   :  { %v2346_v54 = vsel %vm296_vm11, %v2325_v4, %v2327_v31  ;;  %v2345_v62 = vsel %vm296_vm11, %v8013_v40, %v2325_v4 }
 0x44c   :  { %4195 = vmatpush1.bf16.msra.mxu1 %v7399_v34  ;;  %4275 = vmatpush1.bf16.msra.mxu0 %v7543_v56  ;;  %v2410_v58 = vpop.permute.xlu0 %2409 }
 0x44d   :  { %v2329_v26 = vpop.permute.xlu1 %2328  ;;  %4276 = vmatprep.subr.bf16.mxu0 %v7549_v49  ;;  %4196 = vmatprep.subr.bf16.mxu1 %v2346_v54 }
 0x44e   :  { %v2348_v34 = vsel %vm296_vm11, %v2329_v26, %v2331_v0  ;;  %v2347_v54 = vsel %vm296_vm11, %v2327_v31, %v2329_v26  ;;  %vm8016_vm11 = vmmov %vm8014_vm6 }
 0x450   :  { %4197 = vmatpush1.bf16.msra.mxu1 %v2345_v62  ;;  %4277 = vmatpush1.bf16.msra.mxu0 %v7554_v59  ;;  %v2414_v10 = vpop.permute.xlu0 %2413 }
 0x451   :  { %v2408_v55 = vpop.permute.xlu1 %2407  ;;  %4278 = vmatprep.subr.bf16.mxu0 %v2348_v34 }
 0x452   :  { %v2428_v52 = vsel %vm323_vm12, %v7038_v53, %v2408_v55  ;;  %v2429_v37 = vsel %vm323_vm12, %v2408_v55, %v2410_v58 }
 0x453   :  { %4198 = vmatprep.subr.bf16.mxu1 %v2429_v37 }
 0x454   :  { %4199 = vmatpush1.bf16.msra.mxu1 %v2428_v52  ;;  %4279 = vmatpush1.bf16.msra.mxu0 %v2347_v54  ;;  %v2493_v17 = vpop.permute.xlu0 %2492 }
 0x455   :  { %v2412_v6 = vpop.permute.xlu1 %2411 }
 0x456   :  { %v2430_v4 = vsel %vm323_vm12, %v2410_v58, %v2412_v6  ;;  %v2431_v40 = vsel %vm323_vm12, %v2412_v6, %v2414_v10  ;;  %vm8018_vm12 = vcmask 457728  }
 0x457   :  { %4280 = vmatprep.subr.bf16.mxu0 %v2431_v40  ;;  %vm8019_vm1 = vmmov %vm8018_vm12 }
 0x458   :  { %4281 = vmatpush1.bf16.msra.mxu0 %v2430_v4  ;;  %v2497_v0 = vpop.permute.xlu0 %2496  ;;  %vm8020_vm2 = vmmov %vm8019_vm1 }
 0x459   :  { %v2491_v62 = vpop.permute.xlu1 %2490  ;;  %vm8021_vm4 = vmmov %vm8019_vm1 }
 0x45a   :  { %v2511_v53 = vsel %vm8014_vm6, %v7082_v51, %v2491_v62  ;;  %v2512_v34 = vsel %vm8015_vm13, %v2491_v62, %v2493_v17  ;;  %vm8024_vm6 = vmmov %vm8023_vm3 }
 0x45b   :  { %4200 = vmatprep.subr.bf16.mxu1 %v2512_v34  ;;  %vm8025_vm13 = vmmov %vm8023_vm3 }
 0x45c   :  { %4201 = vmatpush1.bf16.msra.mxu1 %v2511_v53  ;;  %v2576_v31 = vpop.permute.xlu0 %2575 }
 0x45d   :  { %v2495_v26 = vpop.permute.xlu1 %2494 }
 0x45e   :  { %v2513_v55 = vsel %vm8016_vm11, %v2493_v17, %v2495_v26  ;;  %v2514_v52 = vsel %vm8017_vm0, %v2495_v26, %v2497_v0  ;;  %vm8026_vm11 = vcmask 441344  }
 0x45f   :  { %4282 = vmatprep.subr.bf16.mxu0 %v2514_v52  ;;  %vm8027_vm0 = vmmov %vm8026_vm11 }
 0x460   :  { %4283 = vmatpush1.bf16.msra.mxu0 %v2513_v55  ;;  %v2580_v58 = vpop.permute.xlu0 %2579 }
 0x461   :  { %v2574_v10 = vpop.permute.xlu1 %2573 }
 0x462   :  { %v2594_v37 = vsel %vm8018_vm12, %v7124_v38, %v2574_v10  ;;  %v2595_v54 = vsel %vm8019_vm1, %v2574_v10, %v2576_v31  ;;  %vm8028_vm12 = vmmov %vm8027_vm0 }
 0x463   :  { %4202 = vmatprep.subr.bf16.mxu1 %v2595_v54  ;;  %vm8029_vm1 = vmmov %vm8027_vm0 }
 0x464   :  { %4203 = vmatpush1.bf16.msra.mxu1 %v2594_v37  ;;  %v2659_v51 = vpop.permute.xlu0 %2658 }
 0x465   :  { %v2578_v6 = vpop.permute.xlu1 %2577 }
 0x466   :  { %v2596_v4 = vsel %vm8020_vm2, %v2576_v31, %v2578_v6  ;;  %v2597_v40 = vsel %vm8021_vm4, %v2578_v6, %v2580_v58  ;;  %vm8030_vm2 = vcmask 392192  }
 0x467   :  { %4284 = vmatprep.subr.bf16.mxu0 %v2597_v40  ;;  %vm8031_vm4 = vmmov %vm8030_vm2 }
 0x468   :  { %4285 = vmatpush1.bf16.msra.mxu0 %v2596_v4  ;;  %v2663_v17 = vpop.permute.xlu0 %2662 }
 0x469   :  { %v2657_v0 = vpop.permute.xlu1 %2656 }
 0x46a   :  { %v2677_v62 = vsel %vm8022_vm14, %v7160_v57, %v2657_v0  ;;  %v2678_v53 = vsel %vm8023_vm3, %v2657_v0, %v2659_v51  ;;  %vm8032_vm14 = vmmov %vm8030_vm2 }
 0x46b   :  { %4204 = vmatprep.subr.bf16.mxu1 %v2678_v53  ;;  %vm8033_vm3 = vmmov %vm8030_vm2 }
 0x46c   :  { %4205 = vmatpush1.bf16.msra.mxu1 %v2677_v62  ;;  %v2742_v38 = vpop.permute.xlu0 %2741 }
 0x46d   :  { %v2661_v34 = vpop.permute.xlu1 %2660 }
 0x46e   :  { %v2679_v26 = vsel %vm8024_vm6, %v2659_v51, %v2661_v34  ;;  %v2680_v55 = vsel %vm8025_vm13, %v2661_v34, %v2663_v17  ;;  %vm8034_vm6 = vmmov %vm8030_vm2  ;;  %vm8035_vm13 = vcmask 384000  }
 0x46f   :  { %4286 = vmatprep.subr.bf16.mxu0 %v2680_v55 }
 0x470   :  { %4287 = vmatpush1.bf16.msra.mxu0 %v2679_v26  ;;  %v2746_v31 = vpop.permute.xlu0 %2745 }
 0x471   :  { %v2740_v52 = vpop.permute.xlu1 %2739 }
 0x472   :  { %v2760_v58 = vsel %vm8026_vm11, %v7184_v25, %v2740_v52  ;;  %v2761_v10 = vsel %vm8027_vm0, %v2740_v52, %v2742_v38  ;;  %vm8036_vm11 = vmmov %vm8035_vm13 }
 0x473   :  { %4206 = vmatprep.subr.bf16.mxu1 %v2761_v10  ;;  %vm8037_vm0 = vmmov %vm8030_vm2 }
 0x474   :  { %4207 = vmatpush1.bf16.msra.mxu1 %v2760_v58  ;;  %v2825_v57 = vpop.permute.xlu0 %2824 }
 0x475   :  { %v2744_v37 = vpop.permute.xlu1 %2743 }
 0x476   :  { %v2762_v54 = vsel %vm8028_vm12, %v2742_v38, %v2744_v37  ;;  %v2763_v6 = vsel %vm8029_vm1, %v2744_v37, %v2746_v31  ;;  %v7586_v51 = vpop.f32.mrb[20].mxu1  ;;  %vm8038_vm12 = vmmov %vm8036_vm11 }
 0x477   :  { %4288 = vmatprep.subr.bf16.mxu0 %v2763_v6  ;;  %v7588_v4 = vpop.f32.mrb[21].mxu1  ;;  %vm8039_vm1 = vmmov %vm8036_vm11 }
 0x478   :  { %4289 = vmatpush1.bf16.msra.mxu0 %v2762_v54  ;;  %v2829_v40 = vpop.permute.xlu0 %2828  ;;  %v3929_v17 = vpop.f32.mrb[22].mxu1 }
 0x479   :  { %v2823_v0 = vpop.permute.xlu1 %2822  ;;  %v3930_v25 = vpop.f32.mrb[23].mxu1 }
 0x47a   :  { %v2843_v62 = vsel %vm8030_vm2, %v7205_v5, %v2823_v0  ;;  %v2844_v53 = vsel %vm8031_vm4, %v2823_v0, %v2825_v57  ;;  %vm8041_vm2 = vcmask 1031168   ;;  %vm8042_vm4 = vcmask 973824  }
 0x47b   :  { %4208 = vmatprep.subr.bf16.mxu1 %v2844_v53 }
 0x47c   :  { %4209 = vmatpush1.bf16.msra.mxu1 %v2843_v62  ;;  %v2908_v38 = vpop.permute.xlu0 %2907 }
 0x47d   :  { %v2827_v34 = vpop.permute.xlu1 %2826 }
 0x47e   :  { %v2845_v26 = vsel %vm8032_vm14, %v2825_v57, %v2827_v34  ;;  %v2846_v55 = vsel %vm8033_vm3, %v2827_v34, %v2829_v40 }
 0x47f   :  { %4290 = vmatprep.subr.bf16.mxu0 %v2846_v55  ;;  %4211 = vmatmul.mubr.bf16.vlgmr.msra.gmra.mrb[28].mxu1 %v5707_v18 }
 0x480   :  { %4291 = vmatpush1.bf16.msra.mxu0 %v2845_v26  ;;  %4565 = vmatprep.mubr.msk.bf16.mxu1 %vm8034_vm6, %v6011_v45  ;;  %v2912_v52 = vpop.permute.xlu0 %2911 }
 0x481   :  { %v2906_v31 = vpop.permute.xlu1 %2905 }
 0x482   :  { %v2926_v5 = vsel %vm8035_vm13, %v7225_v12, %v2906_v31  ;;  %v2927_v58 = vsel %vm8036_vm11, %v2906_v31, %v2908_v38 }
 0x483   :  { %4219 = vmatprep.subr.bf16.mxu1 %v2927_v58  ;;  %4293 = vmatmul.mubr.bf16.vlgmr.msra.gmra.mrb[32].mxu0 %v5707_v18 }
 0x484   :  { %4220 = vmatpush1.bf16.msra.mxu1 %v2926_v5  ;;  %4566 = vmatprep.mubr.msk.bf16.mxu0 %vm8037_vm0, %v6011_v45  ;;  %v2991_v54 = vpop.permute.xlu0 %2990 }
 0x485   :  { %v2910_v10 = vpop.permute.xlu1 %2909 }
 0x486   :  { %v2928_v57 = vsel %vm8038_vm12, %v2908_v38, %v2910_v10  ;;  %v2929_v37 = vsel %vm8039_vm1, %v2910_v10, %v2912_v52 }
 0x487   :  { %4301 = vmatprep.subr.bf16.mxu0 %v2929_v37  ;;  %v8046_v37 = vld [vmem:[#allocation25_spill] sm:$0xff] }
 0x488   :  { %4302 = vmatpush1.bf16.msra.mxu0 %v2928_v57  ;;  %v2995_v18 = vpop.permute.xlu0 %2994 }
 0x489   :  { %v2989_v6 = vpop.permute.xlu1 %2988 }
 0x48a   :  { %v3009_v12 = vsel %vm512_vm15, %v7245_v13, %v2989_v6  ;;  %v3010_v40 = vsel %vm512_vm15, %v2989_v6, %v2991_v54 }
 0x48b   :  { %4221 = vmatprep.subr.bf16.mxu1 %v3010_v40 }
 0x48c   :  { %4222 = vmatpush1.bf16.msra.mxu1 %v3009_v12  ;;  %v3084_v38 = vpop.permute.xlu0 %3083 }
 0x48d   :  { %v2993_v17 = vpop.permute.xlu1 %2992  ;;  %4223 = vmatprep.subr.bf16.mxu1 %v7946_v47 }
 0x48e   :  { %v3011_v45 = vsel %vm512_vm15, %v2991_v54, %v2993_v17  ;;  %v3012_v0 = vsel %vm512_vm15, %v2993_v17, %v2995_v18  ;;  %vm8040_vm15 = vcmask 1039360  }
 0x48f   :  { %4303 = vmatprep.subr.bf16.mxu0 %v3012_v0 }
 0x490   :  { %4224 = vmatpush1.bf16.msra.mxu1 %v7935_v8  ;;  %4304 = vmatpush1.bf16.msra.mxu0 %v3011_v45 }
 0x491   :  { %v3064_v25 = vpop.permute.xlu1 %3063  ;;  %4305 = vmatprep.subr.bf16.mxu0 %v7951_v16  ;;  %4225 = vmatprep.subr.bf16.mxu1 %v7440_v9  ;;  %v3085_v16 = vsel %vm8041_vm2, %v7354_v1, %v3084_v38 }
 0x492   :  { %v7615_v13 = vpop.f32.mrb[24].mxu0  ;;  %v3065_v47 = vsel %vm8040_vm15, %v7356_v63, %v3064_v25  ;;  %v3124_v63 = vpop.permute.xlu0 %3123 }
 0x493   :  { %v7617_v62 = vpop.f32.mrb[25].mxu0  ;;  %v3125_v1 = vsel %vm8042_vm4, %v7401_v7, %v3124_v63 }
 0x494   :  { %v4011_v53 = vpop.f32.mrb[26].mxu0  ;;  %4226 = vmatpush1.bf16.msra.mxu1 %v7414_v11  ;;  %4306 = vmatpush1.bf16.msra.mxu0 %v7941_v61  ;;  %v4358_v11 = vld [vmem:[%s7776_s5] sm:$0xff] }
 0x495   :  { %v4012_v8 = vpop.f32.mrb[27].mxu0  ;;  %4307 = vmatprep.subr.bf16.mxu0 %v3065_v47  ;;  %4227 = vmatprep.subr.bf16.mxu1 %v7460_v3  ;;  %v3104_v9 = vpop.permute.xlu1 %3103 }
 0x496   :  { %v3105_v61 = vsel %vm134_vm5, %v7403_v41, %v3104_v9  ;;  %vm4360_vm5 = vcmp.gt.f32.partialorder %v4358_v11, 0.5 }
 0x498   :  { %4228 = vmatpush1.bf16.msra.mxu1 %v7433_v23  ;;  %4308 = vmatpush1.bf16.msra.mxu0 %v7428_v32  ;;  %v8043_v23 = vld [vmem:[#allocation19_spill] sm:$0xff] }
 0x499   :  { %4309 = vmatprep.subr.bf16.mxu0 %v3085_v16  ;;  %4229 = vmatprep.subr.bf16.mxu1 %v7478_v60  ;;  %v3144_v32 = vpop.permute.xlu1 %3143  ;;  %v4386_v7 = vsub.s32 5, %v8043_v23  ;;  %v4394_v60 = vsub.s32 7, %v8043_v23 }
 0x49a   :  { %v3145_v41 = vsel %vm188_vm7, %v7454_v29, %v3144_v32  ;;  %v4374_v29 = vsub.s32 2, %v8043_v23  ;;  %vm4460_vm7 = vcmask 1043456  }
 0x49c   :  { %4230 = vmatpush1.bf16.msra.mxu1 %v7452_v2  ;;  %4310 = vmatpush1.bf16.msra.mxu0 %v7446_v44  ;;  %v4382_v44 = vsub.s32 4, %v8043_v23  ;;  %v8044_v2 = vmov 0  }
 0x49d   :  { %4231 = vmatprep.subr.bf16.mxu1 %v7494_v30  ;;  %4311 = vmatprep.subr.bf16.mxu0 %v3105_v61  ;;  %v4362_v3 = vsel %vm4360_vm5, 1, %v8044_v2  ;;  %v3184_v34 = vpop.permute.xlu1 %3183 }
 0x49e   :  { %v4387_v26 = vrot.slane %v4362_v3, %v4386_v7  ;;  %v4375_v31 = vrot.slane %v4362_v3, %v4374_v29  ;;  %v3185_v52 = vsel %vm242_vm9, %v7508_v39, %v3184_v34 }
 0x4a0   :  { %4232 = vmatpush1.bf16.msra.mxu1 %v7472_v21  ;;  %4312 = vmatpush1.bf16.msra.mxu0 %v7467_v43  ;;  %v3164_v43 = vpop.permute.xlu0 %3163  ;;  %v4390_v21 = vsub.s32 6, %v8043_v23  ;;  %vm4433_vm14 = vcmp.eq.s32.totalorder %v4387_v26, 1  ;;  %vm4430_vm0 = vcmp.eq.s32.totalorder %v4375_v31, 1 }
 0x4a1   :  { %4233 = vmatprep.subr.bf16.mxu1 %v7513_v33  ;;  %4313 = vmatprep.subr.bf16.mxu0 %v3125_v1  ;;  %v3165_v30 = vsel %vm215_vm8, %v7448_v19, %v3164_v43  ;;  %v4383_v33 = vrot.slane %v4362_v3, %v4382_v44 }
 0x4a3   :  { %vm4432_vm8 = vcmp.eq.s32.totalorder %v4383_v33, 1  ;;  %v4359_v33 = vld [vmem:[%s7776_s5 + $0x8] sm:$0xff]  ;;  %s4833_s5 = smov [#allocation9]  }
 0x4a4   :  { %4234 = vmatpush1.bf16.msra.mxu1 %v7488_v27  ;;  %4314 = vmatpush1.bf16.msra.mxu0 %v7484_v50  ;;  %v4366_v27 = vsub.s32 0, %v8043_v23  ;;  %v4370_v50 = vsub.s32 1, %v8043_v23  ;;  %s4513_s26 = sshll.u32 %s4833_s5, 4  ;;  %s4514_s26 = int_to_ptr.vmem [resolvable:$true] %s4513_s26 }
 0x4a5   :  { %4235 = vmatprep.subr.bf16.mxu1 %v7528_v46  ;;  %4315 = vmatprep.subr.bf16.mxu0 %v3145_v41  ;;  %v4378_v46 = vsub.s32 3, %v8043_v23  ;;  %s4780_s3 = scalar_lea.vmem %s4514_s26, 64  ;;  %p4785_p3 = scmp.lt.s32.totalorder %s4514_s26, %s4514_s26 }
 0x4a6   :  { %v4367_v19 = vrot.slane %v4362_v3, %v4366_v27  ;;  %v4371_v55 = vrot.slane %v4362_v3, %v4370_v50  ;;  %p4781_p2 = scmp.ne.s32.totalorder %s4514_s26, %s4780_s3  ;;  %p4786_p4 = scmp.lt.s32.totalorder %s4780_s3, %s4780_s3 }
 0x4a7   :  { %v4379_v5 = vrot.slane %v4362_v3, %v4378_v46 }
 0x4a8   :  { %4236 = vmatpush1.bf16.msra.mxu1 %v7506_v28  ;;  %4316 = vmatpush1.bf16.msra.mxu0 %v7500_v20  ;;  %v4391_v28 = vrot.slane %v4362_v3, %v4390_v21  ;;  %v4395_v20 = vrot.slane %v4362_v3, %v4394_v60  ;;  %vm4428_vm13 = vcmp.eq.s32.totalorder %v4367_v19, 1  ;;  %vm4429_vm11 = vcmp.eq.s32.totalorder %v4371_v55, 1  ;;  %p4787_p5 = por %p4786_p4, %p4785_p3 }
 0x4a9   :  { %4237 = vmatprep.subr.bf16.mxu1 %v7543_v56  ;;  %4317 = vmatprep.subr.bf16.mxu0 %v3165_v30  ;;  %v3204_v56 = vpop.permute.xlu0 %3203  ;;  %vm4431_vm9 = vcmp.eq.s32.totalorder %v4379_v5, 1 }
 0x4aa   :  { %vm4434_vm3 = vcmp.eq.s32.totalorder %v4391_v28, 1  ;;  %vm4435_vm6 = vcmp.eq.s32.totalorder %v4395_v20, 1  ;;  %p4788_p6 = pnand %p4787_p5, %p4781_p2 }
 0x4ac   :  { %4238 = vmatpush1.bf16.msra.mxu1 %v7523_v42  ;;  %4318 = vmatpush1.bf16.msra.mxu0 %v7519_v15  ;;  %v3205_v42 = vsel %vm269_vm10, %v7502_v24, %v3204_v56  ;;  %v8045_v24 = vld [vmem:[#allocation24_spill] sm:$0xff]  ;;  %vm4361_vm10 = vcmp.gt.f32.partialorder %v4359_v33, 0.5 }
 0x4ad   :  { %4239 = vmatprep.subr.bf16.mxu1 %v7554_v59  ;;  %4319 = vmatprep.subr.bf16.mxu0 %v3185_v52 }
 0x4ae   :  { %v7682_v58 = vpop.permute.xlu1 %3659 }
 0x4af   :  { %v4661_v39 = vadd.f32 %v7586_v51, %v7682_v58  ;;  %v4662_v15 = vadd.f32 %v7588_v4, %v7682_v58  ;;  %v4663_v59 = vadd.f32 %v7615_v13, %v7682_v58  ;;  %v4664_v10 = vadd.f32 %v7617_v62, %v7682_v58 }
 0x4b0   :  { %4240 = vmatpush1.bf16.msra.mxu1 %v7538_v14  ;;  %4320 = vmatpush1.bf16.msra.mxu0 %v7534_v22  ;;  %v4657_v57 = vadd.f32 %v8045_v24, %v7682_v58  ;;  %v4658_v54 = vadd.f32 %v8046_v37, %v7682_v58  ;;  %v4659_v51 = vadd.f32 %v7309_v36, %v7682_v58 }
 0x4b1   :  { %4321 = vmatprep.subr.bf16.mxu0 %v3205_v42  ;;  %v4346_v4 = vmax.f32 %v4661_v39, 0.0  ;;  %v4347_v6 = vmax.f32 %v4662_v15, 0.0  ;;  %v4348_v12 = vmax.f32 %v4663_v59, 0.0  ;;  %v4349_v40 = vmax.f32 %v4664_v10, 0.0 }
 0x4b2   :  { %v4660_v14 = vadd.f32 %v7313_v35, %v7682_v58  ;;  %v4342_v18 = vmax.f32 %v4657_v57, 0.0  ;;  %v4343_v22 = vmax.f32 %v4658_v54, 0.0  ;;  %v4344_v17 = vmax.f32 %v4659_v51, 0.0 }
 0x4b3   :  { %4252 = vmatmul.mubr.bf16.vlgmr.msra.gmra.mrb[28].mxu1 %v8002_v48  ;;  %v4448_v45 = vsel %vm4432_vm8, %v4346_v4, 0.0  ;;  %v4449_v0 = vsel %vm4433_vm14, %v4347_v6, 0.0  ;;  %v4450_v36 = vsel %vm4434_vm3, %v4348_v12, 0.0  ;;  %v4451_v25 = vsel %vm4435_vm6, %v4349_v40, 0.0 }
 0x4b4   :  { %4322 = vmatpush1.bf16.msra.mxu0 %v7549_v49  ;;  %v4470_v13 = vsel %vm4460_vm7, %v4448_v45, -inf  ;;  %v4471_v62 = vsel %vm4460_vm7, %v4449_v0, -inf  ;;  %v4472_v35 = vsel %vm4460_vm7, %v4450_v36, -inf  ;;  %v4473_v53 = vsel %vm4460_vm7, %v4451_v25, -inf }
 0x4b5   :  { %v4474_v47 = vmax.f32 %v4470_v13, %v4471_v62  ;;  %v4475_v38 = vmax.f32 %v4472_v35, %v4473_v53  ;;  %v4345_v8 = vmax.f32 %v4660_v14, 0.0  ;;  %v4444_v16 = vsel %vm4428_vm13, %v4342_v18, 0.0 }
 0x4b6   :  { %v4445_v9 = vsel %vm4429_vm11, %v4343_v22, 0.0  ;;  %v4446_v61 = vsel %vm4430_vm0, %v4344_v17, 0.0  ;;  %v4461_v63 = vsel %vm4460_vm7, %v4444_v16, -inf  ;;  %vm4497_vm3 = vcmask 7168  }
 0x4b7   :  { %4334 = vmatmul.mubr.bf16.vlgmr.msra.gmra.mrb[32].mxu0 %v8002_v48  ;;  %v4476_v49 = vmax.f32 %v4474_v47, %v4475_v38  ;;  %v4447_v11 = vsel %vm4431_vm9, %v4345_v8, 0.0  ;;  %v4462_v1 = vsel %vm4460_vm7, %v4445_v9, -inf  ;;  %v4463_v32 = vsel %vm4460_vm7, %v4446_v61, -inf }
 0x4b8   :  { %v4464_v41 = vsel %vm4460_vm7, %v4447_v11, -inf  ;;  %v4465_v3 = vmax.f32 %v4461_v63, %v4462_v1  ;;  %v4363_v48 = vsel %vm4361_vm10, 1, %v8044_v2  ;;  %vm4499_vm6 = vcmask 15360  }
 0x4b9   :  { %4477 = vmax.xlane.f32.xlu1 %v4476_v49  ;;  %v4466_v43 = vmax.f32 %v4463_v32, %v4464_v41  ;;  %v4399_v34 = vrot.slane %v4363_v48, %v4366_v27  ;;  %v4403_v26 = vrot.slane %v4363_v48, %v4370_v50  ;;  %v4407_v56 = vrot.slane %v4363_v48, %v4374_v29 }
 0x4ba   :  { %v4411_v27 = vrot.slane %v4363_v48, %v4378_v46  ;;  %v4415_v22 = vrot.slane %v4363_v48, %v4382_v44  ;;  %v4419_v17 = vrot.slane %v4363_v48, %v4386_v7  ;;  %v4423_v62 = vrot.slane %v4363_v48, %v4390_v21 }
 0x4bb   :  { %v4467_v30 = vmax.f32 %v4465_v3, %v4466_v43  ;;  %vm4436_vm12 = vcmp.eq.s32.totalorder %v4399_v34, 1  ;;  %vm4437_vm1 = vcmp.eq.s32.totalorder %v4403_v26, 1  ;;  %vm4438_vm15 = vcmp.eq.s32.totalorder %v4407_v56, 1 }
 0x4bc   :  { %vm4439_vm2 = vcmp.eq.s32.totalorder %v4411_v27, 1  ;;  %vm4440_vm4 = vcmp.eq.s32.totalorder %v4415_v22, 1  ;;  %vm4441_vm5 = vcmp.eq.s32.totalorder %v4419_v17, 1  ;;  %v4427_v44 = vrot.slane %v4363_v48, %v4394_v60 }
 0x4bd   :  { %4468 = vmax.xlane.f32.xlu0 %v4467_v30  ;;  %vm4442_vm8 = vcmp.eq.s32.totalorder %v4423_v62, 1  ;;  %vm4501_vm13 = vcmask 23552   ;;  %vm4505_vm11 = vcmask 27648  }
 0x4be   :  { %vm4443_vm14 = vcmp.eq.s32.totalorder %v4427_v44, 1 }
 0x4fe   :  { %v4089_v28 = vpop.f32.mrb[24].mxu1 }
 0x4ff   :  { %v4665_v20 = vadd.f32 %v4089_v28, %v7682_v58  ;;  %v4091_v19 = vpop.f32.mrb[25].mxu1 }
 0x500   :  { %v4666_v55 = vadd.f32 %v4091_v19, %v7682_v58  ;;  %v4093_v31 = vpop.f32.mrb[26].mxu1 }
 0x501   :  { %v4350_v52 = vmax.f32 %v4665_v20, 0.0  ;;  %v4094_v2 = vpop.f32.mrb[27].mxu1 }
 0x502   :  { %v4351_v5 = vmax.f32 %v4666_v55, 0.0  ;;  %v4171_v42 = vpop.f32.mrb[28].mxu0 }
 0x503   :  { %v4452_v50 = vsel %vm4436_vm12, %v4350_v52, 0.0  ;;  %v4667_v39 = vadd.f32 %v4171_v42, %v7682_v58  ;;  %v4173_v15 = vpop.f32.mrb[29].mxu0 }
 0x504   :  { %v4479_v59 = vsel %vm4460_vm7, %v4452_v50, -inf  ;;  %v4453_v10 = vsel %vm4437_vm1, %v4351_v5, 0.0  ;;  %v4668_v24 = vadd.f32 %v4173_v15, %v7682_v58  ;;  %v4175_v57 = vpop.f32.mrb[30].mxu0 }
 0x505   :  { %v4480_v29 = vsel %vm4460_vm7, %v4453_v10, -inf  ;;  %v4352_v37 = vmax.f32 %v4667_v39, 0.0  ;;  %v4176_v54 = vpop.f32.mrb[31].mxu0 }
 0x506   :  { %v4483_v51 = vmax.f32 %v4479_v59, %v4480_v29  ;;  %v4353_v46 = vmax.f32 %v4668_v24, 0.0 }
 0x507   :  { %v4454_v4 = vsel %vm4438_vm15, %v4352_v37, 0.0 }
 0x508   :  { %v4481_v6 = vsel %vm4460_vm7, %v4454_v4, -inf  ;;  %v4455_v12 = vsel %vm4439_vm2, %v4353_v46, 0.0 }
 0x509   :  { %v4482_v40 = vsel %vm4460_vm7, %v4455_v12, -inf }
 0x50a   :  { %v4484_v14 = vmax.f32 %v4481_v6, %v4482_v40 }
 0x50c   :  { %v4485_v18 = vmax.f32 %v4483_v51, %v4484_v14 }
 0x50e   :  { %4486 = vmax.xlane.f32.xlu0 %v4485_v18 }
 0x546   :  { %v4478_v34 = vpop.xlane.xlu1 %4477 }
 0x54a   :  { %v4469_v48 = vpop.xlane.xlu0 %4468 }
 0x54b   :  { %v4498_v26 = vsel %vm4497_vm3, %v4469_v48, %v4478_v34 }
 0x586   :  { %v4253_v45 = vpop.f32.mrb[28].mxu1 }
 0x587   :  { %v4669_v0 = vadd.f32 %v4253_v45, %v7682_v58  ;;  %v4255_v36 = vpop.f32.mrb[29].mxu1 }
 0x588   :  { %v4670_v25 = vadd.f32 %v4255_v36, %v7682_v58  ;;  %v4257_v13 = vpop.f32.mrb[30].mxu1 }
 0x589   :  { %v4354_v35 = vmax.f32 %v4669_v0, 0.0  ;;  %v4258_v53 = vpop.f32.mrb[31].mxu1 }
 0x58a   :  { %v4355_v47 = vmax.f32 %v4670_v25, 0.0  ;;  %v4335_v38 = vpop.f32.mrb[32].mxu0 }
 0x58b   :  { %v4456_v7 = vsel %vm4440_vm4, %v4354_v35, 0.0  ;;  %v4671_v8 = vadd.f32 %v4335_v38, %v7682_v58  ;;  %v4337_v16 = vpop.f32.mrb[33].mxu0 }
 0x58c   :  { %v4488_v9 = vsel %vm4460_vm7, %v4456_v7, -inf  ;;  %v4457_v61 = vsel %vm4441_vm5, %v4355_v47, 0.0  ;;  %v4672_v63 = vadd.f32 %v4337_v16, %v7682_v58  ;;  %v4339_v49 = vpop.f32.mrb[34].mxu0 }
 0x58d   :  { %v4489_v21 = vsel %vm4460_vm7, %v4457_v61, -inf  ;;  %v4356_v11 = vmax.f32 %v4671_v8, 0.0  ;;  %v4340_v1 = vpop.f32.mrb[35].mxu0 }
 0x58e   :  { %v4492_v23 = vmax.f32 %v4488_v9, %v4489_v21  ;;  %v4357_v60 = vmax.f32 %v4672_v63, 0.0 }
 0x58f   :  { %v4458_v32 = vsel %vm4442_vm8, %v4356_v11, 0.0 }
 0x590   :  { %v4490_v41 = vsel %vm4460_vm7, %v4458_v32, -inf  ;;  %v4459_v3 = vsel %vm4443_vm14, %v4357_v60, 0.0 }
 0x591   :  { %v4491_v43 = vsel %vm4460_vm7, %v4459_v3, -inf }
 0x592   :  { %v4493_v30 = vmax.f32 %v4490_v41, %v4491_v43 }
 0x594   :  { %v4494_v33 = vmax.f32 %v4492_v23, %v4493_v30 }
 0x596   :  { %4495 = vmax.xlane.f32.xlu0 %v4494_v33 }
 0x59b   :  { %v4487_v58 = vpop.xlane.xlu0 %4486 }
 0x59c   :  { %v4500_v28 = vsel %vm4499_vm6, %v4498_v26, %v4487_v58 }
 0x623   :  { %v4496_v20 = vpop.xlane.xlu0 %4495 }
 0x624   :  { %v4502_v19 = vsel %vm4501_vm13, %v4500_v28, %v4496_v20 }
 0x625   :  { %4734 = vtanh.f32 %v4502_v19 }
 0x62f   :  { %v4735_v55 = vpop.eup %4734 }
 0x630   :  { %v4504_v31 = vmul.f32 2.0, %v4735_v55 }
 0x632   :  { %4506 = vst.msk [vmem:[#allocation9] sm:$0xf] %vm4505_vm11, %v4504_v31 }
 0x633   :  { %4791 = shalt.err (!%p4788_p6)
}
 0x634   :  { %s4792_s29 = scalar_lea.hbm %s7777_s6, 64 }
 0x635   :  { %p4793_p7 = scmp.ne.s32.totalorder %s7777_s6, %s4792_s29  ;;  %p4796_p8 = scmp.lt.u32.totalorder %s4792_s29, %s7777_s6 }
 0x637   :  { %p4798_p9 = pnand %p4796_p8, %p4793_p7 }
 0x639   :  { %4801 = shalt.err (!%p4798_p9)
}
 0x63a   :  { %4516 = dma.vmem_to_hbm [thread:$0]  %s4514_s26, 64, %s7777_s6, [#allocation6]  }
 0x63b   :  { %4806 = dma.done.wait [#allocation6], 64  }
 0x63c   :  { %4807 = vsyncadd [#allocation6], 4294967232 }
 0x63d   :  { %4520 = vsyncpa [#allocation5], 1 }
 0x63e   :  { %4521 = vsyncpa [#allocation8], 1 }
 0x63f   :  { %4522 = vsyncpa [#allocation6], 1 }

</bundles_post_ra>
